<compile_context>
chip_gen: v7x
topology: tpu7x:2x2x1
jax: 0.10.0
libtpu: 0.0.40
codegen_flags: <defaults>
</compile_context>

<pallas_src>
import jax
import jax.numpy as jnp
from jax.experimental import pallas as pl
from jax.experimental.pallas import tpu as pltpu

# ---- synthetic config (mirrors `config.*` / `vocab` in the PyTorch module) ----
VOCAB_SIZE = 16          # len(vocab)
PAD = 0                  # vocab.PAD (also padding_value for pad_packed_sequence)
EMB_SIZE = 32            # config.number_emb_size
HIDDEN_SIZE = 32         # config.number_hidden_size
NUM_LAYERS = 2           # config.number_num_layer

GP = 128                 # per-gate lane padding: one 128-lane tile per gate
B_SUB = 8                # sublane padding of the batch dimension (f32 tile rows)


# ------------------------------ Pallas kernel ---------------------------------
def make_encoder_kernel(B, T, V, H, num_layers, pad_value):
    """Fused embedding-lookup + multi-layer GRU kernel (single grid step).

    Gate blocks (each GP=128 lanes, only the first H lanes meaningful):
      [0:GP)      R    : W_ir x + b_ir + W_hr h + b_hr
      [GP:2GP)    Z    : W_iz x + b_iz + W_hz h + b_hz
      [2GP:3GP)   N_in : W_in x + b_in
      [3GP:4GP)   N_hid: W_hn h + b_hn        (multiplied by r)
    """
    NG = 4 * GP

    def kernel(*refs):
        tok_ref, len_ref, table0_ref, whh0_ref = refs[0], refs[1], refs[2], refs[3]
        deep_refs = refs[4:4 + 2 * (num_layers - 1)]
        out_ref = refs[4 + 2 * (num_layers - 1)]     # (B, T*GP)
        hfin_ref = refs[5 + 2 * (num_layers - 1)]    # (num_layers, B, GP)

        # ---- embedding lookup + layer-0 input projection, fused & hoisted ----
        # one-hot (T*B, V) @ table0 (V, 4GP) on the MXU; biases already folded
        # into table0 (exact: each one-hot row sums to 1).
        tok = tok_ref[...]                                            # (T*B, 1)
        onehot = (jax.lax.broadcasted_iota(jnp.int32, (T * B, V), 1)
                  == tok).astype(jnp.float32)                         # (T*B, V)
        gi0 = jnp.dot(onehot, table0_ref[...],
                      preferred_element_type=jnp.float32)             # (T*B, 4GP)
        gi0 = gi0.reshape(T, B, NG)            # time-major; leading-axis indexing

        whh0 = whh0_ref[...]                                          # (GP, 4GP)
        deep_w = [(deep_refs[2 * i][...], deep_refs[2 * i + 1][...])
                  for i in range(num_layers - 1)]                     # (2GP,4GP),(1,4GP)

        lens = len_ref[...]                                           # (B, 1)

        def gru_from_gates(g, h):
            # g: (B, 4GP) pre-activation gate blocks; h: (B, GP)
            r = jax.nn.sigmoid(g[:, 0 * GP:1 * GP])
            z = jax.nn.sigmoid(g[:, 1 * GP:2 * GP])
            n = jnp.tanh(g[:, 2 * GP:3 * GP] + r * g[:, 3 * GP:4 * GP])
            return (1.0 - z) * n + z * h

        hs = [jnp.zeros((B, GP), jnp.float32) for _ in range(num_layers)]  # h0 = 0
        outs = []
        for t in range(T):                     # T small & static -> unrolled
            valid = lens > t                   # (B, 1): freeze carry past length

            # layer 0: only the h-dependent matmul remains on the serial path
            g0 = gi0[t] + jnp.dot(hs[0], whh0, preferred_element_type=jnp.float32)
            h_new = gru_from_gates(g0, hs[0])
            hs[0] = jnp.where(valid, h_new, hs[0])
            x_l = hs[0]

            # deeper layers: ONE fused [x, h] @ W_stack matmul per layer
            for l in range(1, num_layers):
                w_stack, b = deep_w[l - 1]
                xh = jnp.concatenate([x_l, hs[l]], axis=1)            # (B, 2GP)
                g = jnp.dot(xh, w_stack, preferred_element_type=jnp.float32) + b
                h_new = gru_from_gates(g, hs[l])
                hs[l] = jnp.where(valid, h_new, hs[l])
                x_l = hs[l]

            # pad_packed_sequence(padding_value=PAD)
            outs.append(jnp.where(valid, x_l, jnp.float32(pad_value)))

        # single lane-dense writeback: (B, T*GP)
        out_ref[...] = jnp.concatenate(outs, axis=1)
        for l in range(num_layers):
            hfin_ref[l] = hs[l]

    return kernel


# ------------------------------ parameter init --------------------------------
def init_params(key):
    """Raw PyTorch-style parameters (weights pre-transposed for x @ W)."""
    params = {}
    k_emb, key = jax.random.split(key)
    emb = 0.1 * jax.random.normal(k_emb, (VOCAB_SIZE, EMB_SIZE), jnp.float32)
    emb = emb.at[PAD].set(0.0)                    # padding_idx=vocab.PAD
    params["embedding"] = emb

    layers = []
    H = HIDDEN_SIZE
    scale = 1.0 / jnp.sqrt(jnp.float32(H))
    for layer in range(NUM_LAYERS):
        e_in = EMB_SIZE if layer == 0 else H
        k1, k2, k3, k4, key = jax.random.split(key, 5)
        # gate order (r, z, n)
        w_ih = scale * jax.random.uniform(k1, (e_in, 3 * H), jnp.float32, -1.0, 1.0)
        w_hh = scale * jax.random.uniform(k2, (H, 3 * H), jnp.float32, -1.0, 1.0)
        b_ih = scale * jax.random.uniform(k3, (1, 3 * H), jnp.float32, -1.0, 1.0)
        b_hh = scale * jax.random.uniform(k4, (1, 3 * H), jnp.float32, -1.0, 1.0)
        layers.append((w_ih, w_hh, b_ih, b_hh))
    params["gru"] = layers
    return params


# --------------------------- weight packing (wrapper) ---------------------------
def pack_params(params):
    """Pack weights into gate-tile-aligned, fused kernel layouts."""
    H = HIDDEN_SIZE
    hi = jax.lax.Precision.HIGHEST
    emb = params["embedding"]                       # (V, E)
    layers = params["gru"]
    V = emb.shape[0]

    def split(w):                                   # (in, 3H) -> r, z, n
        return w[:, :H], w[:, H:2 * H], w[:, 2 * H:]

    # ---- layer 0: embedding table folded into the input projection ----
    w_ih0, w_hh0, b_ih0, b_hh0 = layers[0]
    ir, iz, in_ = split(w_ih0)
    table0 = jnp.zeros((V, 4 * GP), jnp.float32)
    table0 = table0.at[:, 0 * GP:0 * GP + H].set(jnp.dot(emb, ir, precision=hi))
    table0 = table0.at[:, 1 * GP:1 * GP + H].set(jnp.dot(emb, iz, precision=hi))
    table0 = table0.at[:, 2 * GP:2 * GP + H].set(jnp.dot(emb, in_, precision=hi))
    # fold biases (exact since one-hot rows sum to 1): r/z pre-summed,
    # b_in goes to the N_in block, b_hn to the N_hid block.
    table0 = table0.at[:, 0 * GP:0 * GP + H].add(b_ih0[0, :H] + b_hh0[0, :H])
    table0 = table0.at[:, 1 * GP:1 * GP + H].add(b_ih0[0, H:2 * H] + b_hh0[0, H:2 * H])
    table0 = table0.at[:, 2 * GP:2 * GP + H].add(b_ih0[0, 2 * H:])
    table0 = table0.at[:, 3 * GP:3 * GP + H].add(b_hh0[0, 2 * H:])

    hr, hz, hn = split(w_hh0)
    whh0p = jnp.zeros((GP, 4 * GP), jnp.float32)
    whh0p = whh0p.at[:H, 0 * GP:0 * GP + H].set(hr)
    whh0p = whh0p.at[:H, 1 * GP:1 * GP + H].set(hz)
    whh0p = whh0p.at[:H, 3 * GP:3 * GP + H].set(hn)

    # ---- deeper layers: stacked [W_ih; W_hh] for one fused matmul per step ----
    deep = []
    for (w_ih, w_hh, b_ih, b_hh) in layers[1:]:
        ir, iz, in_ = split(w_ih)                   # (H, H) each (E_in == H)
        hr, hz, hn = split(w_hh)
        ws = jnp.zeros((2 * GP, 4 * GP), jnp.float32)
        ws = ws.at[:H, 0 * GP:0 * GP + H].set(ir)           # x part
        ws = ws.at[:H, 1 * GP:1 * GP + H].set(iz)
        ws = ws.at[:H, 2 * GP:2 * GP + H].set(in_)
        ws = ws.at[GP:GP + H, 0 * GP:0 * GP + H].set(hr)    # h part
        ws = ws.at[GP:GP + H, 1 * GP:1 * GP + H].set(hz)
        ws = ws.at[GP:GP + H, 3 * GP:3 * GP + H].set(hn)
        b = jnp.zeros((1, 4 * GP), jnp.float32)
        b = b.at[0, 0 * GP:0 * GP + H].set(b_ih[0, :H] + b_hh[0, :H])
        b = b.at[0, 1 * GP:1 * GP + H].set(b_ih[0, H:2 * H] + b_hh[0, H:2 * H])
        b = b.at[0, 2 * GP:2 * GP + H].set(b_ih[0, 2 * H:])
        b = b.at[0, 3 * GP:3 * GP + H].set(b_hh[0, 2 * H:])
        deep.append((ws, b))
    return table0, whh0p, deep


# ------------------------------ encoder forward --------------------------------
def encoder_forward(params, x, x_len):
    """x: (B, T) int32 token ids; x_len: python list of ints (descending)."""
    B, T_in = x.shape
    T_max = int(max(x_len))                 # pad_packed_sequence crops to batch max
    # bucket T to a multiple of 8 -> one reusable compile per bucket
    T = max(8, -(-T_max // 8) * 8)
    # pad batch to a full sublane tile
    B_PAD = max(B_SUB, -(-B // B_SUB) * B_SUB)

    H = HIDDEN_SIZE
    L = NUM_LAYERS
    V = VOCAB_SIZE

    m = min(T, T_in)
    xt = jnp.full((B_PAD, T), PAD, jnp.int32)
    xt = xt.at[:B, :m].set(x[:, :m].astype(jnp.int32))
    lens = jnp.zeros((B_PAD, 1), jnp.int32).at[:B, 0].set(jnp.asarray(x_len, jnp.int32))
    # time-major flattened tokens so the hoisted layer-0 gate activations can be
    # indexed per step on the leading axis inside the kernel
    tok_tm = jnp.transpose(xt).reshape(T * B_PAD, 1)

    table0, whh0p, deep = pack_params(params)
    in_arrays = [tok_tm, lens, table0, whh0p]
    for (ws, b) in deep:
        in_arrays += [ws, b]

    def full_spec(shape):
        zeros = (0,) * len(shape)
        return pl.BlockSpec(shape, lambda i, _z=zeros: _z)

    out_flat, hidden = pl.pallas_call(
        make_encoder_kernel(B_PAD, T, V, H, L, float(PAD)),
        out_shape=(jax.ShapeDtypeStruct((B_PAD, T * GP), jnp.float32),
                   jax.ShapeDtypeStruct((L, B_PAD, GP), jnp.float32)),
        grid_spec=pltpu.PrefetchScalarGridSpec(
            num_scalar_prefetch=0,
            grid=(1,),                                   # single fused invocation
            in_specs=[full_spec(a.shape) for a in in_arrays],
            out_specs=[full_spec((B_PAD, T * GP)), full_spec((L, B_PAD, GP))],
        ),
        compiler_params=pltpu.CompilerParams(
            dimension_semantics=("arbitrary",)),
    )(*in_arrays)

    # crop padded batch rows / lane padding / T bucket back to module semantics
    output = out_flat.reshape(B_PAD, T, GP)[:B, :T_max, :H]   # batch_first layout
    hidden = hidden[:, :B, :H]                                # (num_layers, B, H)
    return output, hidden


# ------------------------------ pure-JAX reference ------------------------------
def reference_forward(params, x, x_len):
    B, _ = x.shape
    T = int(max(x_len))
    x = x[:, :T]
    H = HIDDEN_SIZE
    hi = jax.lax.Precision.HIGHEST
    lens = jnp.asarray(x_len, jnp.int32)
    layer_in = jnp.take(params["embedding"], x, axis=0)       # (B, T, E)
    hiddens = []
    for (w_ih, w_hh, b_ih, b_hh) in params["gru"]:
        h = jnp.zeros((B, H), jnp.float32)
        outs = []
        for t in range(T):
            gi = jnp.dot(layer_in[:, t, :], w_ih, precision=hi) + b_ih
            gh = jnp.dot(h, w_hh, precision=hi) + b_hh
            r = jax.nn.sigmoid(gi[:, :H] + gh[:, :H])
            z = jax.nn.sigmoid(gi[:, H:2 * H] + gh[:, H:2 * H])
            n = jnp.tanh(gi[:, 2 * H:] + r * gh[:, 2 * H:])
            h_new = (1.0 - z) * n + z * h
            valid = (lens > t)[:, None]
            h = jnp.where(valid, h_new, h)
            outs.append(jnp.where(valid, h, jnp.float32(PAD)))
        hiddens.append(h)
        layer_in = jnp.stack(outs, axis=1)
    return layer_in, jnp.stack(hiddens, axis=0)


# ------------------------------------ main -------------------------------------
if __name__ == "__main__":
    key = jax.random.PRNGKey(0)
    k_tok, k_par = jax.random.split(key)

    B, T = 2, 8
    x_len = [8, 5]   # descending (pack_padded_sequence enforce_sorted=True)

    # token ids in [1, VOCAB), PAD after each sequence's length
    x = jax.random.randint(k_tok, (B, T), 1, VOCAB_SIZE, jnp.int32)
    pos = jnp.arange(T)[None, :]
    x = jnp.where(pos < jnp.asarray(x_len)[:, None], x, PAD)

    params = init_params(k_par)

    output, hidden = encoder_forward(params, x, x_len)
    jax.block_until_ready((output, hidden))

    assert output.shape == (B, max(x_len), HIDDEN_SIZE)
    assert hidden.shape == (NUM_LAYERS, B, HIDDEN_SIZE)
    # padded output positions must equal padding_value = PAD
    assert float(jnp.abs(output[1, x_len[1]:]).max()) == float(PAD)

    # numerical check against a pure-JAX reference of the same GRU math
    ref_out, ref_hid = reference_forward(params, x, x_len)
    assert jnp.allclose(output, ref_out, atol=1e-4, rtol=1e-4), \
        float(jnp.abs(output - ref_out).max())
    assert jnp.allclose(hidden, ref_hid, atol=1e-4, rtol=1e-4), \
        float(jnp.abs(hidden - ref_hid).max())

    print("KERNEL_OK")
</pallas_src>

<mosaic_0001>
module attributes {stable_mosaic.version = 11 : i64} {
  func.func @kernel(%arg0: i32, %arg1: memref<64x1xi32, #tpu.memory_space<vmem>>, %arg2: memref<8x1xi32, #tpu.memory_space<vmem>>, %arg3: memref<16x512xf32, #tpu.memory_space<vmem>>, %arg4: memref<128x512xf32, #tpu.memory_space<vmem>>, %arg5: memref<256x512xf32, #tpu.memory_space<vmem>>, %arg6: memref<1x512xf32, #tpu.memory_space<vmem>>, %arg7: memref<8x1024xf32, #tpu.memory_space<vmem>>, %arg8: memref<2x8x128xf32, #tpu.memory_space<vmem>>) attributes {dimension_semantics = [#tpu.dimension_semantics<arbitrary>], iteration_bounds = array<i64: 1>, scalar_prefetch = 0 : i64, scratch_operands = 0 : i64, tpu.core_type = #tpu.core_type<tc>, window_params = [{pipeline_mode = #tpu.pipeline_mode<synchronous>, transform_indices = @transform_0, window_bounds = array<i64: 64, 1>}, {pipeline_mode = #tpu.pipeline_mode<synchronous>, transform_indices = @transform_1, window_bounds = array<i64: 8, 1>}, {pipeline_mode = #tpu.pipeline_mode<synchronous>, transform_indices = @transform_2, window_bounds = array<i64: 16, 512>}, {pipeline_mode = #tpu.pipeline_mode<synchronous>, transform_indices = @transform_3, window_bounds = array<i64: 128, 512>}, {pipeline_mode = #tpu.pipeline_mode<synchronous>, transform_indices = @transform_4, window_bounds = array<i64: 256, 512>}, {pipeline_mode = #tpu.pipeline_mode<synchronous>, transform_indices = @transform_5, window_bounds = array<i64: 1, 512>}, {pipeline_mode = #tpu.pipeline_mode<synchronous>, transform_indices = @transform_6, window_bounds = array<i64: 8, 1024>}, {pipeline_mode = #tpu.pipeline_mode<synchronous>, transform_indices = @transform_7, window_bounds = array<i64: 2, 8, 128>}]} {
    %c0 = arith.constant 0 : index
    %c0_0 = arith.constant 0 : index
    %0 = vector.load %arg1[%c0, %c0_0] : memref<64x1xi32, #tpu.memory_space<vmem>>, vector<64x1xi32>
    %1 = tpu.iota {dimensions = array<i32: 1>} : vector<64x16xi32>
    %2 = vector.broadcast %0 : vector<64x1xi32> to vector<64x16xi32>
    %3 = arith.cmpi eq, %1, %2 : vector<64x16xi32>
    %4 = arith.extui %3 : vector<64x16xi1> to vector<64x16xi32>
    %5 = arith.sitofp %4 : vector<64x16xi32> to vector<64x16xf32>
    %c0_1 = arith.constant 0 : index
    %c0_2 = arith.constant 0 : index
    %6 = vector.load %arg3[%c0_1, %c0_2] : memref<16x512xf32, #tpu.memory_space<vmem>>, vector<16x512xf32>
    %cst = arith.constant dense<0.000000e+00> : vector<64x512xf32>
    %7 = tpu.matmul %5, %6, %cst {dimension_numbers = #tpu.dot_dimension_numbers<[1], [0], [0], [1], [0, 0, 1, 1], [], []>} : vector<64x16xf32>, vector<16x512xf32>, vector<64x512xf32> -> vector<64x512xf32>
    %8 = vector.shape_cast %7 : vector<64x512xf32> to vector<8x8x512xf32>
    %c0_3 = arith.constant 0 : index
    %c0_4 = arith.constant 0 : index
    %9 = vector.load %arg4[%c0_3, %c0_4] : memref<128x512xf32, #tpu.memory_space<vmem>>, vector<128x512xf32>
    %c0_5 = arith.constant 0 : index
    %c0_6 = arith.constant 0 : index
    %10 = vector.load %arg5[%c0_5, %c0_6] : memref<256x512xf32, #tpu.memory_space<vmem>>, vector<256x512xf32>
    %c0_7 = arith.constant 0 : index
    %c0_8 = arith.constant 0 : index
    %11 = vector.load %arg6[%c0_7, %c0_8] : memref<1x512xf32, #tpu.memory_space<vmem>>, vector<1x512xf32>
    %c0_9 = arith.constant 0 : index
    %c0_10 = arith.constant 0 : index
    %12 = vector.load %arg2[%c0_9, %c0_10] : memref<8x1xi32, #tpu.memory_space<vmem>>, vector<8x1xi32>
    %cst_11 = arith.constant 0.000000e+00 : f32
    %13 = vector.broadcast %cst_11 : f32 to vector<8x128xf32>
    %cst_12 = arith.constant 0.000000e+00 : f32
    %14 = vector.broadcast %cst_12 : f32 to vector<8x128xf32>
    %c0_i32 = arith.constant 0 : i32
    %15 = vector.broadcast %c0_i32 : i32 to vector<8x1xi32>
    %16 = arith.cmpi sgt, %12, %15 : vector<8x1xi32>
    %17 = vector.extract_strided_slice %8 {offsets = [0, 0, 0], sizes = [1, 8, 512], strides = [1, 1, 1]} : vector<8x8x512xf32> to vector<1x8x512xf32>
    %18 = vector.shape_cast %17 : vector<1x8x512xf32> to vector<8x512xf32>
    %cst_13 = arith.constant dense<0.000000e+00> : vector<8x512xf32>
    %19 = tpu.matmul %13, %9, %cst_13 {dimension_numbers = #tpu.dot_dimension_numbers<[1], [0], [0], [1], [0, 0, 1, 1], [], []>} : vector<8x128xf32>, vector<128x512xf32>, vector<8x512xf32> -> vector<8x512xf32>
    %20 = arith.addf %18, %19 : vector<8x512xf32>
    %21 = vector.extract_strided_slice %20 {offsets = [0, 0], sizes = [8, 128], strides = [1, 1]} : vector<8x512xf32> to vector<8x128xf32>
    %22 = arith.negf %21 : vector<8x128xf32>
    %23 = math.exp %22 : vector<8x128xf32>
    %cst_14 = arith.constant 1.000000e+00 : f32
    %24 = vector.broadcast %cst_14 : f32 to vector<8x128xf32>
    %25 = arith.addf %24, %23 : vector<8x128xf32>
    %26 = arith.divf %24, %25 : vector<8x128xf32>
    %27 = vector.extract_strided_slice %20 {offsets = [0, 128], sizes = [8, 128], strides = [1, 1]} : vector<8x512xf32> to vector<8x128xf32>
    %28 = arith.negf %27 : vector<8x128xf32>
    %29 = math.exp %28 : vector<8x128xf32>
    %cst_15 = arith.constant 1.000000e+00 : f32
    %30 = vector.broadcast %cst_15 : f32 to vector<8x128xf32>
    %31 = arith.addf %30, %29 : vector<8x128xf32>
    %32 = arith.divf %30, %31 : vector<8x128xf32>
    %33 = vector.extract_strided_slice %20 {offsets = [0, 256], sizes = [8, 128], strides = [1, 1]} : vector<8x512xf32> to vector<8x128xf32>
    %34 = vector.extract_strided_slice %20 {offsets = [0, 384], sizes = [8, 128], strides = [1, 1]} : vector<8x512xf32> to vector<8x128xf32>
    %35 = arith.mulf %26, %34 : vector<8x128xf32>
    %36 = arith.addf %33, %35 : vector<8x128xf32>
    %37 = math.tanh %36 : vector<8x128xf32>
    %cst_16 = arith.constant 1.000000e+00 : f32
    %38 = vector.broadcast %cst_16 : f32 to vector<8x128xf32>
    %39 = arith.subf %38, %32 : vector<8x128xf32>
    %40 = arith.mulf %39, %37 : vector<8x128xf32>
    %41 = arith.mulf %32, %13 : vector<8x128xf32>
    %42 = arith.addf %40, %41 : vector<8x128xf32>
    %43 = vector.shape_cast %16 : vector<8x1xi1> to vector<8x1xi1>
    %44 = vector.broadcast %43 : vector<8x1xi1> to vector<8x128xi1>
    %45 = arith.select %44, %42, %13 : vector<8x128xi1>, vector<8x128xf32>
    %46 = tpu.concatenate %45, %14 in 1 : vector<8x128xf32>, vector<8x128xf32> -> vector<8x256xf32>
    %cst_17 = arith.constant dense<0.000000e+00> : vector<8x512xf32>
    %47 = tpu.matmul %46, %10, %cst_17 {dimension_numbers = #tpu.dot_dimension_numbers<[1], [0], [0], [1], [0, 0, 1, 1], [], []>} : vector<8x256xf32>, vector<256x512xf32>, vector<8x512xf32> -> vector<8x512xf32>
    %48 = vector.broadcast %11 : vector<1x512xf32> to vector<8x512xf32>
    %49 = arith.addf %47, %48 : vector<8x512xf32>
    %50 = vector.extract_strided_slice %49 {offsets = [0, 0], sizes = [8, 128], strides = [1, 1]} : vector<8x512xf32> to vector<8x128xf32>
    %51 = arith.negf %50 : vector<8x128xf32>
    %52 = math.exp %51 : vector<8x128xf32>
    %cst_18 = arith.constant 1.000000e+00 : f32
    %53 = vector.broadcast %cst_18 : f32 to vector<8x128xf32>
    %54 = arith.addf %53, %52 : vector<8x128xf32>
    %55 = arith.divf %53, %54 : vector<8x128xf32>
    %56 = vector.extract_strided_slice %49 {offsets = [0, 128], sizes = [8, 128], strides = [1, 1]} : vector<8x512xf32> to vector<8x128xf32>
    %57 = arith.negf %56 : vector<8x128xf32>
    %58 = math.exp %57 : vector<8x128xf32>
    %cst_19 = arith.constant 1.000000e+00 : f32
    %59 = vector.broadcast %cst_19 : f32 to vector<8x128xf32>
    %60 = arith.addf %59, %58 : vector<8x128xf32>
    %61 = arith.divf %59, %60 : vector<8x128xf32>
    %62 = vector.extract_strided_slice %49 {offsets = [0, 256], sizes = [8, 128], strides = [1, 1]} : vector<8x512xf32> to vector<8x128xf32>
    %63 = vector.extract_strided_slice %49 {offsets = [0, 384], sizes = [8, 128], strides = [1, 1]} : vector<8x512xf32> to vector<8x128xf32>
    %64 = arith.mulf %55, %63 : vector<8x128xf32>
    %65 = arith.addf %62, %64 : vector<8x128xf32>
    %66 = math.tanh %65 : vector<8x128xf32>
    %cst_20 = arith.constant 1.000000e+00 : f32
    %67 = vector.broadcast %cst_20 : f32 to vector<8x128xf32>
    %68 = arith.subf %67, %61 : vector<8x128xf32>
    %69 = arith.mulf %68, %66 : vector<8x128xf32>
    %70 = arith.mulf %61, %14 : vector<8x128xf32>
    %71 = arith.addf %69, %70 : vector<8x128xf32>
    %72 = vector.shape_cast %16 : vector<8x1xi1> to vector<8x1xi1>
    %73 = vector.broadcast %72 : vector<8x1xi1> to vector<8x128xi1>
    %74 = arith.select %73, %71, %14 : vector<8x128xi1>, vector<8x128xf32>
    %cst_21 = arith.constant 0.000000e+00 : f32
    %75 = vector.shape_cast %16 : vector<8x1xi1> to vector<8x1xi1>
    %76 = vector.broadcast %75 : vector<8x1xi1> to vector<8x128xi1>
    %77 = vector.broadcast %cst_21 : f32 to vector<8x128xf32>
    %78 = arith.select %76, %74, %77 : vector<8x128xi1>, vector<8x128xf32>
    %c1_i32 = arith.constant 1 : i32
    %79 = vector.broadcast %c1_i32 : i32 to vector<8x1xi32>
    %80 = arith.cmpi sgt, %12, %79 : vector<8x1xi32>
    %81 = vector.extract_strided_slice %8 {offsets = [1, 0, 0], sizes = [1, 8, 512], strides = [1, 1, 1]} : vector<8x8x512xf32> to vector<1x8x512xf32>
    %82 = vector.shape_cast %81 : vector<1x8x512xf32> to vector<8x512xf32>
    %cst_22 = arith.constant dense<0.000000e+00> : vector<8x512xf32>
    %83 = tpu.matmul %45, %9, %cst_22 {dimension_numbers = #tpu.dot_dimension_numbers<[1], [0], [0], [1], [0, 0, 1, 1], [], []>} : vector<8x128xf32>, vector<128x512xf32>, vector<8x512xf32> -> vector<8x512xf32>
    %84 = arith.addf %82, %83 : vector<8x512xf32>
    %85 = vector.extract_strided_slice %84 {offsets = [0, 0], sizes = [8, 128], strides = [1, 1]} : vector<8x512xf32> to vector<8x128xf32>
    %86 = arith.negf %85 : vector<8x128xf32>
    %87 = math.exp %86 : vector<8x128xf32>
    %cst_23 = arith.constant 1.000000e+00 : f32
    %88 = vector.broadcast %cst_23 : f32 to vector<8x128xf32>
    %89 = arith.addf %88, %87 : vector<8x128xf32>
    %90 = arith.divf %88, %89 : vector<8x128xf32>
    %91 = vector.extract_strided_slice %84 {offsets = [0, 128], sizes = [8, 128], strides = [1, 1]} : vector<8x512xf32> to vector<8x128xf32>
    %92 = arith.negf %91 : vector<8x128xf32>
    %93 = math.exp %92 : vector<8x128xf32>
    %cst_24 = arith.constant 1.000000e+00 : f32
    %94 = vector.broadcast %cst_24 : f32 to vector<8x128xf32>
    %95 = arith.addf %94, %93 : vector<8x128xf32>
    %96 = arith.divf %94, %95 : vector<8x128xf32>
    %97 = vector.extract_strided_slice %84 {offsets = [0, 256], sizes = [8, 128], strides = [1, 1]} : vector<8x512xf32> to vector<8x128xf32>
    %98 = vector.extract_strided_slice %84 {offsets = [0, 384], sizes = [8, 128], strides = [1, 1]} : vector<8x512xf32> to vector<8x128xf32>
    %99 = arith.mulf %90, %98 : vector<8x128xf32>
    %100 = arith.addf %97, %99 : vector<8x128xf32>
    %101 = math.tanh %100 : vector<8x128xf32>
    %cst_25 = arith.constant 1.000000e+00 : f32
    %102 = vector.broadcast %cst_25 : f32 to vector<8x128xf32>
    %103 = arith.subf %102, %96 : vector<8x128xf32>
    %104 = arith.mulf %103, %101 : vector<8x128xf32>
    %105 = arith.mulf %96, %45 : vector<8x128xf32>
    %106 = arith.addf %104, %105 : vector<8x128xf32>
    %107 = vector.shape_cast %80 : vector<8x1xi1> to vector<8x1xi1>
    %108 = vector.broadcast %107 : vector<8x1xi1> to vector<8x128xi1>
    %109 = arith.select %108, %106, %45 : vector<8x128xi1>, vector<8x128xf32>
    %110 = tpu.concatenate %109, %74 in 1 : vector<8x128xf32>, vector<8x128xf32> -> vector<8x256xf32>
    %cst_26 = arith.constant dense<0.000000e+00> : vector<8x512xf32>
    %111 = tpu.matmul %110, %10, %cst_26 {dimension_numbers = #tpu.dot_dimension_numbers<[1], [0], [0], [1], [0, 0, 1, 1], [], []>} : vector<8x256xf32>, vector<256x512xf32>, vector<8x512xf32> -> vector<8x512xf32>
    %112 = vector.broadcast %11 : vector<1x512xf32> to vector<8x512xf32>
    %113 = arith.addf %111, %112 : vector<8x512xf32>
    %114 = vector.extract_strided_slice %113 {offsets = [0, 0], sizes = [8, 128], strides = [1, 1]} : vector<8x512xf32> to vector<8x128xf32>
    %115 = arith.negf %114 : vector<8x128xf32>
    %116 = math.exp %115 : vector<8x128xf32>
    %cst_27 = arith.constant 1.000000e+00 : f32
    %117 = vector.broadcast %cst_27 : f32 to vector<8x128xf32>
    %118 = arith.addf %117, %116 : vector<8x128xf32>
    %119 = arith.divf %117, %118 : vector<8x128xf32>
    %120 = vector.extract_strided_slice %113 {offsets = [0, 128], sizes = [8, 128], strides = [1, 1]} : vector<8x512xf32> to vector<8x128xf32>
    %121 = arith.negf %120 : vector<8x128xf32>
    %122 = math.exp %121 : vector<8x128xf32>
    %cst_28 = arith.constant 1.000000e+00 : f32
    %123 = vector.broadcast %cst_28 : f32 to vector<8x128xf32>
    %124 = arith.addf %123, %122 : vector<8x128xf32>
    %125 = arith.divf %123, %124 : vector<8x128xf32>
    %126 = vector.extract_strided_slice %113 {offsets = [0, 256], sizes = [8, 128], strides = [1, 1]} : vector<8x512xf32> to vector<8x128xf32>
    %127 = vector.extract_strided_slice %113 {offsets = [0, 384], sizes = [8, 128], strides = [1, 1]} : vector<8x512xf32> to vector<8x128xf32>
    %128 = arith.mulf %119, %127 : vector<8x128xf32>
    %129 = arith.addf %126, %128 : vector<8x128xf32>
    %130 = math.tanh %129 : vector<8x128xf32>
    %cst_29 = arith.constant 1.000000e+00 : f32
    %131 = vector.broadcast %cst_29 : f32 to vector<8x128xf32>
    %132 = arith.subf %131, %125 : vector<8x128xf32>
    %133 = arith.mulf %132, %130 : vector<8x128xf32>
    %134 = arith.mulf %125, %74 : vector<8x128xf32>
    %135 = arith.addf %133, %134 : vector<8x128xf32>
    %136 = vector.shape_cast %80 : vector<8x1xi1> to vector<8x1xi1>
    %137 = vector.broadcast %136 : vector<8x1xi1> to vector<8x128xi1>
    %138 = arith.select %137, %135, %74 : vector<8x128xi1>, vector<8x128xf32>
    %cst_30 = arith.constant 0.000000e+00 : f32
    %139 = vector.shape_cast %80 : vector<8x1xi1> to vector<8x1xi1>
    %140 = vector.broadcast %139 : vector<8x1xi1> to vector<8x128xi1>
    %141 = vector.broadcast %cst_30 : f32 to vector<8x128xf32>
    %142 = arith.select %140, %138, %141 : vector<8x128xi1>, vector<8x128xf32>
    %c2_i32 = arith.constant 2 : i32
    %143 = vector.broadcast %c2_i32 : i32 to vector<8x1xi32>
    %144 = arith.cmpi sgt, %12, %143 : vector<8x1xi32>
    %145 = vector.extract_strided_slice %8 {offsets = [2, 0, 0], sizes = [1, 8, 512], strides = [1, 1, 1]} : vector<8x8x512xf32> to vector<1x8x512xf32>
    %146 = vector.shape_cast %145 : vector<1x8x512xf32> to vector<8x512xf32>
    %cst_31 = arith.constant dense<0.000000e+00> : vector<8x512xf32>
    %147 = tpu.matmul %109, %9, %cst_31 {dimension_numbers = #tpu.dot_dimension_numbers<[1], [0], [0], [1], [0, 0, 1, 1], [], []>} : vector<8x128xf32>, vector<128x512xf32>, vector<8x512xf32> -> vector<8x512xf32>
    %148 = arith.addf %146, %147 : vector<8x512xf32>
    %149 = vector.extract_strided_slice %148 {offsets = [0, 0], sizes = [8, 128], strides = [1, 1]} : vector<8x512xf32> to vector<8x128xf32>
    %150 = arith.negf %149 : vector<8x128xf32>
    %151 = math.exp %150 : vector<8x128xf32>
    %cst_32 = arith.constant 1.000000e+00 : f32
    %152 = vector.broadcast %cst_32 : f32 to vector<8x128xf32>
    %153 = arith.addf %152, %151 : vector<8x128xf32>
    %154 = arith.divf %152, %153 : vector<8x128xf32>
    %155 = vector.extract_strided_slice %148 {offsets = [0, 128], sizes = [8, 128], strides = [1, 1]} : vector<8x512xf32> to vector<8x128xf32>
    %156 = arith.negf %155 : vector<8x128xf32>
    %157 = math.exp %156 : vector<8x128xf32>
    %cst_33 = arith.constant 1.000000e+00 : f32
    %158 = vector.broadcast %cst_33 : f32 to vector<8x128xf32>
    %159 = arith.addf %158, %157 : vector<8x128xf32>
    %160 = arith.divf %158, %159 : vector<8x128xf32>
    %161 = vector.extract_strided_slice %148 {offsets = [0, 256], sizes = [8, 128], strides = [1, 1]} : vector<8x512xf32> to vector<8x128xf32>
    %162 = vector.extract_strided_slice %148 {offsets = [0, 384], sizes = [8, 128], strides = [1, 1]} : vector<8x512xf32> to vector<8x128xf32>
    %163 = arith.mulf %154, %162 : vector<8x128xf32>
    %164 = arith.addf %161, %163 : vector<8x128xf32>
    %165 = math.tanh %164 : vector<8x128xf32>
    %cst_34 = arith.constant 1.000000e+00 : f32
    %166 = vector.broadcast %cst_34 : f32 to vector<8x128xf32>
    %167 = arith.subf %166, %160 : vector<8x128xf32>
    %168 = arith.mulf %167, %165 : vector<8x128xf32>
    %169 = arith.mulf %160, %109 : vector<8x128xf32>
    %170 = arith.addf %168, %169 : vector<8x128xf32>
    %171 = vector.shape_cast %144 : vector<8x1xi1> to vector<8x1xi1>
    %172 = vector.broadcast %171 : vector<8x1xi1> to vector<8x128xi1>
    %173 = arith.select %172, %170, %109 : vector<8x128xi1>, vector<8x128xf32>
    %174 = tpu.concatenate %173, %138 in 1 : vector<8x128xf32>, vector<8x128xf32> -> vector<8x256xf32>
    %cst_35 = arith.constant dense<0.000000e+00> : vector<8x512xf32>
    %175 = tpu.matmul %174, %10, %cst_35 {dimension_numbers = #tpu.dot_dimension_numbers<[1], [0], [0], [1], [0, 0, 1, 1], [], []>} : vector<8x256xf32>, vector<256x512xf32>, vector<8x512xf32> -> vector<8x512xf32>
    %176 = vector.broadcast %11 : vector<1x512xf32> to vector<8x512xf32>
    %177 = arith.addf %175, %176 : vector<8x512xf32>
    %178 = vector.extract_strided_slice %177 {offsets = [0, 0], sizes = [8, 128], strides = [1, 1]} : vector<8x512xf32> to vector<8x128xf32>
    %179 = arith.negf %178 : vector<8x128xf32>
    %180 = math.exp %179 : vector<8x128xf32>
    %cst_36 = arith.constant 1.000000e+00 : f32
    %181 = vector.broadcast %cst_36 : f32 to vector<8x128xf32>
    %182 = arith.addf %181, %180 : vector<8x128xf32>
    %183 = arith.divf %181, %182 : vector<8x128xf32>
    %184 = vector.extract_strided_slice %177 {offsets = [0, 128], sizes = [8, 128], strides = [1, 1]} : vector<8x512xf32> to vector<8x128xf32>
    %185 = arith.negf %184 : vector<8x128xf32>
    %186 = math.exp %185 : vector<8x128xf32>
    %cst_37 = arith.constant 1.000000e+00 : f32
    %187 = vector.broadcast %cst_37 : f32 to vector<8x128xf32>
    %188 = arith.addf %187, %186 : vector<8x128xf32>
    %189 = arith.divf %187, %188 : vector<8x128xf32>
    %190 = vector.extract_strided_slice %177 {offsets = [0, 256], sizes = [8, 128], strides = [1, 1]} : vector<8x512xf32> to vector<8x128xf32>
    %191 = vector.extract_strided_slice %177 {offsets = [0, 384], sizes = [8, 128], strides = [1, 1]} : vector<8x512xf32> to vector<8x128xf32>
    %192 = arith.mulf %183, %191 : vector<8x128xf32>
    %193 = arith.addf %190, %192 : vector<8x128xf32>
    %194 = math.tanh %193 : vector<8x128xf32>
    %cst_38 = arith.constant 1.000000e+00 : f32
    %195 = vector.broadcast %cst_38 : f32 to vector<8x128xf32>
    %196 = arith.subf %195, %189 : vector<8x128xf32>
    %197 = arith.mulf %196, %194 : vector<8x128xf32>
    %198 = arith.mulf %189, %138 : vector<8x128xf32>
    %199 = arith.addf %197, %198 : vector<8x128xf32>
    %200 = vector.shape_cast %144 : vector<8x1xi1> to vector<8x1xi1>
    %201 = vector.broadcast %200 : vector<8x1xi1> to vector<8x128xi1>
    %202 = arith.select %201, %199, %138 : vector<8x128xi1>, vector<8x128xf32>
    %cst_39 = arith.constant 0.000000e+00 : f32
    %203 = vector.shape_cast %144 : vector<8x1xi1> to vector<8x1xi1>
    %204 = vector.broadcast %203 : vector<8x1xi1> to vector<8x128xi1>
    %205 = vector.broadcast %cst_39 : f32 to vector<8x128xf32>
    %206 = arith.select %204, %202, %205 : vector<8x128xi1>, vector<8x128xf32>
    %c3_i32 = arith.constant 3 : i32
    %207 = vector.broadcast %c3_i32 : i32 to vector<8x1xi32>
    %208 = arith.cmpi sgt, %12, %207 : vector<8x1xi32>
    %209 = vector.extract_strided_slice %8 {offsets = [3, 0, 0], sizes = [1, 8, 512], strides = [1, 1, 1]} : vector<8x8x512xf32> to vector<1x8x512xf32>
    %210 = vector.shape_cast %209 : vector<1x8x512xf32> to vector<8x512xf32>
    %cst_40 = arith.constant dense<0.000000e+00> : vector<8x512xf32>
    %211 = tpu.matmul %173, %9, %cst_40 {dimension_numbers = #tpu.dot_dimension_numbers<[1], [0], [0], [1], [0, 0, 1, 1], [], []>} : vector<8x128xf32>, vector<128x512xf32>, vector<8x512xf32> -> vector<8x512xf32>
    %212 = arith.addf %210, %211 : vector<8x512xf32>
    %213 = vector.extract_strided_slice %212 {offsets = [0, 0], sizes = [8, 128], strides = [1, 1]} : vector<8x512xf32> to vector<8x128xf32>
    %214 = arith.negf %213 : vector<8x128xf32>
    %215 = math.exp %214 : vector<8x128xf32>
    %cst_41 = arith.constant 1.000000e+00 : f32
    %216 = vector.broadcast %cst_41 : f32 to vector<8x128xf32>
    %217 = arith.addf %216, %215 : vector<8x128xf32>
    %218 = arith.divf %216, %217 : vector<8x128xf32>
    %219 = vector.extract_strided_slice %212 {offsets = [0, 128], sizes = [8, 128], strides = [1, 1]} : vector<8x512xf32> to vector<8x128xf32>
    %220 = arith.negf %219 : vector<8x128xf32>
    %221 = math.exp %220 : vector<8x128xf32>
    %cst_42 = arith.constant 1.000000e+00 : f32
    %222 = vector.broadcast %cst_42 : f32 to vector<8x128xf32>
    %223 = arith.addf %222, %221 : vector<8x128xf32>
    %224 = arith.divf %222, %223 : vector<8x128xf32>
    %225 = vector.extract_strided_slice %212 {offsets = [0, 256], sizes = [8, 128], strides = [1, 1]} : vector<8x512xf32> to vector<8x128xf32>
    %226 = vector.extract_strided_slice %212 {offsets = [0, 384], sizes = [8, 128], strides = [1, 1]} : vector<8x512xf32> to vector<8x128xf32>
    %227 = arith.mulf %218, %226 : vector<8x128xf32>
    %228 = arith.addf %225, %227 : vector<8x128xf32>
    %229 = math.tanh %228 : vector<8x128xf32>
    %cst_43 = arith.constant 1.000000e+00 : f32
    %230 = vector.broadcast %cst_43 : f32 to vector<8x128xf32>
    %231 = arith.subf %230, %224 : vector<8x128xf32>
    %232 = arith.mulf %231, %229 : vector<8x128xf32>
    %233 = arith.mulf %224, %173 : vector<8x128xf32>
    %234 = arith.addf %232, %233 : vector<8x128xf32>
    %235 = vector.shape_cast %208 : vector<8x1xi1> to vector<8x1xi1>
    %236 = vector.broadcast %235 : vector<8x1xi1> to vector<8x128xi1>
    %237 = arith.select %236, %234, %173 : vector<8x128xi1>, vector<8x128xf32>
    %238 = tpu.concatenate %237, %202 in 1 : vector<8x128xf32>, vector<8x128xf32> -> vector<8x256xf32>
    %cst_44 = arith.constant dense<0.000000e+00> : vector<8x512xf32>
    %239 = tpu.matmul %238, %10, %cst_44 {dimension_numbers = #tpu.dot_dimension_numbers<[1], [0], [0], [1], [0, 0, 1, 1], [], []>} : vector<8x256xf32>, vector<256x512xf32>, vector<8x512xf32> -> vector<8x512xf32>
    %240 = vector.broadcast %11 : vector<1x512xf32> to vector<8x512xf32>
    %241 = arith.addf %239, %240 : vector<8x512xf32>
    %242 = vector.extract_strided_slice %241 {offsets = [0, 0], sizes = [8, 128], strides = [1, 1]} : vector<8x512xf32> to vector<8x128xf32>
    %243 = arith.negf %242 : vector<8x128xf32>
    %244 = math.exp %243 : vector<8x128xf32>
    %cst_45 = arith.constant 1.000000e+00 : f32
    %245 = vector.broadcast %cst_45 : f32 to vector<8x128xf32>
    %246 = arith.addf %245, %244 : vector<8x128xf32>
    %247 = arith.divf %245, %246 : vector<8x128xf32>
    %248 = vector.extract_strided_slice %241 {offsets = [0, 128], sizes = [8, 128], strides = [1, 1]} : vector<8x512xf32> to vector<8x128xf32>
    %249 = arith.negf %248 : vector<8x128xf32>
    %250 = math.exp %249 : vector<8x128xf32>
    %cst_46 = arith.constant 1.000000e+00 : f32
    %251 = vector.broadcast %cst_46 : f32 to vector<8x128xf32>
    %252 = arith.addf %251, %250 : vector<8x128xf32>
    %253 = arith.divf %251, %252 : vector<8x128xf32>
    %254 = vector.extract_strided_slice %241 {offsets = [0, 256], sizes = [8, 128], strides = [1, 1]} : vector<8x512xf32> to vector<8x128xf32>
    %255 = vector.extract_strided_slice %241 {offsets = [0, 384], sizes = [8, 128], strides = [1, 1]} : vector<8x512xf32> to vector<8x128xf32>
    %256 = arith.mulf %247, %255 : vector<8x128xf32>
    %257 = arith.addf %254, %256 : vector<8x128xf32>
    %258 = math.tanh %257 : vector<8x128xf32>
    %cst_47 = arith.constant 1.000000e+00 : f32
    %259 = vector.broadcast %cst_47 : f32 to vector<8x128xf32>
    %260 = arith.subf %259, %253 : vector<8x128xf32>
    %261 = arith.mulf %260, %258 : vector<8x128xf32>
    %262 = arith.mulf %253, %202 : vector<8x128xf32>
    %263 = arith.addf %261, %262 : vector<8x128xf32>
    %264 = vector.shape_cast %208 : vector<8x1xi1> to vector<8x1xi1>
    %265 = vector.broadcast %264 : vector<8x1xi1> to vector<8x128xi1>
    %266 = arith.select %265, %263, %202 : vector<8x128xi1>, vector<8x128xf32>
    %cst_48 = arith.constant 0.000000e+00 : f32
    %267 = vector.shape_cast %208 : vector<8x1xi1> to vector<8x1xi1>
    %268 = vector.broadcast %267 : vector<8x1xi1> to vector<8x128xi1>
    %269 = vector.broadcast %cst_48 : f32 to vector<8x128xf32>
    %270 = arith.select %268, %266, %269 : vector<8x128xi1>, vector<8x128xf32>
    %c4_i32 = arith.constant 4 : i32
    %271 = vector.broadcast %c4_i32 : i32 to vector<8x1xi32>
    %272 = arith.cmpi sgt, %12, %271 : vector<8x1xi32>
    %273 = vector.extract_strided_slice %8 {offsets = [4, 0, 0], sizes = [1, 8, 512], strides = [1, 1, 1]} : vector<8x8x512xf32> to vector<1x8x512xf32>
    %274 = vector.shape_cast %273 : vector<1x8x512xf32> to vector<8x512xf32>
    %cst_49 = arith.constant dense<0.000000e+00> : vector<8x512xf32>
    %275 = tpu.matmul %237, %9, %cst_49 {dimension_numbers = #tpu.dot_dimension_numbers<[1], [0], [0], [1], [0, 0, 1, 1], [], []>} : vector<8x128xf32>, vector<128x512xf32>, vector<8x512xf32> -> vector<8x512xf32>
    %276 = arith.addf %274, %275 : vector<8x512xf32>
    %277 = vector.extract_strided_slice %276 {offsets = [0, 0], sizes = [8, 128], strides = [1, 1]} : vector<8x512xf32> to vector<8x128xf32>
    %278 = arith.negf %277 : vector<8x128xf32>
    %279 = math.exp %278 : vector<8x128xf32>
    %cst_50 = arith.constant 1.000000e+00 : f32
    %280 = vector.broadcast %cst_50 : f32 to vector<8x128xf32>
    %281 = arith.addf %280, %279 : vector<8x128xf32>
    %282 = arith.divf %280, %281 : vector<8x128xf32>
    %283 = vector.extract_strided_slice %276 {offsets = [0, 128], sizes = [8, 128], strides = [1, 1]} : vector<8x512xf32> to vector<8x128xf32>
    %284 = arith.negf %283 : vector<8x128xf32>
    %285 = math.exp %284 : vector<8x128xf32>
    %cst_51 = arith.constant 1.000000e+00 : f32
    %286 = vector.broadcast %cst_51 : f32 to vector<8x128xf32>
    %287 = arith.addf %286, %285 : vector<8x128xf32>
    %288 = arith.divf %286, %287 : vector<8x128xf32>
    %289 = vector.extract_strided_slice %276 {offsets = [0, 256], sizes = [8, 128], strides = [1, 1]} : vector<8x512xf32> to vector<8x128xf32>
    %290 = vector.extract_strided_slice %276 {offsets = [0, 384], sizes = [8, 128], strides = [1, 1]} : vector<8x512xf32> to vector<8x128xf32>
    %291 = arith.mulf %282, %290 : vector<8x128xf32>
    %292 = arith.addf %289, %291 : vector<8x128xf32>
    %293 = math.tanh %292 : vector<8x128xf32>
    %cst_52 = arith.constant 1.000000e+00 : f32
    %294 = vector.broadcast %cst_52 : f32 to vector<8x128xf32>
    %295 = arith.subf %294, %288 : vector<8x128xf32>
    %296 = arith.mulf %295, %293 : vector<8x128xf32>
    %297 = arith.mulf %288, %237 : vector<8x128xf32>
    %298 = arith.addf %296, %297 : vector<8x128xf32>
    %299 = vector.shape_cast %272 : vector<8x1xi1> to vector<8x1xi1>
    %300 = vector.broadcast %299 : vector<8x1xi1> to vector<8x128xi1>
    %301 = arith.select %300, %298, %237 : vector<8x128xi1>, vector<8x128xf32>
    %302 = tpu.concatenate %301, %266 in 1 : vector<8x128xf32>, vector<8x128xf32> -> vector<8x256xf32>
    %cst_53 = arith.constant dense<0.000000e+00> : vector<8x512xf32>
    %303 = tpu.matmul %302, %10, %cst_53 {dimension_numbers = #tpu.dot_dimension_numbers<[1], [0], [0], [1], [0, 0, 1, 1], [], []>} : vector<8x256xf32>, vector<256x512xf32>, vector<8x512xf32> -> vector<8x512xf32>
    %304 = vector.broadcast %11 : vector<1x512xf32> to vector<8x512xf32>
    %305 = arith.addf %303, %304 : vector<8x512xf32>
    %306 = vector.extract_strided_slice %305 {offsets = [0, 0], sizes = [8, 128], strides = [1, 1]} : vector<8x512xf32> to vector<8x128xf32>
    %307 = arith.negf %306 : vector<8x128xf32>
    %308 = math.exp %307 : vector<8x128xf32>
    %cst_54 = arith.constant 1.000000e+00 : f32
    %309 = vector.broadcast %cst_54 : f32 to vector<8x128xf32>
    %310 = arith.addf %309, %308 : vector<8x128xf32>
    %311 = arith.divf %309, %310 : vector<8x128xf32>
    %312 = vector.extract_strided_slice %305 {offsets = [0, 128], sizes = [8, 128], strides = [1, 1]} : vector<8x512xf32> to vector<8x128xf32>
    %313 = arith.negf %312 : vector<8x128xf32>
    %314 = math.exp %313 : vector<8x128xf32>
    %cst_55 = arith.constant 1.000000e+00 : f32
    %315 = vector.broadcast %cst_55 : f32 to vector<8x128xf32>
    %316 = arith.addf %315, %314 : vector<8x128xf32>
    %317 = arith.divf %315, %316 : vector<8x128xf32>
    %318 = vector.extract_strided_slice %305 {offsets = [0, 256], sizes = [8, 128], strides = [1, 1]} : vector<8x512xf32> to vector<8x128xf32>
    %319 = vector.extract_strided_slice %305 {offsets = [0, 384], sizes = [8, 128], strides = [1, 1]} : vector<8x512xf32> to vector<8x128xf32>
    %320 = arith.mulf %311, %319 : vector<8x128xf32>
    %321 = arith.addf %318, %320 : vector<8x128xf32>
    %322 = math.tanh %321 : vector<8x128xf32>
    %cst_56 = arith.constant 1.000000e+00 : f32
    %323 = vector.broadcast %cst_56 : f32 to vector<8x128xf32>
    %324 = arith.subf %323, %317 : vector<8x128xf32>
    %325 = arith.mulf %324, %322 : vector<8x128xf32>
    %326 = arith.mulf %317, %266 : vector<8x128xf32>
    %327 = arith.addf %325, %326 : vector<8x128xf32>
    %328 = vector.shape_cast %272 : vector<8x1xi1> to vector<8x1xi1>
    %329 = vector.broadcast %328 : vector<8x1xi1> to vector<8x128xi1>
    %330 = arith.select %329, %327, %266 : vector<8x128xi1>, vector<8x128xf32>
    %cst_57 = arith.constant 0.000000e+00 : f32
    %331 = vector.shape_cast %272 : vector<8x1xi1> to vector<8x1xi1>
    %332 = vector.broadcast %331 : vector<8x1xi1> to vector<8x128xi1>
    %333 = vector.broadcast %cst_57 : f32 to vector<8x128xf32>
    %334 = arith.select %332, %330, %333 : vector<8x128xi1>, vector<8x128xf32>
    %c5_i32 = arith.constant 5 : i32
    %335 = vector.broadcast %c5_i32 : i32 to vector<8x1xi32>
    %336 = arith.cmpi sgt, %12, %335 : vector<8x1xi32>
    %337 = vector.extract_strided_slice %8 {offsets = [5, 0, 0], sizes = [1, 8, 512], strides = [1, 1, 1]} : vector<8x8x512xf32> to vector<1x8x512xf32>
    %338 = vector.shape_cast %337 : vector<1x8x512xf32> to vector<8x512xf32>
    %cst_58 = arith.constant dense<0.000000e+00> : vector<8x512xf32>
    %339 = tpu.matmul %301, %9, %cst_58 {dimension_numbers = #tpu.dot_dimension_numbers<[1], [0], [0], [1], [0, 0, 1, 1], [], []>} : vector<8x128xf32>, vector<128x512xf32>, vector<8x512xf32> -> vector<8x512xf32>
    %340 = arith.addf %338, %339 : vector<8x512xf32>
    %341 = vector.extract_strided_slice %340 {offsets = [0, 0], sizes = [8, 128], strides = [1, 1]} : vector<8x512xf32> to vector<8x128xf32>
    %342 = arith.negf %341 : vector<8x128xf32>
    %343 = math.exp %342 : vector<8x128xf32>
    %cst_59 = arith.constant 1.000000e+00 : f32
    %344 = vector.broadcast %cst_59 : f32 to vector<8x128xf32>
    %345 = arith.addf %344, %343 : vector<8x128xf32>
    %346 = arith.divf %344, %345 : vector<8x128xf32>
    %347 = vector.extract_strided_slice %340 {offsets = [0, 128], sizes = [8, 128], strides = [1, 1]} : vector<8x512xf32> to vector<8x128xf32>
    %348 = arith.negf %347 : vector<8x128xf32>
    %349 = math.exp %348 : vector<8x128xf32>
    %cst_60 = arith.constant 1.000000e+00 : f32
    %350 = vector.broadcast %cst_60 : f32 to vector<8x128xf32>
    %351 = arith.addf %350, %349 : vector<8x128xf32>
    %352 = arith.divf %350, %351 : vector<8x128xf32>
    %353 = vector.extract_strided_slice %340 {offsets = [0, 256], sizes = [8, 128], strides = [1, 1]} : vector<8x512xf32> to vector<8x128xf32>
    %354 = vector.extract_strided_slice %340 {offsets = [0, 384], sizes = [8, 128], strides = [1, 1]} : vector<8x512xf32> to vector<8x128xf32>
    %355 = arith.mulf %346, %354 : vector<8x128xf32>
    %356 = arith.addf %353, %355 : vector<8x128xf32>
    %357 = math.tanh %356 : vector<8x128xf32>
    %cst_61 = arith.constant 1.000000e+00 : f32
    %358 = vector.broadcast %cst_61 : f32 to vector<8x128xf32>
    %359 = arith.subf %358, %352 : vector<8x128xf32>
    %360 = arith.mulf %359, %357 : vector<8x128xf32>
    %361 = arith.mulf %352, %301 : vector<8x128xf32>
    %362 = arith.addf %360, %361 : vector<8x128xf32>
    %363 = vector.shape_cast %336 : vector<8x1xi1> to vector<8x1xi1>
    %364 = vector.broadcast %363 : vector<8x1xi1> to vector<8x128xi1>
    %365 = arith.select %364, %362, %301 : vector<8x128xi1>, vector<8x128xf32>
    %366 = tpu.concatenate %365, %330 in 1 : vector<8x128xf32>, vector<8x128xf32> -> vector<8x256xf32>
    %cst_62 = arith.constant dense<0.000000e+00> : vector<8x512xf32>
    %367 = tpu.matmul %366, %10, %cst_62 {dimension_numbers = #tpu.dot_dimension_numbers<[1], [0], [0], [1], [0, 0, 1, 1], [], []>} : vector<8x256xf32>, vector<256x512xf32>, vector<8x512xf32> -> vector<8x512xf32>
    %368 = vector.broadcast %11 : vector<1x512xf32> to vector<8x512xf32>
    %369 = arith.addf %367, %368 : vector<8x512xf32>
    %370 = vector.extract_strided_slice %369 {offsets = [0, 0], sizes = [8, 128], strides = [1, 1]} : vector<8x512xf32> to vector<8x128xf32>
    %371 = arith.negf %370 : vector<8x128xf32>
    %372 = math.exp %371 : vector<8x128xf32>
    %cst_63 = arith.constant 1.000000e+00 : f32
    %373 = vector.broadcast %cst_63 : f32 to vector<8x128xf32>
    %374 = arith.addf %373, %372 : vector<8x128xf32>
    %375 = arith.divf %373, %374 : vector<8x128xf32>
    %376 = vector.extract_strided_slice %369 {offsets = [0, 128], sizes = [8, 128], strides = [1, 1]} : vector<8x512xf32> to vector<8x128xf32>
    %377 = arith.negf %376 : vector<8x128xf32>
    %378 = math.exp %377 : vector<8x128xf32>
    %cst_64 = arith.constant 1.000000e+00 : f32
    %379 = vector.broadcast %cst_64 : f32 to vector<8x128xf32>
    %380 = arith.addf %379, %378 : vector<8x128xf32>
    %381 = arith.divf %379, %380 : vector<8x128xf32>
    %382 = vector.extract_strided_slice %369 {offsets = [0, 256], sizes = [8, 128], strides = [1, 1]} : vector<8x512xf32> to vector<8x128xf32>
    %383 = vector.extract_strided_slice %369 {offsets = [0, 384], sizes = [8, 128], strides = [1, 1]} : vector<8x512xf32> to vector<8x128xf32>
    %384 = arith.mulf %375, %383 : vector<8x128xf32>
    %385 = arith.addf %382, %384 : vector<8x128xf32>
    %386 = math.tanh %385 : vector<8x128xf32>
    %cst_65 = arith.constant 1.000000e+00 : f32
    %387 = vector.broadcast %cst_65 : f32 to vector<8x128xf32>
    %388 = arith.subf %387, %381 : vector<8x128xf32>
    %389 = arith.mulf %388, %386 : vector<8x128xf32>
    %390 = arith.mulf %381, %330 : vector<8x128xf32>
    %391 = arith.addf %389, %390 : vector<8x128xf32>
    %392 = vector.shape_cast %336 : vector<8x1xi1> to vector<8x1xi1>
    %393 = vector.broadcast %392 : vector<8x1xi1> to vector<8x128xi1>
    %394 = arith.select %393, %391, %330 : vector<8x128xi1>, vector<8x128xf32>
    %cst_66 = arith.constant 0.000000e+00 : f32
    %395 = vector.shape_cast %336 : vector<8x1xi1> to vector<8x1xi1>
    %396 = vector.broadcast %395 : vector<8x1xi1> to vector<8x128xi1>
    %397 = vector.broadcast %cst_66 : f32 to vector<8x128xf32>
    %398 = arith.select %396, %394, %397 : vector<8x128xi1>, vector<8x128xf32>
    %c6_i32 = arith.constant 6 : i32
    %399 = vector.broadcast %c6_i32 : i32 to vector<8x1xi32>
    %400 = arith.cmpi sgt, %12, %399 : vector<8x1xi32>
    %401 = vector.extract_strided_slice %8 {offsets = [6, 0, 0], sizes = [1, 8, 512], strides = [1, 1, 1]} : vector<8x8x512xf32> to vector<1x8x512xf32>
    %402 = vector.shape_cast %401 : vector<1x8x512xf32> to vector<8x512xf32>
    %cst_67 = arith.constant dense<0.000000e+00> : vector<8x512xf32>
    %403 = tpu.matmul %365, %9, %cst_67 {dimension_numbers = #tpu.dot_dimension_numbers<[1], [0], [0], [1], [0, 0, 1, 1], [], []>} : vector<8x128xf32>, vector<128x512xf32>, vector<8x512xf32> -> vector<8x512xf32>
    %404 = arith.addf %402, %403 : vector<8x512xf32>
    %405 = vector.extract_strided_slice %404 {offsets = [0, 0], sizes = [8, 128], strides = [1, 1]} : vector<8x512xf32> to vector<8x128xf32>
    %406 = arith.negf %405 : vector<8x128xf32>
    %407 = math.exp %406 : vector<8x128xf32>
    %cst_68 = arith.constant 1.000000e+00 : f32
    %408 = vector.broadcast %cst_68 : f32 to vector<8x128xf32>
    %409 = arith.addf %408, %407 : vector<8x128xf32>
    %410 = arith.divf %408, %409 : vector<8x128xf32>
    %411 = vector.extract_strided_slice %404 {offsets = [0, 128], sizes = [8, 128], strides = [1, 1]} : vector<8x512xf32> to vector<8x128xf32>
    %412 = arith.negf %411 : vector<8x128xf32>
    %413 = math.exp %412 : vector<8x128xf32>
    %cst_69 = arith.constant 1.000000e+00 : f32
    %414 = vector.broadcast %cst_69 : f32 to vector<8x128xf32>
    %415 = arith.addf %414, %413 : vector<8x128xf32>
    %416 = arith.divf %414, %415 : vector<8x128xf32>
    %417 = vector.extract_strided_slice %404 {offsets = [0, 256], sizes = [8, 128], strides = [1, 1]} : vector<8x512xf32> to vector<8x128xf32>
    %418 = vector.extract_strided_slice %404 {offsets = [0, 384], sizes = [8, 128], strides = [1, 1]} : vector<8x512xf32> to vector<8x128xf32>
    %419 = arith.mulf %410, %418 : vector<8x128xf32>
    %420 = arith.addf %417, %419 : vector<8x128xf32>
    %421 = math.tanh %420 : vector<8x128xf32>
    %cst_70 = arith.constant 1.000000e+00 : f32
    %422 = vector.broadcast %cst_70 : f32 to vector<8x128xf32>
    %423 = arith.subf %422, %416 : vector<8x128xf32>
    %424 = arith.mulf %423, %421 : vector<8x128xf32>
    %425 = arith.mulf %416, %365 : vector<8x128xf32>
    %426 = arith.addf %424, %425 : vector<8x128xf32>
    %427 = vector.shape_cast %400 : vector<8x1xi1> to vector<8x1xi1>
    %428 = vector.broadcast %427 : vector<8x1xi1> to vector<8x128xi1>
    %429 = arith.select %428, %426, %365 : vector<8x128xi1>, vector<8x128xf32>
    %430 = tpu.concatenate %429, %394 in 1 : vector<8x128xf32>, vector<8x128xf32> -> vector<8x256xf32>
    %cst_71 = arith.constant dense<0.000000e+00> : vector<8x512xf32>
    %431 = tpu.matmul %430, %10, %cst_71 {dimension_numbers = #tpu.dot_dimension_numbers<[1], [0], [0], [1], [0, 0, 1, 1], [], []>} : vector<8x256xf32>, vector<256x512xf32>, vector<8x512xf32> -> vector<8x512xf32>
    %432 = vector.broadcast %11 : vector<1x512xf32> to vector<8x512xf32>
    %433 = arith.addf %431, %432 : vector<8x512xf32>
    %434 = vector.extract_strided_slice %433 {offsets = [0, 0], sizes = [8, 128], strides = [1, 1]} : vector<8x512xf32> to vector<8x128xf32>
    %435 = arith.negf %434 : vector<8x128xf32>
    %436 = math.exp %435 : vector<8x128xf32>
    %cst_72 = arith.constant 1.000000e+00 : f32
    %437 = vector.broadcast %cst_72 : f32 to vector<8x128xf32>
    %438 = arith.addf %437, %436 : vector<8x128xf32>
    %439 = arith.divf %437, %438 : vector<8x128xf32>
    %440 = vector.extract_strided_slice %433 {offsets = [0, 128], sizes = [8, 128], strides = [1, 1]} : vector<8x512xf32> to vector<8x128xf32>
    %441 = arith.negf %440 : vector<8x128xf32>
    %442 = math.exp %441 : vector<8x128xf32>
    %cst_73 = arith.constant 1.000000e+00 : f32
    %443 = vector.broadcast %cst_73 : f32 to vector<8x128xf32>
    %444 = arith.addf %443, %442 : vector<8x128xf32>
    %445 = arith.divf %443, %444 : vector<8x128xf32>
    %446 = vector.extract_strided_slice %433 {offsets = [0, 256], sizes = [8, 128], strides = [1, 1]} : vector<8x512xf32> to vector<8x128xf32>
    %447 = vector.extract_strided_slice %433 {offsets = [0, 384], sizes = [8, 128], strides = [1, 1]} : vector<8x512xf32> to vector<8x128xf32>
    %448 = arith.mulf %439, %447 : vector<8x128xf32>
    %449 = arith.addf %446, %448 : vector<8x128xf32>
    %450 = math.tanh %449 : vector<8x128xf32>
    %cst_74 = arith.constant 1.000000e+00 : f32
    %451 = vector.broadcast %cst_74 : f32 to vector<8x128xf32>
    %452 = arith.subf %451, %445 : vector<8x128xf32>
    %453 = arith.mulf %452, %450 : vector<8x128xf32>
    %454 = arith.mulf %445, %394 : vector<8x128xf32>
    %455 = arith.addf %453, %454 : vector<8x128xf32>
    %456 = vector.shape_cast %400 : vector<8x1xi1> to vector<8x1xi1>
    %457 = vector.broadcast %456 : vector<8x1xi1> to vector<8x128xi1>
    %458 = arith.select %457, %455, %394 : vector<8x128xi1>, vector<8x128xf32>
    %cst_75 = arith.constant 0.000000e+00 : f32
    %459 = vector.shape_cast %400 : vector<8x1xi1> to vector<8x1xi1>
    %460 = vector.broadcast %459 : vector<8x1xi1> to vector<8x128xi1>
    %461 = vector.broadcast %cst_75 : f32 to vector<8x128xf32>
    %462 = arith.select %460, %458, %461 : vector<8x128xi1>, vector<8x128xf32>
    %c7_i32 = arith.constant 7 : i32
    %463 = vector.broadcast %c7_i32 : i32 to vector<8x1xi32>
    %464 = arith.cmpi sgt, %12, %463 : vector<8x1xi32>
    %465 = vector.extract_strided_slice %8 {offsets = [7, 0, 0], sizes = [1, 8, 512], strides = [1, 1, 1]} : vector<8x8x512xf32> to vector<1x8x512xf32>
    %466 = vector.shape_cast %465 : vector<1x8x512xf32> to vector<8x512xf32>
    %cst_76 = arith.constant dense<0.000000e+00> : vector<8x512xf32>
    %467 = tpu.matmul %429, %9, %cst_76 {dimension_numbers = #tpu.dot_dimension_numbers<[1], [0], [0], [1], [0, 0, 1, 1], [], []>} : vector<8x128xf32>, vector<128x512xf32>, vector<8x512xf32> -> vector<8x512xf32>
    %468 = arith.addf %466, %467 : vector<8x512xf32>
    %469 = vector.extract_strided_slice %468 {offsets = [0, 0], sizes = [8, 128], strides = [1, 1]} : vector<8x512xf32> to vector<8x128xf32>
    %470 = arith.negf %469 : vector<8x128xf32>
    %471 = math.exp %470 : vector<8x128xf32>
    %cst_77 = arith.constant 1.000000e+00 : f32
    %472 = vector.broadcast %cst_77 : f32 to vector<8x128xf32>
    %473 = arith.addf %472, %471 : vector<8x128xf32>
    %474 = arith.divf %472, %473 : vector<8x128xf32>
    %475 = vector.extract_strided_slice %468 {offsets = [0, 128], sizes = [8, 128], strides = [1, 1]} : vector<8x512xf32> to vector<8x128xf32>
    %476 = arith.negf %475 : vector<8x128xf32>
    %477 = math.exp %476 : vector<8x128xf32>
    %cst_78 = arith.constant 1.000000e+00 : f32
    %478 = vector.broadcast %cst_78 : f32 to vector<8x128xf32>
    %479 = arith.addf %478, %477 : vector<8x128xf32>
    %480 = arith.divf %478, %479 : vector<8x128xf32>
    %481 = vector.extract_strided_slice %468 {offsets = [0, 256], sizes = [8, 128], strides = [1, 1]} : vector<8x512xf32> to vector<8x128xf32>
    %482 = vector.extract_strided_slice %468 {offsets = [0, 384], sizes = [8, 128], strides = [1, 1]} : vector<8x512xf32> to vector<8x128xf32>
    %483 = arith.mulf %474, %482 : vector<8x128xf32>
    %484 = arith.addf %481, %483 : vector<8x128xf32>
    %485 = math.tanh %484 : vector<8x128xf32>
    %cst_79 = arith.constant 1.000000e+00 : f32
    %486 = vector.broadcast %cst_79 : f32 to vector<8x128xf32>
    %487 = arith.subf %486, %480 : vector<8x128xf32>
    %488 = arith.mulf %487, %485 : vector<8x128xf32>
    %489 = arith.mulf %480, %429 : vector<8x128xf32>
    %490 = arith.addf %488, %489 : vector<8x128xf32>
    %491 = vector.shape_cast %464 : vector<8x1xi1> to vector<8x1xi1>
    %492 = vector.broadcast %491 : vector<8x1xi1> to vector<8x128xi1>
    %493 = arith.select %492, %490, %429 : vector<8x128xi1>, vector<8x128xf32>
    %494 = tpu.concatenate %493, %458 in 1 : vector<8x128xf32>, vector<8x128xf32> -> vector<8x256xf32>
    %cst_80 = arith.constant dense<0.000000e+00> : vector<8x512xf32>
    %495 = tpu.matmul %494, %10, %cst_80 {dimension_numbers = #tpu.dot_dimension_numbers<[1], [0], [0], [1], [0, 0, 1, 1], [], []>} : vector<8x256xf32>, vector<256x512xf32>, vector<8x512xf32> -> vector<8x512xf32>
    %496 = vector.broadcast %11 : vector<1x512xf32> to vector<8x512xf32>
    %497 = arith.addf %495, %496 : vector<8x512xf32>
    %498 = vector.extract_strided_slice %497 {offsets = [0, 0], sizes = [8, 128], strides = [1, 1]} : vector<8x512xf32> to vector<8x128xf32>
    %499 = arith.negf %498 : vector<8x128xf32>
    %500 = math.exp %499 : vector<8x128xf32>
    %cst_81 = arith.constant 1.000000e+00 : f32
    %501 = vector.broadcast %cst_81 : f32 to vector<8x128xf32>
    %502 = arith.addf %501, %500 : vector<8x128xf32>
    %503 = arith.divf %501, %502 : vector<8x128xf32>
    %504 = vector.extract_strided_slice %497 {offsets = [0, 128], sizes = [8, 128], strides = [1, 1]} : vector<8x512xf32> to vector<8x128xf32>
    %505 = arith.negf %504 : vector<8x128xf32>
    %506 = math.exp %505 : vector<8x128xf32>
    %cst_82 = arith.constant 1.000000e+00 : f32
    %507 = vector.broadcast %cst_82 : f32 to vector<8x128xf32>
    %508 = arith.addf %507, %506 : vector<8x128xf32>
    %509 = arith.divf %507, %508 : vector<8x128xf32>
    %510 = vector.extract_strided_slice %497 {offsets = [0, 256], sizes = [8, 128], strides = [1, 1]} : vector<8x512xf32> to vector<8x128xf32>
    %511 = vector.extract_strided_slice %497 {offsets = [0, 384], sizes = [8, 128], strides = [1, 1]} : vector<8x512xf32> to vector<8x128xf32>
    %512 = arith.mulf %503, %511 : vector<8x128xf32>
    %513 = arith.addf %510, %512 : vector<8x128xf32>
    %514 = math.tanh %513 : vector<8x128xf32>
    %cst_83 = arith.constant 1.000000e+00 : f32
    %515 = vector.broadcast %cst_83 : f32 to vector<8x128xf32>
    %516 = arith.subf %515, %509 : vector<8x128xf32>
    %517 = arith.mulf %516, %514 : vector<8x128xf32>
    %518 = arith.mulf %509, %458 : vector<8x128xf32>
    %519 = arith.addf %517, %518 : vector<8x128xf32>
    %520 = vector.shape_cast %464 : vector<8x1xi1> to vector<8x1xi1>
    %521 = vector.broadcast %520 : vector<8x1xi1> to vector<8x128xi1>
    %522 = arith.select %521, %519, %458 : vector<8x128xi1>, vector<8x128xf32>
    %cst_84 = arith.constant 0.000000e+00 : f32
    %523 = vector.shape_cast %464 : vector<8x1xi1> to vector<8x1xi1>
    %524 = vector.broadcast %523 : vector<8x1xi1> to vector<8x128xi1>
    %525 = vector.broadcast %cst_84 : f32 to vector<8x128xf32>
    %526 = arith.select %524, %522, %525 : vector<8x128xi1>, vector<8x128xf32>
    %527 = tpu.concatenate %78, %142, %206, %270, %334, %398, %462, %526 in 1 : vector<8x128xf32>, vector<8x128xf32>, vector<8x128xf32>, vector<8x128xf32>, vector<8x128xf32>, vector<8x128xf32>, vector<8x128xf32>, vector<8x128xf32> -> vector<8x1024xf32>
    %c0_85 = arith.constant 0 : index
    %c0_86 = arith.constant 0 : index
    %528 = vector.load %arg7[%c0_85, %c0_86] : memref<8x1024xf32, #tpu.memory_space<vmem>>, vector<8x1024xf32>
    tpu.vector_store %arg7[%c0_85, %c0_86], %527 {strides = array<i32>} : memref<8x1024xf32, #tpu.memory_space<vmem>>, vector<8x1024xf32>,
    %c0_87 = arith.constant 0 : index
    %c0_88 = arith.constant 0 : index
    %c0_89 = arith.constant 0 : index
    %529 = vector.load %arg8[%c0_87, %c0_88, %c0_89] : memref<2x8x128xf32, #tpu.memory_space<vmem>>, vector<1x8x128xf32>
    %530 = vector.shape_cast %529 : vector<1x8x128xf32> to vector<8x128xf32>
    %531 = vector.shape_cast %493 : vector<8x128xf32> to vector<1x8x128xf32>
    tpu.vector_store %arg8[%c0_87, %c0_88, %c0_89], %531 {strides = array<i32>} : memref<2x8x128xf32, #tpu.memory_space<vmem>>, vector<1x8x128xf32>,
    %c1 = arith.constant 1 : index
    %c0_90 = arith.constant 0 : index
    %c0_91 = arith.constant 0 : index
    %532 = vector.load %arg8[%c1, %c0_90, %c0_91] : memref<2x8x128xf32, #tpu.memory_space<vmem>>, vector<1x8x128xf32>
    %533 = vector.shape_cast %532 : vector<1x8x128xf32> to vector<8x128xf32>
    %534 = vector.shape_cast %522 : vector<8x128xf32> to vector<1x8x128xf32>
    tpu.vector_store %arg8[%c1, %c0_90, %c0_91], %534 {strides = array<i32>} : memref<2x8x128xf32, #tpu.memory_space<vmem>>, vector<1x8x128xf32>,
    return
  }
  func.func @transform_0(%arg0: i32) -> (i32, i32) {
    %c0_i32 = arith.constant 0 : i32
    %c0_i32_0 = arith.constant 0 : i32
    %c0_i32_1 = arith.constant 0 : i32
    return %c0_i32, %c0_i32_0 : i32, i32
  }
  func.func @transform_1(%arg0: i32) -> (i32, i32) {
    %c0_i32 = arith.constant 0 : i32
    %c0_i32_0 = arith.constant 0 : i32
    %c0_i32_1 = arith.constant 0 : i32
    return %c0_i32, %c0_i32_0 : i32, i32
  }
  func.func @transform_2(%arg0: i32) -> (i32, i32) {
    %c0_i32 = arith.constant 0 : i32
    %c0_i32_0 = arith.constant 0 : i32
    %c0_i32_1 = arith.constant 0 : i32
    return %c0_i32, %c0_i32_0 : i32, i32
  }
  func.func @transform_3(%arg0: i32) -> (i32, i32) {
    %c0_i32 = arith.constant 0 : i32
    %c0_i32_0 = arith.constant 0 : i32
    %c0_i32_1 = arith.constant 0 : i32
    return %c0_i32, %c0_i32_0 : i32, i32
  }
  func.func @transform_4(%arg0: i32) -> (i32, i32) {
    %c0_i32 = arith.constant 0 : i32
    %c0_i32_0 = arith.constant 0 : i32
    %c0_i32_1 = arith.constant 0 : i32
    return %c0_i32, %c0_i32_0 : i32, i32
  }
  func.func @transform_5(%arg0: i32) -> (i32, i32) {
    %c0_i32 = arith.constant 0 : i32
    %c0_i32_0 = arith.constant 0 : i32
    %c0_i32_1 = arith.constant 0 : i32
    return %c0_i32, %c0_i32_0 : i32, i32
  }
  func.func @transform_6(%arg0: i32) -> (i32, i32) {
    %c0_i32 = arith.constant 0 : i32
    %c0_i32_0 = arith.constant 0 : i32
    %c0_i32_1 = arith.constant 0 : i32
    return %c0_i32, %c0_i32_0 : i32, i32
  }
  func.func @transform_7(%arg0: i32) -> (i32, i32, i32) {
    %c0_i32 = arith.constant 0 : i32
    %c0_i32_0 = arith.constant 0 : i32
    %c0_i32_1 = arith.constant 0 : i32
    %c0_i32_2 = arith.constant 0 : i32
    return %c0_i32, %c0_i32_0, %c0_i32_1 : i32, i32, i32
  }
}

</mosaic_0001>

<bundles_post_ra>
// kernel: tpu_custom_call.1
= control target key start
LH: loop header
LB: loop body
LE: loop exit
PB: predicated region body
PF: predicated region fallthrough
CT: control target
= control target key end

     0   :  { %13 = vsyncpa [#allocation3], 0  ;;  %s6634_s0 = inlined_call_operand.vmem [shape: s32[64,1], index: 0, kind: input, shape index: {}]   ;;  %s6635_s1 = inlined_call_operand.vmem [shape: s32[8,1], index: 1, kind: input, shape index: {}]   ;;  %s6636_s2 = inlined_call_operand.vmem [shape: f32[16,512], index: 2, kind: input, shape index: {}]   ;;  %s6637_s3 = inlined_call_operand.hbm [shape: f32[128,512], index: 3, kind: input, shape index: {}]   ;;  %s6638_s4 = inlined_call_operand.hbm [shape: f32[256,512], index: 4, kind: input, shape index: {}]   ;;  %s6639_s5 = inlined_call_operand.vmem [shape: f32[1,512], index: 5, kind: input, shape index: {}]   ;;  %s6640_s6 = inlined_call_operand.hbm [shape: f32[8,1024], index: 6, kind: output, shape index: {0}]   ;;  %s6641_s7 = inlined_call_operand.hbm [shape: f32[2,8,128], index: 7, kind: output, shape index: {1}]  }
   0x1   :  { %14 = vsyncpa [#allocation6], 0 }
   0x2   :  { %15 = vsyncpa [#allocation4], 0 }
   0x3   :  { %16 = vsyncpa [#allocation9], 0  ;;  %s5215_s24 = smov [#allocation2]   ;;  %s5119_s28 = scalar_lea.hbm %s6637_s3, 8192 }
   0x4   :  { %s28_s25 = sshll.u32 %s5215_s24, 4  ;;  %p5120_p0 = scmp.ne.s32.totalorder %s6637_s3, %s5119_s28  ;;  %s29_s25 = int_to_ptr.vmem [resolvable:$true] %s28_s25 }
   0x5   :  { %p5123_p1 = scmp.lt.u32.totalorder %s5119_s28, %s6637_s3 }
   0x7   :  { %p5125_p2 = pnand %p5123_p1, %p5120_p0 }
   0x9   :  { %5128 = shalt.err (!%p5125_p2)
}
   0xa   :  { %s5129_s10 = scalar_lea.vmem %s29_s25, 8192  ;;  %p5134_p4 = scmp.lt.s32.totalorder %s29_s25, %s29_s25 }
   0xb   :  { %p5130_p3 = scmp.ne.s32.totalorder %s29_s25, %s5129_s10  ;;  %p5135_p5 = scmp.lt.s32.totalorder %s5129_s10, %s5129_s10 }
   0xd   :  { %p5136_p6 = por %p5135_p5, %p5134_p4 }
   0xf   :  { %p5137_p7 = pnand %p5136_p6, %p5130_p3 }
  0x11   :  { %5140 = shalt.err (!%p5137_p7)
}
  0x12   :  { %s5216_s11 = smov 512   ;;  %s5217_s12 = smov 32  }
  0x13   :  { %34 = dma.hbm_to_vmem [thread:$0]  %s6637_s3, 8192, %s29_s25, [#allocation3], %s5216_s11, %s5216_s11, %s5217_s12  }
  0x14   :  { %s5218_s15 = smov [#allocation5]   ;;  %s5141_s19 = scalar_lea.hbm %s6638_s4, 16384 }
  0x15   :  { %s40_s16 = sshll.u32 %s5218_s15, 4  ;;  %p5142_p8 = scmp.ne.s32.totalorder %s6638_s4, %s5141_s19  ;;  %s41_s16 = int_to_ptr.vmem [resolvable:$true] %s40_s16 }
  0x16   :  { %p5145_p9 = scmp.lt.u32.totalorder %s5141_s19, %s6638_s4 }
  0x18   :  { %p5147_p10 = pnand %p5145_p9, %p5142_p8 }
  0x1a   :  { %5150 = shalt.err (!%p5147_p10)
}
  0x1b   :  { %s5151_s24 = scalar_lea.vmem %s41_s16, 16384  ;;  %p5156_p12 = scmp.lt.s32.totalorder %s41_s16, %s41_s16 }
  0x1c   :  { %p5152_p11 = scmp.ne.s32.totalorder %s41_s16, %s5151_s24  ;;  %p5157_p13 = scmp.lt.s32.totalorder %s5151_s24, %s5151_s24 }
  0x1e   :  { %p5158_p0 = por %p5157_p13, %p5156_p12 }
  0x20   :  { %p5159_p1 = pnand %p5158_p0, %p5152_p11 }
  0x22   :  { %5162 = shalt.err (!%p5159_p1)
}
  0x23   :  { %46 = dma.hbm_to_vmem [thread:$0]  %s6638_s4, 16384, %s41_s16, [#allocation6], %s5216_s11, %s5216_s11, %s5217_s12  }
  0x24   :  { %5207 = dma.done.wait [#allocation3], 8192  }
  0x25   :  { %5208 = vsyncadd [#allocation3], 4294959104 }
  0x26   :  { %5209 = dma.done.wait [#allocation6], 16384  }
  0x27   :  { %5210 = vsyncadd [#allocation6], 4294950912  ;;  %v5219_v0 = vmov 0   ;;  %v6643_v1 = vmov 0.0   ;;  %v57_v2 = vld [vmem:[%s6634_s0 + $0x10] sm:$0xff]  ;;  %v55_v3 = vld [vmem:[%s6634_s0] sm:$0xff]  ;;  %v6642_v37 = vlaneseq }
  0x28   :  { %4958 = vset.pattern.permute.xlu1 %v5219_v0  ;;  %4957 = vset.pattern.permute.xlu0 %v5219_v0  ;;  %v58_v4 = vld [vmem:[%s6634_s0 + $0x18] sm:$0xff]  ;;  %v56_v5 = vld [vmem:[%s6634_s0 + $0x8] sm:$0xff]  ;;  %v113_v8 = vld [vmem:[%s6636_s2] sm:$0xff]  ;;  %vm121_vm8 = vcmask 130048   ;;  %s5222_s11 = smov [#allocation8]  }
  0x29   :  { %210 = vmatprep.mubr.f32.mxu0 %v6643_v1  ;;  %323 = vmatprep.mubr.f32.mxu1 %v6643_v1  ;;  %v114_v6 = vld [vmem:[%s6636_s2 + $0x8] sm:$0xff]  ;;  %v117_v9 = vld [vmem:[%s6636_s2 + $0x20] sm:$0xff]  ;;  %v116_v11 = vld [vmem:[%s6636_s2 + $0x18] sm:$0xff]  ;;  %v5359_v39 = vand.u32 127, %v6642_v37  ;;  %s3292_s12 = sshll.u32 %s5222_s11, 4  ;;  %s6601_s12 = int_to_ptr.vmem [resolvable:$true] %s3292_s12 }
  0x2a   :  { %72 = vperm.xlu1 %4958, %v57_v2   ;;  %66 = vperm.xlu0 %4957, %v55_v3   ;;  %v118_v7 = vld [vmem:[%s6636_s2 + $0x28] sm:$0xff]  ;;  %v120_v12 = vld [vmem:[%s6636_s2 + $0x38] sm:$0xff]  ;;  %v59_v13 = vld [vmem:[%s6634_s0 + $0x20] sm:$0xff]  ;;  %v3373_v17 = vpack.c.bf16 %v117_v9, %v113_v8 }
  0x2b   :  { %v60_v10 = vld [vmem:[%s6634_s0 + $0x28] sm:$0xff]  ;;  %v115_v14 = vld [vmem:[%s6636_s2 + $0x10] sm:$0xff]  ;;  %v3371_v16 = vpack.c.bf16 %v118_v7, %v114_v6  ;;  %v3375_v18 = vpack.c.bf16 %v120_v12, %v116_v11  ;;  %v565_v22 = vld [vmem:[%s6635_s1] sm:$0xff] }
  0x2c   :  { %v119_v15 = vld [vmem:[%s6636_s2 + $0x30] sm:$0xff]  ;;  %v373_v20 = vld [vmem:[#allocation2 + $0x8] sm:$0xff]  ;;  %v375_v24 = vld [vmem:[#allocation2 + $0x18] sm:$0xff]  ;;  %vm921_vm0 = vcmp.gt.s32.totalorder %v565_v22, 1  ;;  %vm566_vm1 = vcmp.gt.s32.totalorder %v565_v22, 0  ;;  %vm1591_vm2 = vcmp.gt.s32.totalorder %v565_v22, 3 }
  0x2d   :  { %v3377_v19 = vpack.c.bf16 %v119_v15, %v115_v14  ;;  %v377_v21 = vld [vmem:[#allocation2 + $0x28] sm:$0xff]  ;;  %v379_v25 = vld [vmem:[#allocation2 + $0x38] sm:$0xff]  ;;  %v61_v28 = vld [vmem:[%s6634_s0 + $0x30] sm:$0xff]  ;;  %3372 = vmatprep.subr.bf16.mxu0 %v3371_v16  ;;  %3376 = vmatprep.subr.bf16.mxu1 %v3375_v18  ;;  %v1087_v29 = vsel %vm921_vm0, 1, %v5219_v0  ;;  %v732_v30 = vsel %vm566_vm1, 1, %v5219_v0  ;;  %vm1256_vm3 = vcmp.gt.s32.totalorder %v565_v22, 2 }
  0x2e   :  { %75 = vperm.xlu1 %4958, %v58_v4   ;;  %69 = vperm.xlu0 %4957, %v56_v5   ;;  %v5338_v23 = vpack.c.bf16 %v377_v21, %v373_v20  ;;  %v5340_v26 = vpack.c.bf16 %v379_v25, %v375_v24  ;;  %v62_v27 = vld [vmem:[%s6634_s0 + $0x38] sm:$0xff]  ;;  %v1757_v31 = vsel %vm1591_vm2, 1, %v5219_v0  ;;  %v1422_v32 = vsel %vm1256_vm3, 1, %v5219_v0  ;;  %v372_v38 = vld [vmem:[#allocation2] sm:$0xff]  ;;  %v374_v41 = vld [vmem:[#allocation2 + $0x10] sm:$0xff] }
  0x2f   :  { %3374 = vmatpush1.bf16.msra.mxu0 %v3373_v17  ;;  %3378 = vmatpush1.bf16.msra.mxu1 %v3377_v19  ;;  %vm2261_vm4 = vcmp.gt.s32.totalorder %v565_v22, 5  ;;  %vm1926_vm5 = vcmp.gt.s32.totalorder %v565_v22, 4  ;;  %vm2931_vm6 = vcmp.gt.s32.totalorder %v565_v22, 7  ;;  %vm2596_vm7 = vcmp.gt.s32.totalorder %v565_v22, 6  ;;  %v376_v40 = vld [vmem:[#allocation2 + $0x20] sm:$0xff]  ;;  %v378_v42 = vld [vmem:[#allocation2 + $0x30] sm:$0xff] }
  0x30   :  { %6763 = vst [vmem:[#allocation14_spill] sm:$0xff] %v5338_v23  ;;  %6764 = vst [vmem:[#allocation15_spill] sm:$0xff] %v5340_v26  ;;  %3380 = vmatprep.subr.bf16.mxu0 %v5338_v23  ;;  %3412 = vmatprep.subr.bf16.mxu1 %v5340_v26  ;;  %v2427_v33 = vsel %vm2261_vm4, 1, %v5219_v0  ;;  %v2092_v34 = vsel %vm1926_vm5, 1, %v5219_v0  ;;  %v3097_v35 = vsel %vm2931_vm6, 1, %v5219_v0  ;;  %v2762_v36 = vsel %vm2596_vm7, 1, %v5219_v0 }
  0x31   :  { %v381_v43 = vld [vmem:[#allocation2 + $0x48] sm:$0xff]  ;;  %v383_v45 = vld [vmem:[#allocation2 + $0x58] sm:$0xff]  ;;  %v5361_v48 = vpack.c.bf16 %v376_v40, %v372_v38  ;;  %v5363_v49 = vpack.c.bf16 %v378_v42, %v374_v41  ;;  %v380_v50 = vld [vmem:[#allocation2 + $0x40] sm:$0xff] }
  0x32   :  { %81 = vperm.xlu1 %4958, %v60_v10   ;;  %78 = vperm.xlu0 %4957, %v59_v13   ;;  %v385_v44 = vld [vmem:[#allocation2 + $0x68] sm:$0xff]  ;;  %v387_v46 = vld [vmem:[#allocation2 + $0x78] sm:$0xff]  ;;  %v384_v51 = vld [vmem:[#allocation2 + $0x60] sm:$0xff] }
  0x33   :  { %v382_v52 = vld [vmem:[#allocation2 + $0x50] sm:$0xff]  ;;  %v5367_v55 = vpack.c.bf16 %v385_v44, %v381_v43  ;;  %v5369_v56 = vpack.c.bf16 %v387_v46, %v383_v45  ;;  %v389_v57 = vld [vmem:[#allocation2 + $0x88] sm:$0xff]  ;;  %v391_v59 = vld [vmem:[#allocation2 + $0x98] sm:$0xff]  ;;  %v5375_v63 = vpack.c.bf16 %v384_v51, %v380_v50 }
  0x34   :  { %v386_v53 = vld [vmem:[#allocation2 + $0x70] sm:$0xff]  ;;  %v393_v58 = vld [vmem:[#allocation2 + $0xa8] sm:$0xff]  ;;  %v395_v60 = vld [vmem:[#allocation2 + $0xb8] sm:$0xff] }
  0x35   :  { %v5377_v0 = vpack.c.bf16 %v386_v53, %v382_v52  ;;  %v388_v2 = vld [vmem:[#allocation2 + $0x80] sm:$0xff]  ;;  %v390_v4 = vld [vmem:[#allocation2 + $0x90] sm:$0xff]  ;;  %v5386_v7 = vpack.c.bf16 %v393_v58, %v389_v57  ;;  %v5388_v8 = vpack.c.bf16 %v395_v60, %v391_v59  ;;  %v397_v9 = vld [vmem:[#allocation2 + $0xc8] sm:$0xff] }
  0x36   :  { %87 = vperm.xlu1 %4958, %v62_v27   ;;  %84 = vperm.xlu0 %4957, %v61_v28   ;;  %v392_v3 = vld [vmem:[#allocation2 + $0xa0] sm:$0xff]  ;;  %v394_v5 = vld [vmem:[#allocation2 + $0xb0] sm:$0xff]  ;;  %v401_v10 = vld [vmem:[#allocation2 + $0xe8] sm:$0xff] }
  0x37   :  { %v399_v11 = vld [vmem:[#allocation2 + $0xd8] sm:$0xff]  ;;  %v5397_v14 = vpack.c.bf16 %v392_v3, %v388_v2  ;;  %v5399_v15 = vpack.c.bf16 %v394_v5, %v390_v4  ;;  %v396_v16 = vld [vmem:[#allocation2 + $0xc0] sm:$0xff]  ;;  %v398_v18 = vld [vmem:[#allocation2 + $0xd0] sm:$0xff]  ;;  %v5405_v21 = vpack.c.bf16 %v401_v10, %v397_v9 }
  0x38   :  { %v403_v12 = vld [vmem:[#allocation2 + $0xf8] sm:$0xff]  ;;  %v400_v17 = vld [vmem:[#allocation2 + $0xe0] sm:$0xff]  ;;  %v402_v19 = vld [vmem:[#allocation2 + $0xf0] sm:$0xff] }
  0x39   :  { %v5407_v22 = vpack.c.bf16 %v403_v12, %v399_v11  ;;  %v405_v24 = vld [vmem:[#allocation2 + $0x108] sm:$0xff]  ;;  %v407_v27 = vld [vmem:[#allocation2 + $0x118] sm:$0xff]  ;;  %v412_v50 = vld [vmem:[#allocation2 + $0x140] sm:$0xff] }
  0x3a   :  { %1089 = vperm.xlu1 %4958, %v1087_v29   ;;  %734 = vperm.xlu0 %4957, %v732_v30   ;;  %v409_v25 = vld [vmem:[#allocation2 + $0x128] sm:$0xff]  ;;  %v411_v28 = vld [vmem:[#allocation2 + $0x138] sm:$0xff]  ;;  %v5414_v30 = vpack.c.bf16 %v400_v17, %v396_v16  ;;  %v416_v51 = vld [vmem:[#allocation2 + $0x160] sm:$0xff] }
  0x3b   :  { %v5425_v38 = vpack.c.bf16 %v409_v25, %v405_v24  ;;  %v5427_v40 = vpack.c.bf16 %v411_v28, %v407_v27  ;;  %v413_v41 = vld [vmem:[#allocation2 + $0x148] sm:$0xff]  ;;  %v415_v43 = vld [vmem:[#allocation2 + $0x158] sm:$0xff]  ;;  %v414_v52 = vld [vmem:[#allocation2 + $0x150] sm:$0xff]  ;;  %v5454_v3 = vpack.c.bf16 %v416_v51, %v412_v50 }
  0x3c   :  { %v417_v42 = vld [vmem:[#allocation2 + $0x168] sm:$0xff]  ;;  %v419_v44 = vld [vmem:[#allocation2 + $0x178] sm:$0xff]  ;;  %v418_v53 = vld [vmem:[#allocation2 + $0x170] sm:$0xff] }
  0x3d   :  { %v5445_v57 = vpack.c.bf16 %v417_v42, %v413_v41  ;;  %v5447_v58 = vpack.c.bf16 %v419_v44, %v415_v43  ;;  %v421_v59 = vld [vmem:[#allocation2 + $0x188] sm:$0xff]  ;;  %v5456_v4 = vpack.c.bf16 %v418_v53, %v414_v52  ;;  %v420_v5 = vld [vmem:[#allocation2 + $0x180] sm:$0xff]  ;;  %v422_v9 = vld [vmem:[#allocation2 + $0x190] sm:$0xff] }
  0x3e   :  { %1759 = vperm.xlu1 %4958, %v1757_v31   ;;  %1424 = vperm.xlu0 %4957, %v1422_v32   ;;  %v5416_v31 = vpack.c.bf16 %v402_v19, %v398_v18  ;;  %v404_v32 = vld [vmem:[#allocation2 + $0x100] sm:$0xff]  ;;  %v425_v60 = vld [vmem:[#allocation2 + $0x1a8] sm:$0xff]  ;;  %v426_v10 = vld [vmem:[#allocation2 + $0x1b0] sm:$0xff] }
  0x3f   :  { %v5465_v12 = vpack.c.bf16 %v425_v60, %v421_v59  ;;  %v429_v16 = vld [vmem:[#allocation2 + $0x1c8] sm:$0xff]  ;;  %v431_v18 = vld [vmem:[#allocation2 + $0x1d8] sm:$0xff]  ;;  %v5476_v25 = vpack.c.bf16 %v426_v10, %v422_v9  ;;  %v428_v27 = vld [vmem:[#allocation2 + $0x1c0] sm:$0xff] }
  0x40   :  { %v433_v17 = vld [vmem:[#allocation2 + $0x1e8] sm:$0xff]  ;;  %v435_v19 = vld [vmem:[#allocation2 + $0x1f8] sm:$0xff]  ;;  %v432_v28 = vld [vmem:[#allocation2 + $0x1e0] sm:$0xff] }
  0x41   :  { %v441_v41 = vld [vmem:[#allocation5 + $0x28] sm:$0xff]  ;;  %v439_v42 = vld [vmem:[#allocation5 + $0x18] sm:$0xff]  ;;  %v5494_v44 = vpack.c.bf16 %v432_v28, %v428_v27  ;;  %v436_v50 = vld [vmem:[#allocation5] sm:$0xff] }
  0x42   :  { %2429 = vperm.xlu1 %4958, %v2427_v33   ;;  %2094 = vperm.xlu0 %4957, %v2092_v34   ;;  %v408_v33 = vld [vmem:[#allocation2 + $0x120] sm:$0xff]  ;;  %v406_v34 = vld [vmem:[#allocation2 + $0x110] sm:$0xff]  ;;  %v443_v43 = vld [vmem:[#allocation5 + $0x38] sm:$0xff] }
  0x43   :  { %v5434_v46 = vpack.c.bf16 %v408_v33, %v404_v32  ;;  %v434_v32 = vld [vmem:[#allocation2 + $0x1f0] sm:$0xff]  ;;  %v440_v51 = vld [vmem:[#allocation5 + $0x20] sm:$0xff]  ;;  %v455_v27 = vld [vmem:[#allocation5 + $0x98] sm:$0xff] }
  0x44   :  { %v438_v52 = vld [vmem:[#allocation5 + $0x10] sm:$0xff]  ;;  %v444_v9 = vld [vmem:[#allocation5 + $0x40] sm:$0xff]  ;;  %v459_v28 = vld [vmem:[#allocation5 + $0xb8] sm:$0xff] }
  0x45   :  { %v442_v53 = vld [vmem:[#allocation5 + $0x30] sm:$0xff]  ;;  %v448_v10 = vld [vmem:[#allocation5 + $0x60] sm:$0xff] }
  0x46   :  { %3099 = vperm.xlu1 %4958, %v3097_v35   ;;  %2764 = vperm.xlu0 %4957, %v2762_v36   ;;  %v410_v35 = vld [vmem:[#allocation2 + $0x130] sm:$0xff]  ;;  %v480_v37 = vld [vmem:[#allocation5 + $0x160] sm:$0xff] }
  0xa9   :  { %v67_v47 = vpop.permute.xlu0 %66  ;;  %v73_v61 = vpop.permute.xlu1 %72 }
  0xaa   :  { %vm89_vm9 = vcmp.eq.s32.totalorder %v5359_v39, %v67_v47  ;;  %vm91_vm10 = vcmp.eq.s32.totalorder %v5359_v39, %v73_v61  ;;  %v5436_v47 = vpack.c.bf16 %v410_v35, %v406_v34  ;;  %v423_v61 = vld [vmem:[#allocation2 + $0x198] sm:$0xff]  ;;  %v5485_v34 = vpack.c.bf16 %v433_v17, %v429_v16  ;;  %v446_v17 = vld [vmem:[#allocation5 + $0x50] sm:$0xff] }
  0xab   :  { %v3309_v54 = vsel %vm89_vm9, 1.0, %v6643_v1  ;;  %v3311_v13 = vsel %vm91_vm10, 1.0, %v6643_v1  ;;  %v5487_v35 = vpack.c.bf16 %v435_v19, %v431_v18  ;;  %v450_v18 = vld [vmem:[#allocation5 + $0x70] sm:$0xff]  ;;  %v453_v19 = vld [vmem:[#allocation5 + $0x88] sm:$0xff] }
  0xac   :  { %3317 = vmatmul.mubr.msk.f32.vlgmr.msra.gmra.mrb[0].mxu0 %vm121_vm8, %v3309_v54  ;;  %3325 = vmatmul.mubr.msk.f32.vlgmr.msra.gmra.mrb[0].mxu1 %vm121_vm8, %v3309_v54 }
  0xad   :  { %3382 = vmatpush1.bf16.msra.mxu0 %v5361_v48  ;;  %3414 = vmatpush1.bf16.msra.mxu1 %v5363_v49  ;;  %v70_v62 = vpop.permute.xlu0 %69  ;;  %v76_v20 = vpop.permute.xlu1 %75 }
  0xae   :  { %vm90_vm11 = vcmp.eq.s32.totalorder %v5359_v39, %v70_v62  ;;  %216 = vmatprep.mubr.f32.mxu0 %v6643_v1  ;;  %329 = vmatprep.mubr.f32.mxu1 %v6643_v1  ;;  %vm92_vm12 = vcmp.eq.s32.totalorder %v5359_v39, %v76_v20  ;;  %v427_v62 = vld [vmem:[#allocation2 + $0x1b8] sm:$0xff] }
  0xaf   :  { %v3310_v6 = vsel %vm90_vm11, 1.0, %v6643_v1  ;;  %3384 = vmatprep.subr.bf16.mxu0 %v5367_v55  ;;  %3416 = vmatprep.subr.bf16.mxu1 %v5369_v56  ;;  %v3312_v36 = vsel %vm92_vm12, 1.0, %v6643_v1 }
  0xb0   :  { %3318 = vmatmul.mubr.msk.f32.gmra.mrb[2].mxu0 %vm121_vm8, %v3310_v6  ;;  %3326 = vmatmul.mubr.msk.f32.gmra.mrb[2].mxu1 %vm121_vm8, %v3310_v6  ;;  %v424_v6 = vld [vmem:[#allocation2 + $0x1a0] sm:$0xff] }
  0xb1   :  { %3386 = vmatpush1.bf16.msra.mxu0 %v5375_v63  ;;  %3418 = vmatpush1.bf16.msra.mxu1 %v5377_v0  ;;  %v79_v29 = vpop.permute.xlu0 %78  ;;  %v82_v45 = vpop.permute.xlu1 %81  ;;  %v5474_v24 = vpack.c.bf16 %v424_v6, %v420_v5  ;;  %v451_v5 = vld [vmem:[#allocation5 + $0x78] sm:$0xff]  ;;  %v5515_v6 = vpack.c.bf16 %v442_v53, %v438_v52  ;;  %v465_v52 = vld [vmem:[#allocation5 + $0xe8] sm:$0xff] }
  0xb2   :  { %222 = vmatprep.mubr.f32.mxu0 %v6643_v1  ;;  %335 = vmatprep.mubr.f32.mxu1 %v6643_v1  ;;  %vm93_vm13 = vcmp.eq.s32.totalorder %v5359_v39, %v79_v29  ;;  %vm94_vm14 = vcmp.eq.s32.totalorder %v5359_v39, %v82_v45  ;;  %v430_v29 = vld [vmem:[#allocation2 + $0x1d0] sm:$0xff]  ;;  %v463_v53 = vld [vmem:[#allocation5 + $0xd8] sm:$0xff] }
  0xb3   :  { %3388 = vmatprep.subr.bf16.mxu0 %v5386_v7  ;;  %3420 = vmatprep.subr.bf16.mxu1 %v5388_v8  ;;  %v3313_v54 = vsel %vm93_vm13, 1.0, %v6643_v1  ;;  %v3314_v11 = vsel %vm94_vm14, 1.0, %v6643_v1  ;;  %v5496_v45 = vpack.c.bf16 %v434_v32, %v430_v29  ;;  %v5529_v29 = vpack.c.bf16 %v448_v10, %v444_v9 }
  0xb4   :  { %3319 = vmatmul.mubr.msk.f32.gmra.mrb[4].mxu0 %vm121_vm8, %v3311_v13  ;;  %3327 = vmatmul.mubr.msk.f32.gmra.mrb[4].mxu1 %vm121_vm8, %v3311_v13  ;;  %v5467_v13 = vpack.c.bf16 %v427_v62, %v423_v61  ;;  %v5507_v61 = vpack.c.bf16 %v443_v43, %v439_v42  ;;  %v449_v62 = vld [vmem:[#allocation5 + $0x68] sm:$0xff]  ;;  %v5531_v32 = vpack.c.bf16 %v450_v18, %v446_v17  ;;  %v454_v43 = vld [vmem:[#allocation5 + $0x90] sm:$0xff] }
  0xb5   :  { %3390 = vmatpush1.bf16.msra.mxu0 %v5397_v14  ;;  %3422 = vmatpush1.bf16.msra.mxu1 %v5399_v15  ;;  %v85_v2 = vpop.permute.xlu0 %84  ;;  %v88_v20 = vpop.permute.xlu1 %87  ;;  %v5537_v42 = vpack.c.bf16 %v459_v28, %v455_v27  ;;  %v462_v17 = vld [vmem:[#allocation5 + $0xd0] sm:$0xff]  ;;  %v471_v27 = vld [vmem:[#allocation5 + $0x118] sm:$0xff] }
  0xb6   :  { %228 = vmatprep.mubr.f32.mxu0 %v6643_v1  ;;  %341 = vmatprep.mubr.f32.mxu1 %v6643_v1  ;;  %vm95_vm15 = vcmp.eq.s32.totalorder %v5359_v39, %v85_v2  ;;  %vm96_vm0 = vcmp.eq.s32.totalorder %v5359_v39, %v88_v20  ;;  %v447_v2 = vld [vmem:[#allocation5 + $0x58] sm:$0xff]  ;;  %v5513_v39 = vpack.c.bf16 %v440_v51, %v436_v50  ;;  %v457_v20 = vld [vmem:[#allocation5 + $0xa8] sm:$0xff]  ;;  %v458_v50 = vld [vmem:[#allocation5 + $0xb0] sm:$0xff] }
  0xb7   :  { %3392 = vmatprep.subr.bf16.mxu0 %v5405_v21  ;;  %3424 = vmatprep.subr.bf16.mxu1 %v5407_v22  ;;  %v3315_v33 = vsel %vm95_vm15, 1.0, %v6643_v1  ;;  %v3316_v59 = vsel %vm96_vm0, 1.0, %v6643_v1  ;;  %v5521_v16 = vpack.c.bf16 %v451_v5, %v447_v2  ;;  %v461_v51 = vld [vmem:[#allocation5 + $0xc8] sm:$0xff]  ;;  %v460_v2 = vld [vmem:[#allocation5 + $0xc0] sm:$0xff]  ;;  %v466_v18 = vld [vmem:[#allocation5 + $0xf0] sm:$0xff] }
  0xb8   :  { %3320 = vmatmul.mubr.msk.f32.gmra.mrb[6].mxu0 %vm121_vm8, %v3312_v36  ;;  %3328 = vmatmul.mubr.msk.f32.gmra.mrb[6].mxu1 %vm121_vm8, %v3312_v36  ;;  %v437_v36 = vld [vmem:[#allocation5 + $0x8] sm:$0xff]  ;;  %v464_v5 = vld [vmem:[#allocation5 + $0xe0] sm:$0xff]  ;;  %v5549_v9 = vpack.c.bf16 %v465_v52, %v461_v51  ;;  %v475_v28 = vld [vmem:[#allocation5 + $0x138] sm:$0xff] }
  0xb9   :  { %3394 = vmatpush1.bf16.msra.mxu0 %v5414_v30  ;;  %3426 = vmatpush1.bf16.msra.mxu1 %v5416_v31  ;;  %v5505_v60 = vpack.c.bf16 %v441_v41, %v437_v36  ;;  %v456_v36 = vld [vmem:[#allocation5 + $0xa0] sm:$0xff]  ;;  %v5535_v41 = vpack.c.bf16 %v457_v20, %v453_v19  ;;  %v469_v19 = vld [vmem:[#allocation5 + $0x108] sm:$0xff]  ;;  %v5563_v51 = vpack.c.bf16 %v475_v28, %v471_v27  ;;  %v483_v27 = vld [vmem:[#allocation5 + $0x178] sm:$0xff] }
  0xba   :  { %234 = vmatprep.mubr.f32.mxu0 %v6643_v1  ;;  %347 = vmatprep.mubr.f32.mxu1 %v6643_v1  ;;  %6767 = vst [vmem:[#allocation18_spill] sm:$0xff] %v5549_v9  ;;  %v473_v20 = vld [vmem:[#allocation5 + $0x128] sm:$0xff]  ;;  %v472_v52 = vld [vmem:[#allocation5 + $0x120] sm:$0xff] }
  0xbb   :  { %3396 = vmatprep.subr.bf16.mxu0 %v5425_v38  ;;  %3428 = vmatprep.subr.bf16.mxu1 %v5427_v40  ;;  %6772 = vst [vmem:[#allocation23_spill] sm:$0xff] %v5563_v51  ;;  %v476_v28 = vld [vmem:[#allocation5 + $0x140] sm:$0xff] }
  0xbc   :  { %3321 = vmatmul.mubr.msk.f32.gmra.mrb[8].mxu0 %vm121_vm8, %v3313_v54  ;;  %3329 = vmatmul.mubr.msk.f32.gmra.mrb[8].mxu1 %vm121_vm8, %v3313_v54  ;;  %v445_v54 = vld [vmem:[#allocation5 + $0x48] sm:$0xff] }
  0xbd   :  { %3398 = vmatpush1.bf16.msra.mxu0 %v5434_v46  ;;  %3430 = vmatpush1.bf16.msra.mxu1 %v5436_v47 }
  0xbe   :  { %240 = vmatprep.mubr.f32.mxu0 %v6643_v1  ;;  %353 = vmatprep.mubr.f32.mxu1 %v6643_v1 }
  0xbf   :  { %3400 = vmatprep.subr.bf16.mxu0 %v5445_v57  ;;  %3432 = vmatprep.subr.bf16.mxu1 %v5447_v58 }
  0xc0   :  { %3322 = vmatmul.mubr.msk.f32.gmra.mrb[10].mxu0 %vm121_vm8, %v3314_v11  ;;  %3330 = vmatmul.mubr.msk.f32.gmra.mrb[10].mxu1 %vm121_vm8, %v3314_v11  ;;  %v5519_v11 = vpack.c.bf16 %v449_v62, %v445_v54  ;;  %v467_v54 = vld [vmem:[#allocation5 + $0xf8] sm:$0xff]  ;;  %v5545_v62 = vpack.c.bf16 %v458_v50, %v454_v43  ;;  %v468_v43 = vld [vmem:[#allocation5 + $0x100] sm:$0xff]  ;;  %v5561_v50 = vpack.c.bf16 %v473_v20, %v469_v19 }
  0xc1   :  { %3402 = vmatpush1.bf16.msra.mxu0 %v5454_v3  ;;  %3434 = vmatpush1.bf16.msra.mxu1 %v5456_v4  ;;  %v5551_v10 = vpack.c.bf16 %v467_v54, %v463_v53  ;;  %v470_v53 = vld [vmem:[#allocation5 + $0x110] sm:$0xff]  ;;  %v479_v19 = vld [vmem:[#allocation5 + $0x158] sm:$0xff] }
  0xc2   :  { %246 = vmatprep.mubr.f32.mxu0 %v6643_v1  ;;  %359 = vmatprep.mubr.f32.mxu1 %v6643_v1  ;;  %6766 = vst [vmem:[#allocation17_spill] sm:$0xff] %v5545_v62  ;;  %6771 = vst [vmem:[#allocation22_spill] sm:$0xff] %v5561_v50  ;;  %v474_v54 = vld [vmem:[#allocation5 + $0x130] sm:$0xff] }
  0xc3   :  { %3404 = vmatprep.subr.bf16.mxu0 %v5465_v12  ;;  %3436 = vmatprep.subr.bf16.mxu1 %v5467_v13  ;;  %6768 = vst [vmem:[#allocation19_spill] sm:$0xff] %v5551_v10 }
  0xc4   :  { %3323 = vmatmul.mubr.msk.f32.gmra.mrb[12].mxu0 %vm121_vm8, %v3315_v33  ;;  %3331 = vmatmul.mubr.msk.f32.gmra.mrb[12].mxu1 %vm121_vm8, %v3315_v33  ;;  %v452_v33 = vld [vmem:[#allocation5 + $0x80] sm:$0xff] }
  0xc5   :  { %3406 = vmatpush1.bf16.msra.mxu0 %v5474_v24  ;;  %3438 = vmatpush1.bf16.msra.mxu1 %v5476_v25 }
  0xc6   :  { %252 = vmatprep.mubr.f32.mxu0 %v6643_v1  ;;  %365 = vmatprep.mubr.f32.mxu1 %v6643_v1 }
  0xc7   :  { %3408 = vmatprep.subr.bf16.mxu0 %v5485_v34  ;;  %3440 = vmatprep.subr.bf16.mxu1 %v5487_v35 }
  0xc8   :  { %3324 = vmatmul.mubr.msk.f32.gmra.mrb[14].mxu0 %vm121_vm8, %v3316_v59  ;;  %3332 = vmatmul.mubr.msk.f32.gmra.mrb[14].mxu1 %vm121_vm8, %v3316_v59  ;;  %v5543_v59 = vpack.c.bf16 %v456_v36, %v452_v33  ;;  %v5555_v33 = vpack.c.bf16 %v464_v5, %v460_v2  ;;  %v5557_v36 = vpack.c.bf16 %v466_v18, %v462_v17  ;;  %v477_v17 = vld [vmem:[#allocation5 + $0x148] sm:$0xff] }
  0xc9   :  { %3410 = vmatpush1.bf16.msra.mxu0 %v5494_v44  ;;  %3442 = vmatpush1.bf16.msra.mxu1 %v5496_v45  ;;  %v5567_v2 = vpack.c.bf16 %v472_v52, %v468_v43  ;;  %v5569_v5 = vpack.c.bf16 %v474_v54, %v470_v53  ;;  %v481_v18 = vld [vmem:[#allocation5 + $0x168] sm:$0xff]  ;;  %v5577_v43 = vpack.c.bf16 %v483_v27, %v479_v19  ;;  %v478_v53 = vld [vmem:[#allocation5 + $0x150] sm:$0xff]  ;;  %v491_v19 = vld [vmem:[#allocation5 + $0x1b8] sm:$0xff] }
  0xca   :  { %631 = vmatprep.mubr.f32.mxu0 %v6643_v1  ;;  %702 = vmatprep.mubr.f32.mxu1 %v6643_v1  ;;  %6765 = vst [vmem:[#allocation16_spill] sm:$0xff] %v5543_v59  ;;  %6769 = vst [vmem:[#allocation20_spill] sm:$0xff] %v5555_v33  ;;  %v5575_v20 = vpack.c.bf16 %v481_v18, %v477_v17  ;;  %v5579_v52 = vpack.c.bf16 %v480_v37, %v476_v28  ;;  %v482_v54 = vld [vmem:[#allocation5 + $0x170] sm:$0xff]  ;;  %v489_v17 = vld [vmem:[#allocation5 + $0x1a8] sm:$0xff] }
  0xcb   :  { %3444 = vmatprep.subr.bf16.mxu0 %v5505_v60  ;;  %3508 = vmatprep.subr.bf16.mxu1 %v5507_v61  ;;  %6770 = vst [vmem:[#allocation21_spill] sm:$0xff] %v5557_v36  ;;  %6773 = vst [vmem:[#allocation24_spill] sm:$0xff] %v5567_v2  ;;  %v487_v18 = vld [vmem:[#allocation5 + $0x198] sm:$0xff]  ;;  %v484_v37 = vld [vmem:[#allocation5 + $0x180] sm:$0xff] }
  0xcc   :  { %632 = vmatmul.mubr.f32.vlgmr.msra.gmra.mrb[0].mxu0 %v6643_v1  ;;  %703 = vmatmul.mubr.f32.vlgmr.msra.gmra.mrb[0].mxu1 %v6643_v1  ;;  %6774 = vst [vmem:[#allocation25_spill] sm:$0xff] %v5569_v5  ;;  %6775 = vst [vmem:[#allocation26_spill] sm:$0xff] %v5575_v20  ;;  %v488_v27 = vld [vmem:[#allocation5 + $0x1a0] sm:$0xff]  ;;  %v5589_v28 = vpack.c.bf16 %v491_v19, %v487_v18  ;;  %v499_v18 = vld [vmem:[#allocation5 + $0x1f8] sm:$0xff] }
  0xcd   :  { %3446 = vmatpush1.bf16.msra.mxu0 %v5513_v39  ;;  %3510 = vmatpush1.bf16.msra.mxu1 %v5515_v6  ;;  %6776 = vst [vmem:[#allocation27_spill] sm:$0xff] %v5577_v43  ;;  %6777 = vst [vmem:[#allocation28_spill] sm:$0xff] %v5579_v52  ;;  %v492_v19 = vld [vmem:[#allocation5 + $0x1c0] sm:$0xff] }
  0xce   :  { %3448 = vmatprep.subr.bf16.mxu0 %v5519_v11  ;;  %3512 = vmatprep.subr.bf16.mxu1 %v5521_v16  ;;  %6780 = vst [vmem:[#allocation31_spill] sm:$0xff] %v5589_v28 }
  0xcf   :  { %823 = vmatprep.mubr.f32.mxu0 %v6643_v1  ;;  %894 = vmatprep.mubr.f32.mxu1 %v6643_v1  ;;  %v5582_v1 = vpack.c.bf16 %v482_v54, %v478_v53  ;;  %v486_v53 = vld [vmem:[#allocation5 + $0x190] sm:$0xff] }
  0xd0   :  { %v490_v54 = vld [vmem:[#allocation5 + $0x1b0] sm:$0xff] }
  0xd1   :  { %3450 = vmatpush1.bf16.msra.mxu0 %v5529_v29  ;;  %3514 = vmatpush1.bf16.msra.mxu1 %v5531_v32  ;;  %6778 = vst [vmem:[#allocation29_spill] sm:$0xff] %v5582_v1 }
  0xd2   :  { %3452 = vmatprep.subr.bf16.mxu0 %v5535_v41  ;;  %3516 = vmatprep.subr.bf16.mxu1 %v5537_v42 }
  0xd5   :  { %3454 = vmatpush1.bf16.msra.mxu0 %v5543_v59  ;;  %3518 = vmatpush1.bf16.msra.mxu1 %v5545_v62 }
  0xd6   :  { %3456 = vmatprep.subr.bf16.mxu0 %v5549_v9  ;;  %3520 = vmatprep.subr.bf16.mxu1 %v5551_v10 }
  0xd9   :  { %3458 = vmatpush1.bf16.msra.mxu0 %v5555_v33  ;;  %3522 = vmatpush1.bf16.msra.mxu1 %v5557_v36  ;;  %v555_v36 = vld [vmem:[#allocation5 + $0x3b8] sm:$0xff] }
  0xda   :  { %3460 = vmatprep.subr.bf16.mxu0 %v5561_v50  ;;  %3524 = vmatprep.subr.bf16.mxu1 %v5563_v51  ;;  %v5591_v51 = vpack.c.bf16 %v488_v27, %v484_v37  ;;  %v496_v37 = vld [vmem:[#allocation5 + $0x1e0] sm:$0xff]  ;;  %v551_v50 = vld [vmem:[#allocation5 + $0x398] sm:$0xff] }
  0xdc   :  { %6781 = vst [vmem:[#allocation32_spill] sm:$0xff] %v5591_v51 }
  0xdd   :  { %3462 = vmatpush1.bf16.msra.mxu0 %v5567_v2  ;;  %3526 = vmatpush1.bf16.msra.mxu1 %v5569_v5  ;;  %v485_v5 = vld [vmem:[#allocation5 + $0x188] sm:$0xff] }
  0xde   :  { %3464 = vmatprep.subr.bf16.mxu0 %v5575_v20  ;;  %3528 = vmatprep.subr.bf16.mxu1 %v5577_v43  ;;  %v5587_v2 = vpack.c.bf16 %v489_v17, %v485_v5  ;;  %v5594_v43 = vpack.c.bf16 %v490_v54, %v486_v53  ;;  %v497_v5 = vld [vmem:[#allocation5 + $0x1e8] sm:$0xff]  ;;  %v495_v17 = vld [vmem:[#allocation5 + $0x1d8] sm:$0xff]  ;;  %v5603_v20 = vpack.c.bf16 %v496_v37, %v492_v19  ;;  %v494_v53 = vld [vmem:[#allocation5 + $0x1d0] sm:$0xff] }
  0xdf   :  { %v5601_v27 = vpack.c.bf16 %v499_v18, %v495_v17  ;;  %v498_v54 = vld [vmem:[#allocation5 + $0x1f0] sm:$0xff]  ;;  %v507_v17 = vld [vmem:[#allocation5 + $0x238] sm:$0xff]  ;;  %v500_v18 = vld [vmem:[#allocation5 + $0x200] sm:$0xff] }
  0xe0   :  { %6779 = vst [vmem:[#allocation30_spill] sm:$0xff] %v5587_v2  ;;  %6782 = vst [vmem:[#allocation33_spill] sm:$0xff] %v5594_v43  ;;  %v504_v19 = vld [vmem:[#allocation5 + $0x220] sm:$0xff] }
  0xe1   :  { %3466 = vmatpush1.bf16.msra.mxu0 %v5579_v52  ;;  %3530 = vmatpush1.bf16.msra.mxu1 %v5582_v1  ;;  %v493_v1 = vld [vmem:[#allocation5 + $0x1c8] sm:$0xff]  ;;  %6784 = vst [vmem:[#allocation35_spill] sm:$0xff] %v5601_v27  ;;  %6785 = vst [vmem:[#allocation36_spill] sm:$0xff] %v5603_v20 }
  0xe2   :  { %3468 = vmatprep.subr.bf16.mxu0 %v5587_v2  ;;  %3532 = vmatprep.subr.bf16.mxu1 %v5589_v28  ;;  %v5599_v52 = vpack.c.bf16 %v497_v5, %v493_v1  ;;  %v5606_v28 = vpack.c.bf16 %v498_v54, %v494_v53  ;;  %v505_v1 = vld [vmem:[#allocation5 + $0x228] sm:$0xff]  ;;  %v503_v5 = vld [vmem:[#allocation5 + $0x218] sm:$0xff]  ;;  %v5615_v2 = vpack.c.bf16 %v504_v19, %v500_v18  ;;  %v502_v53 = vld [vmem:[#allocation5 + $0x210] sm:$0xff] }
  0xe3   :  { %v5613_v37 = vpack.c.bf16 %v507_v17, %v503_v5  ;;  %v506_v54 = vld [vmem:[#allocation5 + $0x230] sm:$0xff]  ;;  %v515_v5 = vld [vmem:[#allocation5 + $0x278] sm:$0xff]  ;;  %v508_v17 = vld [vmem:[#allocation5 + $0x240] sm:$0xff] }
  0xe4   :  { %6783 = vst [vmem:[#allocation34_spill] sm:$0xff] %v5599_v52  ;;  %6786 = vst [vmem:[#allocation37_spill] sm:$0xff] %v5606_v28  ;;  %v512_v18 = vld [vmem:[#allocation5 + $0x260] sm:$0xff] }
  0xe5   :  { %3470 = vmatpush1.bf16.msra.mxu0 %v5591_v51  ;;  %3534 = vmatpush1.bf16.msra.mxu1 %v5594_v43  ;;  %v501_v43 = vld [vmem:[#allocation5 + $0x208] sm:$0xff]  ;;  %6788 = vst [vmem:[#allocation39_spill] sm:$0xff] %v5613_v37  ;;  %6789 = vst [vmem:[#allocation40_spill] sm:$0xff] %v5615_v2 }
  0xe6   :  { %3472 = vmatprep.subr.bf16.mxu0 %v5599_v52  ;;  %3536 = vmatprep.subr.bf16.mxu1 %v5601_v27  ;;  %v5611_v51 = vpack.c.bf16 %v505_v1, %v501_v43  ;;  %v5618_v27 = vpack.c.bf16 %v506_v54, %v502_v53  ;;  %v513_v43 = vld [vmem:[#allocation5 + $0x268] sm:$0xff]  ;;  %v511_v1 = vld [vmem:[#allocation5 + $0x258] sm:$0xff]  ;;  %v5627_v52 = vpack.c.bf16 %v512_v18, %v508_v17  ;;  %v510_v53 = vld [vmem:[#allocation5 + $0x250] sm:$0xff] }
  0xe7   :  { %v5625_v19 = vpack.c.bf16 %v515_v5, %v511_v1  ;;  %v514_v54 = vld [vmem:[#allocation5 + $0x270] sm:$0xff]  ;;  %v523_v1 = vld [vmem:[#allocation5 + $0x2b8] sm:$0xff]  ;;  %v516_v5 = vld [vmem:[#allocation5 + $0x280] sm:$0xff] }
  0xe8   :  { %6787 = vst [vmem:[#allocation38_spill] sm:$0xff] %v5611_v51  ;;  %6790 = vst [vmem:[#allocation41_spill] sm:$0xff] %v5618_v27  ;;  %v520_v17 = vld [vmem:[#allocation5 + $0x2a0] sm:$0xff] }
  0xe9   :  { %3474 = vmatpush1.bf16.msra.mxu0 %v5603_v20  ;;  %3538 = vmatpush1.bf16.msra.mxu1 %v5606_v28  ;;  %v509_v28 = vld [vmem:[#allocation5 + $0x248] sm:$0xff]  ;;  %6792 = vst [vmem:[#allocation43_spill] sm:$0xff] %v5625_v19  ;;  %6793 = vst [vmem:[#allocation44_spill] sm:$0xff] %v5627_v52 }
  0xea   :  { %3476 = vmatprep.subr.bf16.mxu0 %v5611_v51  ;;  %3540 = vmatprep.subr.bf16.mxu1 %v5613_v37  ;;  %v5623_v20 = vpack.c.bf16 %v513_v43, %v509_v28  ;;  %v5630_v37 = vpack.c.bf16 %v514_v54, %v510_v53  ;;  %v521_v28 = vld [vmem:[#allocation5 + $0x2a8] sm:$0xff]  ;;  %v519_v43 = vld [vmem:[#allocation5 + $0x298] sm:$0xff]  ;;  %v5639_v51 = vpack.c.bf16 %v520_v17, %v516_v5  ;;  %v518_v53 = vld [vmem:[#allocation5 + $0x290] sm:$0xff] }
  0xeb   :  { %v5637_v18 = vpack.c.bf16 %v523_v1, %v519_v43  ;;  %v522_v54 = vld [vmem:[#allocation5 + $0x2b0] sm:$0xff]  ;;  %v531_v43 = vld [vmem:[#allocation5 + $0x2f8] sm:$0xff]  ;;  %v524_v1 = vld [vmem:[#allocation5 + $0x2c0] sm:$0xff] }
  0xec   :  { %6791 = vst [vmem:[#allocation42_spill] sm:$0xff] %v5623_v20  ;;  %6794 = vst [vmem:[#allocation45_spill] sm:$0xff] %v5630_v37  ;;  %v528_v5 = vld [vmem:[#allocation5 + $0x2e0] sm:$0xff] }
  0xed   :  { %3478 = vmatpush1.bf16.msra.mxu0 %v5615_v2  ;;  %3542 = vmatpush1.bf16.msra.mxu1 %v5618_v27  ;;  %v517_v27 = vld [vmem:[#allocation5 + $0x288] sm:$0xff]  ;;  %6796 = vst [vmem:[#allocation47_spill] sm:$0xff] %v5637_v18  ;;  %6797 = vst [vmem:[#allocation48_spill] sm:$0xff] %v5639_v51 }
  0xee   :  { %3480 = vmatprep.subr.bf16.mxu0 %v5623_v20  ;;  %3544 = vmatprep.subr.bf16.mxu1 %v5625_v19  ;;  %v5635_v2 = vpack.c.bf16 %v521_v28, %v517_v27  ;;  %v5642_v19 = vpack.c.bf16 %v522_v54, %v518_v53  ;;  %v529_v27 = vld [vmem:[#allocation5 + $0x2e8] sm:$0xff]  ;;  %v527_v28 = vld [vmem:[#allocation5 + $0x2d8] sm:$0xff]  ;;  %v5651_v20 = vpack.c.bf16 %v528_v5, %v524_v1  ;;  %v526_v53 = vld [vmem:[#allocation5 + $0x2d0] sm:$0xff] }
  0xef   :  { %v5649_v17 = vpack.c.bf16 %v531_v43, %v527_v28  ;;  %v530_v54 = vld [vmem:[#allocation5 + $0x2f0] sm:$0xff]  ;;  %v539_v28 = vld [vmem:[#allocation5 + $0x338] sm:$0xff]  ;;  %v532_v43 = vld [vmem:[#allocation5 + $0x300] sm:$0xff] }
  0xf0   :  { %6795 = vst [vmem:[#allocation46_spill] sm:$0xff] %v5635_v2  ;;  %6798 = vst [vmem:[#allocation49_spill] sm:$0xff] %v5642_v19  ;;  %v536_v1 = vld [vmem:[#allocation5 + $0x320] sm:$0xff] }
  0xf1   :  { %3482 = vmatpush1.bf16.msra.mxu0 %v5627_v52  ;;  %3546 = vmatpush1.bf16.msra.mxu1 %v5630_v37  ;;  %v525_v37 = vld [vmem:[#allocation5 + $0x2c8] sm:$0xff]  ;;  %6800 = vst [vmem:[#allocation51_spill] sm:$0xff] %v5649_v17  ;;  %6801 = vst [vmem:[#allocation52_spill] sm:$0xff] %v5651_v20 }
  0xf2   :  { %3484 = vmatprep.subr.bf16.mxu0 %v5635_v2  ;;  %3548 = vmatprep.subr.bf16.mxu1 %v5637_v18  ;;  %v5647_v52 = vpack.c.bf16 %v529_v27, %v525_v37  ;;  %v5654_v18 = vpack.c.bf16 %v530_v54, %v526_v53  ;;  %v537_v37 = vld [vmem:[#allocation5 + $0x328] sm:$0xff]  ;;  %v535_v27 = vld [vmem:[#allocation5 + $0x318] sm:$0xff]  ;;  %v5663_v2 = vpack.c.bf16 %v536_v1, %v532_v43  ;;  %v534_v53 = vld [vmem:[#allocation5 + $0x310] sm:$0xff] }
  0xf3   :  { %v5661_v5 = vpack.c.bf16 %v539_v28, %v535_v27  ;;  %v538_v54 = vld [vmem:[#allocation5 + $0x330] sm:$0xff]  ;;  %v547_v27 = vld [vmem:[#allocation5 + $0x378] sm:$0xff]  ;;  %v540_v28 = vld [vmem:[#allocation5 + $0x340] sm:$0xff] }
  0xf4   :  { %6799 = vst [vmem:[#allocation50_spill] sm:$0xff] %v5647_v52  ;;  %6802 = vst [vmem:[#allocation53_spill] sm:$0xff] %v5654_v18  ;;  %v544_v43 = vld [vmem:[#allocation5 + $0x360] sm:$0xff] }
  0xf5   :  { %3486 = vmatpush1.bf16.msra.mxu0 %v5639_v51  ;;  %3550 = vmatpush1.bf16.msra.mxu1 %v5642_v19  ;;  %v533_v19 = vld [vmem:[#allocation5 + $0x308] sm:$0xff]  ;;  %6804 = vst [vmem:[#allocation55_spill] sm:$0xff] %v5661_v5  ;;  %6805 = vst [vmem:[#allocation56_spill] sm:$0xff] %v5663_v2 }
  0xf6   :  { %3488 = vmatprep.subr.bf16.mxu0 %v5647_v52  ;;  %3552 = vmatprep.subr.bf16.mxu1 %v5649_v17  ;;  %v5659_v51 = vpack.c.bf16 %v537_v37, %v533_v19  ;;  %v5666_v17 = vpack.c.bf16 %v538_v54, %v534_v53  ;;  %v545_v19 = vld [vmem:[#allocation5 + $0x368] sm:$0xff]  ;;  %v543_v37 = vld [vmem:[#allocation5 + $0x358] sm:$0xff]  ;;  %v5675_v52 = vpack.c.bf16 %v544_v43, %v540_v28  ;;  %v542_v53 = vld [vmem:[#allocation5 + $0x350] sm:$0xff] }
  0xf7   :  { %v5673_v1 = vpack.c.bf16 %v547_v27, %v543_v37  ;;  %v546_v54 = vld [vmem:[#allocation5 + $0x370] sm:$0xff]  ;;  %v548_v37 = vld [vmem:[#allocation5 + $0x380] sm:$0xff] }
  0xf8   :  { %6803 = vst [vmem:[#allocation54_spill] sm:$0xff] %v5659_v51  ;;  %6806 = vst [vmem:[#allocation57_spill] sm:$0xff] %v5666_v17  ;;  %v552_v27 = vld [vmem:[#allocation5 + $0x3a0] sm:$0xff]  ;;  %v550_v28 = vld [vmem:[#allocation5 + $0x390] sm:$0xff] }
  0xf9   :  { %3490 = vmatpush1.bf16.msra.mxu0 %v5651_v20  ;;  %3554 = vmatpush1.bf16.msra.mxu1 %v5654_v18  ;;  %v541_v18 = vld [vmem:[#allocation5 + $0x348] sm:$0xff]  ;;  %6808 = vst [vmem:[#allocation59_spill] sm:$0xff] %v5673_v1  ;;  %6809 = vst [vmem:[#allocation60_spill] sm:$0xff] %v5675_v52  ;;  %v5687_v43 = vpack.c.bf16 %v552_v27, %v548_v37  ;;  %v562_v37 = vld [vmem:[#allocation5 + $0x3f0] sm:$0xff] }
  0xfa   :  { %3492 = vmatprep.subr.bf16.mxu0 %v5659_v51  ;;  %3556 = vmatprep.subr.bf16.mxu1 %v5661_v5  ;;  %v5671_v20 = vpack.c.bf16 %v545_v19, %v541_v18  ;;  %v549_v51 = vld [vmem:[#allocation5 + $0x388] sm:$0xff]  ;;  %v5684_v19 = vpack.c.bf16 %v555_v36, %v551_v50  ;;  %v559_v36 = vld [vmem:[#allocation5 + $0x3d8] sm:$0xff] }
  0xfb   :  { %v553_v5 = vld [vmem:[#allocation5 + $0x3a8] sm:$0xff]  ;;  %6813 = vst [vmem:[#allocation64_spill] sm:$0xff] %v5687_v43  ;;  %v563_v50 = vld [vmem:[#allocation5 + $0x3f8] sm:$0xff] }
  0xfc   :  { %6807 = vst [vmem:[#allocation58_spill] sm:$0xff] %v5671_v20  ;;  %v5682_v18 = vpack.c.bf16 %v553_v5, %v549_v51  ;;  %6812 = vst [vmem:[#allocation63_spill] sm:$0xff] %v5684_v19  ;;  %v556_v5 = vld [vmem:[#allocation5 + $0x3c0] sm:$0xff] }
  0xfd   :  { %3494 = vmatpush1.bf16.msra.mxu0 %v5663_v2  ;;  %3558 = vmatpush1.bf16.msra.mxu1 %v5666_v17  ;;  %v5678_v2 = vpack.c.bf16 %v546_v54, %v542_v53  ;;  %v554_v53 = vld [vmem:[#allocation5 + $0x3b0] sm:$0xff]  ;;  %v557_v54 = vld [vmem:[#allocation5 + $0x3c8] sm:$0xff]  ;;  %v560_v17 = vld [vmem:[#allocation5 + $0x3e0] sm:$0xff] }
  0xfe   :  { %3496 = vmatprep.subr.bf16.mxu0 %v5671_v20  ;;  %3560 = vmatprep.subr.bf16.mxu1 %v5673_v1  ;;  %6811 = vst [vmem:[#allocation62_spill] sm:$0xff] %v5682_v18  ;;  %v561_v20 = vld [vmem:[#allocation5 + $0x3e8] sm:$0xff]  ;;  %v5691_v1 = vpack.c.bf16 %v554_v53, %v550_v28  ;;  %v5698_v27 = vpack.c.bf16 %v560_v17, %v556_v5 }
  0xff   :  { %6810 = vst [vmem:[#allocation61_spill] sm:$0xff] %v5678_v2  ;;  %v5693_v51 = vpack.c.bf16 %v561_v20, %v557_v54 }
 0x100   :  { %6814 = vst [vmem:[#allocation65_spill] sm:$0xff] %v5691_v1  ;;  %6817 = vst [vmem:[#allocation68_spill] sm:$0xff] %v5698_v27 }
 0x101   :  { %3498 = vmatpush1.bf16.msra.mxu0 %v5675_v52  ;;  %3562 = vmatpush1.bf16.msra.mxu1 %v5678_v2  ;;  %6815 = vst [vmem:[#allocation66_spill] sm:$0xff] %v5693_v51  ;;  %v5695_v52 = vpack.c.bf16 %v563_v50, %v559_v36  ;;  %v558_v2 = vld [vmem:[#allocation5 + $0x3d0] sm:$0xff] }
 0x102   :  { %3500 = vmatprep.subr.bf16.mxu0 %v5682_v18  ;;  %3564 = vmatprep.subr.bf16.mxu1 %v5684_v19  ;;  %v5702_v28 = vpack.c.bf16 %v562_v37, %v558_v2 }
 0x103   :  { %6816 = vst [vmem:[#allocation67_spill] sm:$0xff] %v5695_v52 }
 0x104   :  { %6818 = vst [vmem:[#allocation69_spill] sm:$0xff] %v5702_v28 }
 0x105   :  { %3502 = vmatpush1.bf16.msra.mxu0 %v5687_v43  ;;  %3566 = vmatpush1.bf16.msra.mxu1 %v5691_v1  ;;  %v5709_v43 = vpop.permute.xlu0 %734 }
 0x106   :  { %3504 = vmatprep.subr.bf16.mxu0 %v5693_v51  ;;  %3568 = vmatprep.subr.bf16.mxu1 %v5695_v52  ;;  %vm736_vm1 = vcmp.eq.s32.totalorder %v5709_v43, 1  ;;  %v6874_v43 = vld [vmem:[#allocation16_spill] sm:$0xff] }
 0x109   :  { %3506 = vmatpush1.bf16.msra.mxu0 %v5698_v27  ;;  %3570 = vmatpush1.bf16.msra.mxu1 %v5702_v28 }
 0x10a   :  { %3572 = vmatprep.subr.bf16.mxu0 %v5338_v23  ;;  %3604 = vmatprep.subr.bf16.mxu1 %v5340_v26 }
 0x19f   :  { %v633_v20 = vpop.f32.mrb[0].mxu0  ;;  %v704_v53 = vpop.f32.mrb[0].mxu1 }
 0x1a0   :  { %v3333_v17 = vmul.f32 -1.442695, %v633_v20  ;;  %v635_v54 = vpop.f32.mrb[1].mxu0  ;;  %v706_v36 = vpop.f32.mrb[1].mxu1 }
 0x1a1   :  { %v3334_v50 = vmul.f32 -1.442695, %v635_v54  ;;  %v6828_v54 = vld [vmem:[#allocation29_spill] sm:$0xff] }
 0x1a2   :  { %4959 = vpow2.f32 %v3333_v17 }
 0x1a3   :  { %4961 = vpow2.f32 %v3334_v50  ;;  %v6830_v50 = vld [vmem:[#allocation31_spill] sm:$0xff] }
 0x1ac   :  { %v4960_v2 = vpop.eup %4959 }
 0x1ad   :  { %v716_v5 = vadd.f32 1.0, %v4960_v2  ;;  %v4962_v37 = vpop.eup %4961  ;;  %v6831_v2 = vld [vmem:[#allocation32_spill] sm:$0xff] }
 0x1ae   :  { %v722_v52 = vadd.f32 1.0, %v4962_v37  ;;  %v6833_v37 = vld [vmem:[#allocation34_spill] sm:$0xff] }
 0x1af   :  { %4963 = vrcp.f32 %v716_v5  ;;  %v6832_v5 = vld [vmem:[#allocation33_spill] sm:$0xff] }
 0x1b0   :  { %4965 = vrcp.f32 %v722_v52  ;;  %v6821_v52 = vld [vmem:[#allocation22_spill] sm:$0xff] }
 0x1b9   :  { %v4964_v27 = vpop.eup %4963 }
 0x1ba   :  { %v725_v28 = vmul.f32 %v4964_v27, %v706_v36  ;;  %v4966_v23 = vpop.eup %4965  ;;  %v6825_v27 = vld [vmem:[#allocation26_spill] sm:$0xff] }
 0x1bb   :  { %v728_v26 = vsub.f32 1.0, %v4966_v23  ;;  %v730_v19 = vmul.f32 0.0, %v4966_v23  ;;  %v6819_v23 = vmov 0.0   ;;  %v6829_v36 = vld [vmem:[#allocation30_spill] sm:$0xff] }
 0x1bc   :  { %v726_v51 = vadd.f32 %v725_v28, %v704_v53  ;;  %v6826_v28 = vld [vmem:[#allocation27_spill] sm:$0xff]  ;;  %v6827_v53 = vld [vmem:[#allocation28_spill] sm:$0xff] }
 0x1be   :  { %4967 = vtanh.f32 %v726_v51  ;;  %v6824_v51 = vld [vmem:[#allocation25_spill] sm:$0xff] }
 0x1c8   :  { %v4968_v1 = vpop.eup %4967 }
 0x1c9   :  { %v729_v20 = vmul.f32 %v4968_v1, %v728_v26  ;;  %v6820_v26 = vld [vmem:[#allocation21_spill] sm:$0xff]  ;;  %v6822_v1 = vld [vmem:[#allocation23_spill] sm:$0xff] }
 0x1cb   :  { %v5711_v17 = vadd.f32 %v730_v19, %v729_v20  ;;  %v6823_v19 = vld [vmem:[#allocation24_spill] sm:$0xff]  ;;  %v6834_v20 = vld [vmem:[#allocation35_spill] sm:$0xff] }
 0x1cd   :  { %3335 = vmatmul.mubr.msk.f32.vlgmr.msra.gmra.mrb[16].mxu0 %vm736_vm1, %v5711_v17  ;;  %3336 = vmatmul.mubr.msk.f32.vlgmr.msra.gmra.mrb[16].mxu1 %vm736_vm1, %v5711_v17 }
 0x1ce   :  { %3574 = vmatpush1.bf16.msra.mxu0 %v5361_v48  ;;  %3606 = vmatpush1.bf16.msra.mxu1 %v5363_v49 }
 0x1cf   :  { %3576 = vmatprep.subr.bf16.mxu0 %v5367_v55  ;;  %3608 = vmatprep.subr.bf16.mxu1 %v5369_v56 }
 0x1d0   :  { %986 = vmatprep.mubr.f32.mxu0 %v6819_v23  ;;  %1057 = vmatprep.mubr.f32.mxu1 %v6819_v23 }
 0x1d2   :  { %3578 = vmatpush1.bf16.msra.mxu0 %v5375_v63  ;;  %3610 = vmatpush1.bf16.msra.mxu1 %v5377_v0 }
 0x1d3   :  { %3580 = vmatprep.subr.bf16.mxu0 %v5386_v7  ;;  %3612 = vmatprep.subr.bf16.mxu1 %v5388_v8 }
 0x1d6   :  { %3582 = vmatpush1.bf16.msra.mxu0 %v5397_v14  ;;  %3614 = vmatpush1.bf16.msra.mxu1 %v5399_v15 }
 0x1d7   :  { %3584 = vmatprep.subr.bf16.mxu0 %v5405_v21  ;;  %3616 = vmatprep.subr.bf16.mxu1 %v5407_v22 }
 0x1da   :  { %3586 = vmatpush1.bf16.msra.mxu0 %v5414_v30  ;;  %3618 = vmatpush1.bf16.msra.mxu1 %v5416_v31 }
 0x1db   :  { %3588 = vmatprep.subr.bf16.mxu0 %v5425_v38  ;;  %3620 = vmatprep.subr.bf16.mxu1 %v5427_v40 }
 0x1de   :  { %3590 = vmatpush1.bf16.msra.mxu0 %v5434_v46  ;;  %3622 = vmatpush1.bf16.msra.mxu1 %v5436_v47 }
 0x1df   :  { %3592 = vmatprep.subr.bf16.mxu0 %v5445_v57  ;;  %3624 = vmatprep.subr.bf16.mxu1 %v5447_v58 }
 0x1e2   :  { %3594 = vmatpush1.bf16.msra.mxu0 %v5454_v3  ;;  %3626 = vmatpush1.bf16.msra.mxu1 %v5456_v4 }
 0x1e3   :  { %3596 = vmatprep.subr.bf16.mxu0 %v5465_v12  ;;  %3628 = vmatprep.subr.bf16.mxu1 %v5467_v13 }
 0x1e6   :  { %3598 = vmatpush1.bf16.msra.mxu0 %v5474_v24  ;;  %3630 = vmatpush1.bf16.msra.mxu1 %v5476_v25 }
 0x1e7   :  { %3600 = vmatprep.subr.bf16.mxu0 %v5485_v34  ;;  %3632 = vmatprep.subr.bf16.mxu1 %v5487_v35 }
 0x1ea   :  { %3602 = vmatpush1.bf16.msra.mxu0 %v5494_v44  ;;  %3634 = vmatpush1.bf16.msra.mxu1 %v5496_v45 }
 0x1eb   :  { %3636 = vmatprep.subr.bf16.mxu0 %v5505_v60  ;;  %3700 = vmatprep.subr.bf16.mxu1 %v5507_v61 }
 0x1ed   :  { %3339 = vmatmul.mubr.msk.f32.vlgmr.msra.gmra.mrb[2].mxu0 %vm736_vm1, %v5711_v17  ;;  %3340 = vmatmul.mubr.msk.f32.vlgmr.msra.gmra.mrb[2].mxu1 %vm736_vm1, %v5711_v17 }
 0x1ee   :  { %3638 = vmatpush1.bf16.msra.mxu0 %v5513_v39  ;;  %3702 = vmatpush1.bf16.msra.mxu1 %v5515_v6 }
 0x1ef   :  { %3640 = vmatprep.subr.bf16.mxu0 %v5519_v11  ;;  %3704 = vmatprep.subr.bf16.mxu1 %v5521_v16 }
 0x1f2   :  { %3642 = vmatpush1.bf16.msra.mxu0 %v5529_v29  ;;  %3706 = vmatpush1.bf16.msra.mxu1 %v5531_v32 }
 0x1f3   :  { %3644 = vmatprep.subr.bf16.mxu0 %v5535_v41  ;;  %3708 = vmatprep.subr.bf16.mxu1 %v5537_v42 }
 0x1f6   :  { %3646 = vmatpush1.bf16.msra.mxu0 %v5543_v59  ;;  %3710 = vmatpush1.bf16.msra.mxu1 %v5545_v62 }
 0x1f7   :  { %3648 = vmatprep.subr.bf16.mxu0 %v5549_v9  ;;  %3712 = vmatprep.subr.bf16.mxu1 %v5551_v10 }
 0x1fa   :  { %3650 = vmatpush1.bf16.msra.mxu0 %v5555_v33  ;;  %3714 = vmatpush1.bf16.msra.mxu1 %v6820_v26 }
 0x1fb   :  { %3652 = vmatprep.subr.bf16.mxu0 %v6821_v52  ;;  %3716 = vmatprep.subr.bf16.mxu1 %v6822_v1 }
 0x1fe   :  { %3654 = vmatpush1.bf16.msra.mxu0 %v6823_v19  ;;  %3718 = vmatpush1.bf16.msra.mxu1 %v6824_v51  ;;  %v6835_v51 = vld [vmem:[#allocation36_spill] sm:$0xff] }
 0x1ff   :  { %3656 = vmatprep.subr.bf16.mxu0 %v6825_v27  ;;  %3720 = vmatprep.subr.bf16.mxu1 %v6826_v28  ;;  %v6836_v27 = vld [vmem:[#allocation37_spill] sm:$0xff]  ;;  %v6837_v28 = vld [vmem:[#allocation38_spill] sm:$0xff] }
 0x202   :  { %3658 = vmatpush1.bf16.msra.mxu0 %v6827_v53  ;;  %3722 = vmatpush1.bf16.msra.mxu1 %v6828_v54  ;;  %v6838_v53 = vld [vmem:[#allocation39_spill] sm:$0xff]  ;;  %v6839_v54 = vld [vmem:[#allocation40_spill] sm:$0xff] }
 0x203   :  { %3660 = vmatprep.subr.bf16.mxu0 %v6829_v36  ;;  %3724 = vmatprep.subr.bf16.mxu1 %v6830_v50  ;;  %v6840_v36 = vld [vmem:[#allocation41_spill] sm:$0xff]  ;;  %v6841_v50 = vld [vmem:[#allocation42_spill] sm:$0xff] }
 0x206   :  { %3662 = vmatpush1.bf16.msra.mxu0 %v6831_v2  ;;  %3726 = vmatpush1.bf16.msra.mxu1 %v6832_v5  ;;  %v6842_v2 = vld [vmem:[#allocation43_spill] sm:$0xff]  ;;  %v6843_v5 = vld [vmem:[#allocation44_spill] sm:$0xff] }
 0x207   :  { %3664 = vmatprep.subr.bf16.mxu0 %v6833_v37  ;;  %3728 = vmatprep.subr.bf16.mxu1 %v6834_v20  ;;  %v6844_v37 = vld [vmem:[#allocation45_spill] sm:$0xff]  ;;  %v6845_v20 = vld [vmem:[#allocation46_spill] sm:$0xff] }
 0x20a   :  { %3666 = vmatpush1.bf16.msra.mxu0 %v6835_v51  ;;  %3730 = vmatpush1.bf16.msra.mxu1 %v6836_v27  ;;  %v6846_v51 = vld [vmem:[#allocation47_spill] sm:$0xff]  ;;  %v6847_v27 = vld [vmem:[#allocation48_spill] sm:$0xff] }
 0x20b   :  { %3668 = vmatprep.subr.bf16.mxu0 %v6837_v28  ;;  %3732 = vmatprep.subr.bf16.mxu1 %v6838_v53  ;;  %v6848_v28 = vld [vmem:[#allocation49_spill] sm:$0xff]  ;;  %v6849_v53 = vld [vmem:[#allocation50_spill] sm:$0xff] }
 0x20e   :  { %3670 = vmatpush1.bf16.msra.mxu0 %v6839_v54  ;;  %3734 = vmatpush1.bf16.msra.mxu1 %v6840_v36  ;;  %v6850_v54 = vld [vmem:[#allocation51_spill] sm:$0xff]  ;;  %v6851_v36 = vld [vmem:[#allocation52_spill] sm:$0xff] }
 0x20f   :  { %3672 = vmatprep.subr.bf16.mxu0 %v6841_v50  ;;  %3736 = vmatprep.subr.bf16.mxu1 %v6842_v2  ;;  %v6852_v50 = vld [vmem:[#allocation53_spill] sm:$0xff]  ;;  %v6853_v2 = vld [vmem:[#allocation54_spill] sm:$0xff] }
 0x212   :  { %3674 = vmatpush1.bf16.msra.mxu0 %v6843_v5  ;;  %3738 = vmatpush1.bf16.msra.mxu1 %v6844_v37  ;;  %v6854_v5 = vld [vmem:[#allocation55_spill] sm:$0xff]  ;;  %v6855_v37 = vld [vmem:[#allocation56_spill] sm:$0xff] }
 0x213   :  { %3676 = vmatprep.subr.bf16.mxu0 %v6845_v20  ;;  %3740 = vmatprep.subr.bf16.mxu1 %v6846_v51  ;;  %v6856_v20 = vld [vmem:[#allocation57_spill] sm:$0xff]  ;;  %v6857_v51 = vld [vmem:[#allocation58_spill] sm:$0xff] }
 0x216   :  { %3678 = vmatpush1.bf16.msra.mxu0 %v6847_v27  ;;  %3742 = vmatpush1.bf16.msra.mxu1 %v6848_v28  ;;  %v6858_v27 = vld [vmem:[#allocation59_spill] sm:$0xff]  ;;  %v6859_v28 = vld [vmem:[#allocation60_spill] sm:$0xff] }
 0x217   :  { %3680 = vmatprep.subr.bf16.mxu0 %v6849_v53  ;;  %3744 = vmatprep.subr.bf16.mxu1 %v6850_v54  ;;  %v6860_v53 = vld [vmem:[#allocation61_spill] sm:$0xff] }
 0x21a   :  { %3682 = vmatpush1.bf16.msra.mxu0 %v6851_v36  ;;  %3746 = vmatpush1.bf16.msra.mxu1 %v6852_v50  ;;  %v6861_v36 = vld [vmem:[#allocation63_spill] sm:$0xff]  ;;  %v6862_v50 = vld [vmem:[#allocation64_spill] sm:$0xff] }
 0x21b   :  { %3684 = vmatprep.subr.bf16.mxu0 %v6853_v2  ;;  %3748 = vmatprep.subr.bf16.mxu1 %v6854_v5  ;;  %v6863_v2 = vld [vmem:[#allocation65_spill] sm:$0xff]  ;;  %v6864_v5 = vld [vmem:[#allocation66_spill] sm:$0xff] }
 0x21e   :  { %3686 = vmatpush1.bf16.msra.mxu0 %v6855_v37  ;;  %3750 = vmatpush1.bf16.msra.mxu1 %v6856_v20  ;;  %v6865_v37 = vld [vmem:[#allocation67_spill] sm:$0xff]  ;;  %v6866_v20 = vld [vmem:[#allocation68_spill] sm:$0xff] }
 0x21f   :  { %3688 = vmatprep.subr.bf16.mxu0 %v6857_v51  ;;  %3752 = vmatprep.subr.bf16.mxu1 %v6858_v27  ;;  %v6867_v51 = vld [vmem:[#allocation69_spill] sm:$0xff]  ;;  %v6868_v27 = vld [vmem:[#allocation14_spill] sm:$0xff] }
 0x222   :  { %3690 = vmatpush1.bf16.msra.mxu0 %v6859_v28  ;;  %3754 = vmatpush1.bf16.msra.mxu1 %v6860_v53  ;;  %v6869_v28 = vld [vmem:[#allocation15_spill] sm:$0xff]  ;;  %v6870_v53 = vlaneseq }
 0x223   :  { %3692 = vmatprep.subr.bf16.mxu0 %v5682_v18  ;;  %3756 = vmatprep.subr.bf16.mxu1 %v6861_v36 }
 0x224   :  { %v740_v18 = vshrl.u32 %v6870_v53, 7 }
 0x226   :  { %3694 = vmatpush1.bf16.msra.mxu0 %v6862_v50  ;;  %3758 = vmatpush1.bf16.msra.mxu1 %v6863_v2  ;;  %v741_v54 = vsub.s32 0, %v740_v18  ;;  %v564_v50 = vld [vmem:[%s6639_s5] sm:$0xf]  ;;  %v745_v2 = vsub.s32 1, %v740_v18  ;;  %v753_v33 = vsub.s32 3, %v740_v18  ;;  %s5221_s5 = smov [#allocation7]  }
 0x227   :  { %3696 = vmatprep.subr.bf16.mxu0 %v6864_v5  ;;  %3760 = vmatprep.subr.bf16.mxu1 %v6865_v37  ;;  %s3283_s10 = sshll.u32 %s5221_s5, 4  ;;  %s3284_s10 = int_to_ptr.vmem [resolvable:$true] %s3283_s10 }
 0x228   :  { %v5828_v36 = vrot.slane %v564_v50, %v741_v54  ;;  %v5830_v19 = vrot.slane %v564_v50, %v745_v2  ;;  %v749_v54 = vsub.s32 2, %v740_v18  ;;  %v5834_v9 = vrot.slane %v564_v50, %v753_v33  ;;  %s5163_s13 = scalar_lea.vmem %s3284_s10, 1024  ;;  %p5168_p3 = scmp.lt.s32.totalorder %s3284_s10, %s3284_s10 }
 0x229   :  { %p5164_p2 = scmp.ne.s32.totalorder %s3284_s10, %s5163_s13  ;;  %p5169_p4 = scmp.lt.s32.totalorder %s5163_s13, %s5163_s13 }
 0x22a   :  { %3698 = vmatpush1.bf16.msra.mxu0 %v6866_v20  ;;  %3762 = vmatpush1.bf16.msra.mxu1 %v6867_v51  ;;  %6871 = vst [vmem:[#allocation70_spill] sm:$0xff] %v5828_v36  ;;  %6872 = vst [vmem:[#allocation71_spill] sm:$0xff] %v5830_v19  ;;  %v5836_v2 = vrot.slane %v564_v50, %v749_v54 }
 0x22b   :  { %3764 = vmatprep.subr.bf16.mxu0 %v6868_v27  ;;  %3796 = vmatprep.subr.bf16.mxu1 %v6869_v28  ;;  %6873 = vst [vmem:[#allocation72_spill] sm:$0xff] %v5834_v9  ;;  %p5170_p5 = por %p5169_p4, %p5168_p3 }
 0x22d   :  { %p5171_p6 = pnand %p5170_p5, %p5164_p2 }
 0x2a0   :  { %v825_v5 = vpop.f32.mrb[16].mxu0  ;;  %v896_v37 = vpop.f32.mrb[16].mxu1 }
 0x2a1   :  { %v826_v51 = vadd.f32 %v825_v5, %v5828_v36  ;;  %v827_v20 = vpop.f32.mrb[17].mxu0  ;;  %v898_v27 = vpop.f32.mrb[17].mxu1 }
 0x2a2   :  { %v828_v28 = vadd.f32 %v827_v20, %v5830_v19  ;;  %v899_v5 = vadd.f32 %v898_v27, %v5834_v9 }
 0x2a3   :  { %v3337_v1 = vmul.f32 -1.442695, %v826_v51  ;;  %v897_v51 = vadd.f32 %v896_v37, %v5836_v2 }
 0x2a4   :  { %v3338_v53 = vmul.f32 -1.442695, %v828_v28 }
 0x2a5   :  { %4969 = vpow2.f32 %v3337_v1 }
 0x2a6   :  { %4971 = vpow2.f32 %v3338_v53 }
 0x2af   :  { %v4970_v52 = vpop.eup %4969 }
 0x2b0   :  { %v904_v26 = vadd.f32 1.0, %v4970_v52  ;;  %v4972_v10 = vpop.eup %4971 }
 0x2b1   :  { %v910_v62 = vadd.f32 1.0, %v4972_v10 }
 0x2b2   :  { %4973 = vrcp.f32 %v904_v26 }
 0x2b3   :  { %4975 = vrcp.f32 %v910_v62 }
 0x2bc   :  { %v4974_v36 = vpop.eup %4973 }
 0x2bd   :  { %v913_v1 = vmul.f32 %v4974_v36, %v899_v5  ;;  %v4976_v33 = vpop.eup %4975 }
 0x2be   :  { %v916_v50 = vsub.f32 1.0, %v4976_v33  ;;  %v918_v27 = vmul.f32 0.0, %v4976_v33 }
 0x2bf   :  { %v914_v28 = vadd.f32 %v913_v1, %v897_v51 }
 0x2c0   :  { %v988_v20 = vpop.f32.mrb[2].mxu0  ;;  %v1059_v53 = vpop.f32.mrb[2].mxu1 }
 0x2c1   :  { %4977 = vtanh.f32 %v914_v28  ;;  %v3341_v26 = vmul.f32 -1.442695, %v988_v20  ;;  %v990_v52 = vpop.f32.mrb[3].mxu0  ;;  %v1061_v18 = vpop.f32.mrb[3].mxu1 }
 0x2c2   :  { %v3342_v19 = vmul.f32 -1.442695, %v990_v52  ;;  %v5852_v52 = vpop.permute.xlu1 %1089 }
 0x2c3   :  { %4979 = vpow2.f32 %v3341_v26  ;;  %vm1091_vm2 = vcmp.eq.s32.totalorder %v5852_v52, 1 }
 0x2c4   :  { %4981 = vpow2.f32 %v3342_v19 }
 0x2cb   :  { %v4978_v10 = vpop.eup %4977 }
 0x2cc   :  { %v917_v54 = vmul.f32 %v4978_v10, %v916_v50 }
 0x2cd   :  { %v4980_v9 = vpop.eup %4979 }
 0x2ce   :  { %v4982_v59 = vpop.eup %4981  ;;  %v1071_v37 = vadd.f32 1.0, %v4980_v9  ;;  %v919_v62 = vadd.f32 %v918_v27, %v917_v54  ;;  %v6878_v54 = vld [vmem:[#allocation20_spill] sm:$0xff]  ;;  %v6879_v27 = vld [vmem:[#allocation21_spill] sm:$0xff] }
 0x2cf   :  { %v1077_v36 = vadd.f32 1.0, %v4982_v59  ;;  %v737_v59 = vsel %vm736_vm1, %v5711_v17, 0.0  ;;  %v6875_v17 = vld [vmem:[#allocation17_spill] sm:$0xff] }
 0x2d0   :  { %4983 = vrcp.f32 %v1071_v37  ;;  %3343 = vmatprep.mubr.msk.f32.mxu0 %vm736_vm1, %v919_v62  ;;  %3344 = vmatprep.mubr.msk.f32.mxu1 %vm736_vm1, %v919_v62  ;;  %v5846_v19 = vsel %vm736_vm1, %v919_v62, 0.0  ;;  %v6880_v37 = vld [vmem:[#allocation22_spill] sm:$0xff]  ;;  %v6881_v62 = vld [vmem:[#allocation23_spill] sm:$0xff] }
 0x2d1   :  { %4985 = vrcp.f32 %v1077_v36  ;;  %3266 = vst [vmem:[#allocation7] sm:$0xff] %v5846_v19  ;;  %v6882_v36 = vld [vmem:[#allocation24_spill] sm:$0xff] }
 0x2da   :  { %v4984_v5 = vpop.eup %4983 }
 0x2db   :  { %v4986_v51 = vpop.eup %4985  ;;  %v1080_v1 = vmul.f32 %v4984_v5, %v1061_v18  ;;  %v6877_v18 = vld [vmem:[#allocation19_spill] sm:$0xff]  ;;  %v6883_v5 = vld [vmem:[#allocation25_spill] sm:$0xff] }
 0x2dc   :  { %v1085_v9 = vmul.f32 %v4986_v51, %v737_v59  ;;  %v1083_v20 = vsub.f32 1.0, %v4986_v51  ;;  %v6884_v51 = vld [vmem:[#allocation26_spill] sm:$0xff] }
 0x2dd   :  { %v1081_v28 = vadd.f32 %v1080_v1, %v1059_v53  ;;  %v6876_v53 = vld [vmem:[#allocation18_spill] sm:$0xff]  ;;  %v6885_v1 = vld [vmem:[#allocation27_spill] sm:$0xff] }
 0x2df   :  { %4987 = vtanh.f32 %v1081_v28  ;;  %v6888_v28 = vld [vmem:[#allocation30_spill] sm:$0xff] }
 0x2e9   :  { %v4988_v26 = vpop.eup %4987 }
 0x2ea   :  { %v1084_v33 = vmul.f32 %v4988_v26, %v1083_v20  ;;  %v6889_v20 = vld [vmem:[#allocation31_spill] sm:$0xff]  ;;  %v6890_v26 = vld [vmem:[#allocation32_spill] sm:$0xff] }
 0x2ec   :  { %v1086_v50 = vadd.f32 %v1085_v9, %v1084_v33  ;;  %v6887_v9 = vld [vmem:[#allocation29_spill] sm:$0xff] }
 0x2ed   :  { %v6891_v33 = vld [vmem:[#allocation33_spill] sm:$0xff] }
 0x2ee   :  { %v5857_v10 = vsel %vm1091_vm2, %v1086_v50, %v737_v59  ;;  %v6886_v59 = vld [vmem:[#allocation28_spill] sm:$0xff]  ;;  %v6892_v50 = vld [vmem:[#allocation34_spill] sm:$0xff] }
 0x2ef   :  { %1158 = vmatmul.mubr.f32.vlgmr.msra.gmra.mrb[18].mxu0 %v5857_v10  ;;  %1229 = vmatmul.mubr.f32.vlgmr.msra.gmra.mrb[18].mxu1 %v5857_v10 }
 0x2f0   :  { %3766 = vmatpush1.bf16.msra.mxu0 %v5361_v48  ;;  %3798 = vmatpush1.bf16.msra.mxu1 %v5363_v49 }
 0x2f1   :  { %3768 = vmatprep.subr.bf16.mxu0 %v5367_v55  ;;  %3800 = vmatprep.subr.bf16.mxu1 %v5369_v56 }
 0x2f2   :  { %1321 = vmatprep.mubr.f32.mxu0 %v6819_v23  ;;  %1392 = vmatprep.mubr.f32.mxu1 %v6819_v23 }
 0x2f4   :  { %3770 = vmatpush1.bf16.msra.mxu0 %v5375_v63  ;;  %3802 = vmatpush1.bf16.msra.mxu1 %v5377_v0 }
 0x2f5   :  { %3772 = vmatprep.subr.bf16.mxu0 %v5386_v7  ;;  %3804 = vmatprep.subr.bf16.mxu1 %v5388_v8 }
 0x2f8   :  { %3774 = vmatpush1.bf16.msra.mxu0 %v5397_v14  ;;  %3806 = vmatpush1.bf16.msra.mxu1 %v5399_v15 }
 0x2f9   :  { %3776 = vmatprep.subr.bf16.mxu0 %v5405_v21  ;;  %3808 = vmatprep.subr.bf16.mxu1 %v5407_v22 }
 0x2fc   :  { %3778 = vmatpush1.bf16.msra.mxu0 %v5414_v30  ;;  %3810 = vmatpush1.bf16.msra.mxu1 %v5416_v31 }
 0x2fd   :  { %3780 = vmatprep.subr.bf16.mxu0 %v5425_v38  ;;  %3812 = vmatprep.subr.bf16.mxu1 %v5427_v40 }
 0x300   :  { %3782 = vmatpush1.bf16.msra.mxu0 %v5434_v46  ;;  %3814 = vmatpush1.bf16.msra.mxu1 %v5436_v47 }
 0x301   :  { %3784 = vmatprep.subr.bf16.mxu0 %v5445_v57  ;;  %3816 = vmatprep.subr.bf16.mxu1 %v5447_v58 }
 0x304   :  { %3786 = vmatpush1.bf16.msra.mxu0 %v5454_v3  ;;  %3818 = vmatpush1.bf16.msra.mxu1 %v5456_v4 }
 0x305   :  { %3788 = vmatprep.subr.bf16.mxu0 %v5465_v12  ;;  %3820 = vmatprep.subr.bf16.mxu1 %v5467_v13 }
 0x308   :  { %3790 = vmatpush1.bf16.msra.mxu0 %v5474_v24  ;;  %3822 = vmatpush1.bf16.msra.mxu1 %v5476_v25 }
 0x309   :  { %3792 = vmatprep.subr.bf16.mxu0 %v5485_v34  ;;  %3824 = vmatprep.subr.bf16.mxu1 %v5487_v35 }
 0x30c   :  { %3794 = vmatpush1.bf16.msra.mxu0 %v5494_v44  ;;  %3826 = vmatpush1.bf16.msra.mxu1 %v5496_v45 }
 0x30d   :  { %3828 = vmatprep.subr.bf16.mxu0 %v5505_v60  ;;  %3892 = vmatprep.subr.bf16.mxu1 %v5507_v61 }
 0x30f   :  { %1322 = vmatmul.mubr.f32.vlgmr.msra.gmra.mrb[4].mxu0 %v5857_v10  ;;  %1393 = vmatmul.mubr.f32.vlgmr.msra.gmra.mrb[4].mxu1 %v5857_v10 }
 0x310   :  { %3830 = vmatpush1.bf16.msra.mxu0 %v5513_v39  ;;  %3894 = vmatpush1.bf16.msra.mxu1 %v5515_v6 }
 0x311   :  { %3832 = vmatprep.subr.bf16.mxu0 %v5519_v11  ;;  %3896 = vmatprep.subr.bf16.mxu1 %v5521_v16 }
 0x314   :  { %3834 = vmatpush1.bf16.msra.mxu0 %v5529_v29  ;;  %3898 = vmatpush1.bf16.msra.mxu1 %v5531_v32 }
 0x315   :  { %3836 = vmatprep.subr.bf16.mxu0 %v5535_v41  ;;  %3900 = vmatprep.subr.bf16.mxu1 %v5537_v42 }
 0x318   :  { %3838 = vmatpush1.bf16.msra.mxu0 %v6874_v43  ;;  %3902 = vmatpush1.bf16.msra.mxu1 %v6875_v17 }
 0x319   :  { %3840 = vmatprep.subr.bf16.mxu0 %v6876_v53  ;;  %3904 = vmatprep.subr.bf16.mxu1 %v6877_v18 }
 0x31c   :  { %3842 = vmatpush1.bf16.msra.mxu0 %v6878_v54  ;;  %3906 = vmatpush1.bf16.msra.mxu1 %v6879_v27 }
 0x31d   :  { %3844 = vmatprep.subr.bf16.mxu0 %v6880_v37  ;;  %3908 = vmatprep.subr.bf16.mxu1 %v6881_v62  ;;  %v6930_v62 = vld [vmem:[#allocation70_spill] sm:$0xff] }
 0x320   :  { %3846 = vmatpush1.bf16.msra.mxu0 %v6882_v36  ;;  %3910 = vmatpush1.bf16.msra.mxu1 %v6883_v5  ;;  %v6893_v36 = vld [vmem:[#allocation35_spill] sm:$0xff]  ;;  %v6894_v5 = vld [vmem:[#allocation36_spill] sm:$0xff] }
 0x321   :  { %3848 = vmatprep.subr.bf16.mxu0 %v6884_v51  ;;  %3912 = vmatprep.subr.bf16.mxu1 %v6885_v1  ;;  %v6895_v51 = vld [vmem:[#allocation37_spill] sm:$0xff]  ;;  %v6896_v1 = vld [vmem:[#allocation38_spill] sm:$0xff] }
 0x324   :  { %3850 = vmatpush1.bf16.msra.mxu0 %v6886_v59  ;;  %3914 = vmatpush1.bf16.msra.mxu1 %v6887_v9  ;;  %v6897_v59 = vld [vmem:[#allocation39_spill] sm:$0xff]  ;;  %v6898_v9 = vld [vmem:[#allocation40_spill] sm:$0xff] }
 0x325   :  { %3852 = vmatprep.subr.bf16.mxu0 %v6888_v28  ;;  %3916 = vmatprep.subr.bf16.mxu1 %v6889_v20  ;;  %v6899_v28 = vld [vmem:[#allocation41_spill] sm:$0xff]  ;;  %v6900_v20 = vld [vmem:[#allocation42_spill] sm:$0xff] }
 0x328   :  { %3854 = vmatpush1.bf16.msra.mxu0 %v6890_v26  ;;  %3918 = vmatpush1.bf16.msra.mxu1 %v6891_v33  ;;  %v6901_v26 = vld [vmem:[#allocation43_spill] sm:$0xff]  ;;  %v6902_v33 = vld [vmem:[#allocation44_spill] sm:$0xff] }
 0x329   :  { %3856 = vmatprep.subr.bf16.mxu0 %v6892_v50  ;;  %3920 = vmatprep.subr.bf16.mxu1 %v6893_v36  ;;  %v6903_v50 = vld [vmem:[#allocation45_spill] sm:$0xff]  ;;  %v6904_v36 = vld [vmem:[#allocation46_spill] sm:$0xff] }
 0x32c   :  { %3858 = vmatpush1.bf16.msra.mxu0 %v6894_v5  ;;  %3922 = vmatpush1.bf16.msra.mxu1 %v6895_v51  ;;  %v6905_v5 = vld [vmem:[#allocation47_spill] sm:$0xff]  ;;  %v6906_v51 = vld [vmem:[#allocation48_spill] sm:$0xff] }
 0x32d   :  { %3860 = vmatprep.subr.bf16.mxu0 %v6896_v1  ;;  %3924 = vmatprep.subr.bf16.mxu1 %v6897_v59  ;;  %v6907_v1 = vld [vmem:[#allocation49_spill] sm:$0xff]  ;;  %v6908_v59 = vld [vmem:[#allocation50_spill] sm:$0xff] }
 0x330   :  { %3862 = vmatpush1.bf16.msra.mxu0 %v6898_v9  ;;  %3926 = vmatpush1.bf16.msra.mxu1 %v6899_v28  ;;  %v6909_v9 = vld [vmem:[#allocation51_spill] sm:$0xff]  ;;  %v6910_v28 = vld [vmem:[#allocation52_spill] sm:$0xff] }
 0x331   :  { %3864 = vmatprep.subr.bf16.mxu0 %v6900_v20  ;;  %3928 = vmatprep.subr.bf16.mxu1 %v6901_v26  ;;  %v6911_v20 = vld [vmem:[#allocation53_spill] sm:$0xff]  ;;  %v6912_v26 = vld [vmem:[#allocation54_spill] sm:$0xff] }
 0x334   :  { %3866 = vmatpush1.bf16.msra.mxu0 %v6902_v33  ;;  %3930 = vmatpush1.bf16.msra.mxu1 %v6903_v50  ;;  %v6913_v33 = vld [vmem:[#allocation55_spill] sm:$0xff]  ;;  %v6914_v50 = vld [vmem:[#allocation56_spill] sm:$0xff] }
 0x335   :  { %3868 = vmatprep.subr.bf16.mxu0 %v6904_v36  ;;  %3932 = vmatprep.subr.bf16.mxu1 %v6905_v5  ;;  %v6915_v36 = vld [vmem:[#allocation57_spill] sm:$0xff]  ;;  %v6916_v5 = vld [vmem:[#allocation58_spill] sm:$0xff] }
 0x338   :  { %3870 = vmatpush1.bf16.msra.mxu0 %v6906_v51  ;;  %3934 = vmatpush1.bf16.msra.mxu1 %v6907_v1  ;;  %v6917_v51 = vld [vmem:[#allocation59_spill] sm:$0xff]  ;;  %v6918_v1 = vld [vmem:[#allocation60_spill] sm:$0xff] }
 0x339   :  { %3872 = vmatprep.subr.bf16.mxu0 %v6908_v59  ;;  %3936 = vmatprep.subr.bf16.mxu1 %v6909_v9  ;;  %v6919_v59 = vld [vmem:[#allocation61_spill] sm:$0xff]  ;;  %v6920_v9 = vld [vmem:[#allocation62_spill] sm:$0xff] }
 0x33c   :  { %3874 = vmatpush1.bf16.msra.mxu0 %v6910_v28  ;;  %3938 = vmatpush1.bf16.msra.mxu1 %v6911_v20  ;;  %v6921_v28 = vld [vmem:[#allocation63_spill] sm:$0xff]  ;;  %v6922_v20 = vld [vmem:[#allocation64_spill] sm:$0xff] }
 0x33d   :  { %3876 = vmatprep.subr.bf16.mxu0 %v6912_v26  ;;  %3940 = vmatprep.subr.bf16.mxu1 %v6913_v33  ;;  %v6923_v26 = vld [vmem:[#allocation65_spill] sm:$0xff]  ;;  %v6924_v33 = vld [vmem:[#allocation66_spill] sm:$0xff] }
 0x340   :  { %3878 = vmatpush1.bf16.msra.mxu0 %v6914_v50  ;;  %3942 = vmatpush1.bf16.msra.mxu1 %v6915_v36  ;;  %v6925_v50 = vld [vmem:[#allocation67_spill] sm:$0xff]  ;;  %v6926_v36 = vld [vmem:[#allocation68_spill] sm:$0xff] }
 0x341   :  { %3880 = vmatprep.subr.bf16.mxu0 %v6916_v5  ;;  %3944 = vmatprep.subr.bf16.mxu1 %v6917_v51  ;;  %v6927_v5 = vld [vmem:[#allocation69_spill] sm:$0xff]  ;;  %v6928_v51 = vld [vmem:[#allocation14_spill] sm:$0xff] }
 0x344   :  { %3882 = vmatpush1.bf16.msra.mxu0 %v6918_v1  ;;  %3946 = vmatpush1.bf16.msra.mxu1 %v6919_v59  ;;  %v6929_v1 = vld [vmem:[#allocation15_spill] sm:$0xff] }
 0x345   :  { %3884 = vmatprep.subr.bf16.mxu0 %v6920_v9  ;;  %3948 = vmatprep.subr.bf16.mxu1 %v6921_v28 }
 0x348   :  { %3886 = vmatpush1.bf16.msra.mxu0 %v6922_v20  ;;  %3950 = vmatpush1.bf16.msra.mxu1 %v6923_v26  ;;  %v6931_v26 = vld [vmem:[#allocation71_spill] sm:$0xff] }
 0x349   :  { %3888 = vmatprep.subr.bf16.mxu0 %v6924_v33  ;;  %3952 = vmatprep.subr.bf16.mxu1 %v6925_v50 }
 0x34c   :  { %3890 = vmatpush1.bf16.msra.mxu0 %v6926_v36  ;;  %3954 = vmatpush1.bf16.msra.mxu1 %v6927_v5 }
 0x34d   :  { %3956 = vmatprep.subr.bf16.mxu0 %v6928_v51  ;;  %3988 = vmatprep.subr.bf16.mxu1 %v6929_v1  ;;  %v6932_v51 = vld [vmem:[#allocation72_spill] sm:$0xff] }
 0x3c2   :  { %v1159_v59 = vpop.f32.mrb[18].mxu0  ;;  %v1230_v9 = vpop.f32.mrb[18].mxu1 }
 0x3c3   :  { %v1160_v28 = vadd.f32 %v1159_v59, %v6930_v62  ;;  %v1161_v37 = vpop.f32.mrb[19].mxu0  ;;  %v1232_v20 = vpop.f32.mrb[19].mxu1  ;;  %v1231_v17 = vadd.f32 %v1230_v9, %v5836_v2 }
 0x3c4   :  { %v1162_v54 = vadd.f32 %v1161_v37, %v6931_v26  ;;  %v1233_v53 = vadd.f32 %v1232_v20, %v6932_v51 }
 0x3c5   :  { %v3345_v27 = vmul.f32 -1.442695, %v1160_v28 }
 0x3c6   :  { %v3346_v33 = vmul.f32 -1.442695, %v1162_v54 }
 0x3c7   :  { %4989 = vpow2.f32 %v3345_v27 }
 0x3c8   :  { %4991 = vpow2.f32 %v3346_v33 }
 0x3d1   :  { %v4990_v50 = vpop.eup %4989 }
 0x3d2   :  { %v1238_v36 = vadd.f32 1.0, %v4990_v50  ;;  %v4992_v5 = vpop.eup %4991 }
 0x3d3   :  { %v1244_v18 = vadd.f32 1.0, %v4992_v5 }
 0x3d4   :  { %4993 = vrcp.f32 %v1238_v36 }
 0x3d5   :  { %4995 = vrcp.f32 %v1244_v18 }
 0x3de   :  { %v4994_v1 = vpop.eup %4993 }
 0x3df   :  { %v1247_v59 = vmul.f32 %v4994_v1, %v1233_v53  ;;  %v4996_v50 = vpop.eup %4995 }
 0x3e0   :  { %v1250_v36 = vsub.f32 1.0, %v4996_v50  ;;  %v1252_v20 = vmul.f32 %v4996_v50, %v5846_v19 }
 0x3e1   :  { %v1248_v62 = vadd.f32 %v1247_v59, %v1231_v17 }
 0x3e2   :  { %v1323_v43 = vpop.f32.mrb[4].mxu0  ;;  %v1394_v28 = vpop.f32.mrb[4].mxu1 }
 0x3e3   :  { %4997 = vtanh.f32 %v1248_v62  ;;  %v3347_v37 = vmul.f32 -1.442695, %v1323_v43  ;;  %v1325_v27 = vpop.f32.mrb[5].mxu0  ;;  %v1396_v54 = vpop.f32.mrb[5].mxu1 }
 0x3e4   :  { %v3348_v33 = vmul.f32 -1.442695, %v1325_v27 }
 0x3e5   :  { %4999 = vpow2.f32 %v3347_v37 }
 0x3e6   :  { %5001 = vpow2.f32 %v3348_v33 }
 0x3ed   :  { %v4998_v5 = vpop.eup %4997 }
 0x3ee   :  { %v1251_v26 = vmul.f32 %v4998_v5, %v1250_v36  ;;  %v6936_v5 = vld [vmem:[#allocation19_spill] sm:$0xff] }
 0x3ef   :  { %v5000_v51 = vpop.eup %4999 }
 0x3f0   :  { %v1406_v9 = vadd.f32 1.0, %v5000_v51  ;;  %v1253_v18 = vadd.f32 %v1252_v20, %v1251_v26  ;;  %v5002_v53 = vpop.eup %5001  ;;  %v6937_v20 = vld [vmem:[#allocation20_spill] sm:$0xff] }
 0x3f1   :  { %v1412_v62 = vadd.f32 1.0, %v5002_v53  ;;  %v6941_v53 = vld [vmem:[#allocation24_spill] sm:$0xff] }
 0x3f2   :  { %5003 = vrcp.f32 %v1406_v9  ;;  %v5969_v17 = vsel %vm1091_vm2, %v1253_v18, %v5846_v19  ;;  %v1255_v43 = vsel %vm1091_vm2, %v1253_v18, 0.0  ;;  %v5975_v19 = vpop.permute.xlu0 %1424  ;;  %v6938_v9 = vld [vmem:[#allocation21_spill] sm:$0xff]  ;;  %v6939_v18 = vld [vmem:[#allocation22_spill] sm:$0xff] }
 0x3f3   :  { %1492 = vmatprep.mubr.f32.mxu0 %v5969_v17  ;;  %3267 = vst [vmem:[#allocation7 + $0x8] sm:$0xff] %v1255_v43  ;;  %1563 = vmatprep.mubr.f32.mxu1 %v5969_v17  ;;  %5005 = vrcp.f32 %v1412_v62  ;;  %vm1426_vm3 = vcmp.eq.s32.totalorder %v5975_v19, 1  ;;  %v6940_v43 = vld [vmem:[#allocation23_spill] sm:$0xff]  ;;  %v6942_v62 = vld [vmem:[#allocation25_spill] sm:$0xff] }
 0x3fc   :  { %v5004_v1 = vpop.eup %5003 }
 0x3fd   :  { %v1415_v51 = vmul.f32 %v5004_v1, %v1396_v54  ;;  %v5006_v59 = vpop.eup %5005  ;;  %v6935_v54 = vld [vmem:[#allocation18_spill] sm:$0xff] }
 0x3fe   :  { %v1418_v37 = vsub.f32 1.0, %v5006_v59  ;;  %v1420_v52 = vmul.f32 %v5006_v59, %v5857_v10  ;;  %v6943_v1 = vld [vmem:[#allocation26_spill] sm:$0xff]  ;;  %v6946_v59 = vld [vmem:[#allocation29_spill] sm:$0xff] }
 0x3ff   :  { %v1416_v26 = vadd.f32 %v1415_v51, %v1394_v28  ;;  %v6934_v28 = vld [vmem:[#allocation17_spill] sm:$0xff]  ;;  %v6944_v51 = vld [vmem:[#allocation27_spill] sm:$0xff] }
 0x401   :  { %5007 = vtanh.f32 %v1416_v26  ;;  %v6945_v26 = vld [vmem:[#allocation28_spill] sm:$0xff] }
 0x40b   :  { %v5008_v27 = vpop.eup %5007 }
 0x40c   :  { %v1419_v33 = vmul.f32 %v5008_v27, %v1418_v37  ;;  %v6947_v37 = vld [vmem:[#allocation30_spill] sm:$0xff]  ;;  %v6948_v27 = vld [vmem:[#allocation31_spill] sm:$0xff] }
 0x40e   :  { %v1421_v50 = vadd.f32 %v1420_v52, %v1419_v33  ;;  %v6949_v33 = vld [vmem:[#allocation32_spill] sm:$0xff]  ;;  %v6950_v52 = vld [vmem:[#allocation33_spill] sm:$0xff] }
 0x410   :  { %v5982_v36 = vsel %vm1426_vm3, %v1421_v50, %v5857_v10  ;;  %v6933_v10 = vld [vmem:[#allocation16_spill] sm:$0xff]  ;;  %v6951_v50 = vld [vmem:[#allocation34_spill] sm:$0xff] }
 0x411   :  { %1493 = vmatmul.mubr.f32.vlgmr.msra.gmra.mrb[20].mxu0 %v5982_v36  ;;  %1564 = vmatmul.mubr.f32.vlgmr.msra.gmra.mrb[20].mxu1 %v5982_v36 }
 0x412   :  { %3958 = vmatpush1.bf16.msra.mxu0 %v5361_v48  ;;  %3990 = vmatpush1.bf16.msra.mxu1 %v5363_v49 }
 0x413   :  { %3960 = vmatprep.subr.bf16.mxu0 %v5367_v55  ;;  %3992 = vmatprep.subr.bf16.mxu1 %v5369_v56 }
 0x414   :  { %1656 = vmatprep.mubr.f32.mxu0 %v6819_v23  ;;  %1727 = vmatprep.mubr.f32.mxu1 %v6819_v23 }
 0x416   :  { %3962 = vmatpush1.bf16.msra.mxu0 %v5375_v63  ;;  %3994 = vmatpush1.bf16.msra.mxu1 %v5377_v0 }
 0x417   :  { %3964 = vmatprep.subr.bf16.mxu0 %v5386_v7  ;;  %3996 = vmatprep.subr.bf16.mxu1 %v5388_v8 }
 0x41a   :  { %3966 = vmatpush1.bf16.msra.mxu0 %v5397_v14  ;;  %3998 = vmatpush1.bf16.msra.mxu1 %v5399_v15 }
 0x41b   :  { %3968 = vmatprep.subr.bf16.mxu0 %v5405_v21  ;;  %4000 = vmatprep.subr.bf16.mxu1 %v5407_v22 }
 0x41e   :  { %3970 = vmatpush1.bf16.msra.mxu0 %v5414_v30  ;;  %4002 = vmatpush1.bf16.msra.mxu1 %v5416_v31 }
 0x41f   :  { %3972 = vmatprep.subr.bf16.mxu0 %v5425_v38  ;;  %4004 = vmatprep.subr.bf16.mxu1 %v5427_v40 }
 0x422   :  { %3974 = vmatpush1.bf16.msra.mxu0 %v5434_v46  ;;  %4006 = vmatpush1.bf16.msra.mxu1 %v5436_v47 }
 0x423   :  { %3976 = vmatprep.subr.bf16.mxu0 %v5445_v57  ;;  %4008 = vmatprep.subr.bf16.mxu1 %v5447_v58 }
 0x426   :  { %3978 = vmatpush1.bf16.msra.mxu0 %v5454_v3  ;;  %4010 = vmatpush1.bf16.msra.mxu1 %v5456_v4 }
 0x427   :  { %3980 = vmatprep.subr.bf16.mxu0 %v5465_v12  ;;  %4012 = vmatprep.subr.bf16.mxu1 %v5467_v13 }
 0x42a   :  { %3982 = vmatpush1.bf16.msra.mxu0 %v5474_v24  ;;  %4014 = vmatpush1.bf16.msra.mxu1 %v5476_v25 }
 0x42b   :  { %3984 = vmatprep.subr.bf16.mxu0 %v5485_v34  ;;  %4016 = vmatprep.subr.bf16.mxu1 %v5487_v35 }
 0x42e   :  { %3986 = vmatpush1.bf16.msra.mxu0 %v5494_v44  ;;  %4018 = vmatpush1.bf16.msra.mxu1 %v5496_v45 }
 0x42f   :  { %4020 = vmatprep.subr.bf16.mxu0 %v5505_v60  ;;  %4084 = vmatprep.subr.bf16.mxu1 %v5507_v61 }
 0x431   :  { %1657 = vmatmul.mubr.f32.vlgmr.msra.gmra.mrb[6].mxu0 %v5982_v36  ;;  %1728 = vmatmul.mubr.f32.vlgmr.msra.gmra.mrb[6].mxu1 %v5982_v36 }
 0x432   :  { %4022 = vmatpush1.bf16.msra.mxu0 %v5513_v39  ;;  %4086 = vmatpush1.bf16.msra.mxu1 %v5515_v6 }
 0x433   :  { %4024 = vmatprep.subr.bf16.mxu0 %v5519_v11  ;;  %4088 = vmatprep.subr.bf16.mxu1 %v5521_v16 }
 0x436   :  { %4026 = vmatpush1.bf16.msra.mxu0 %v5529_v29  ;;  %4090 = vmatpush1.bf16.msra.mxu1 %v5531_v32 }
 0x437   :  { %4028 = vmatprep.subr.bf16.mxu0 %v5535_v41  ;;  %4092 = vmatprep.subr.bf16.mxu1 %v5537_v42 }
 0x43a   :  { %4030 = vmatpush1.bf16.msra.mxu0 %v6933_v10  ;;  %4094 = vmatpush1.bf16.msra.mxu1 %v6934_v28 }
 0x43b   :  { %4032 = vmatprep.subr.bf16.mxu0 %v6935_v54  ;;  %4096 = vmatprep.subr.bf16.mxu1 %v6936_v5 }
 0x43e   :  { %4034 = vmatpush1.bf16.msra.mxu0 %v6937_v20  ;;  %4098 = vmatpush1.bf16.msra.mxu1 %v6938_v9 }
 0x43f   :  { %4036 = vmatprep.subr.bf16.mxu0 %v6939_v18  ;;  %4100 = vmatprep.subr.bf16.mxu1 %v6940_v43  ;;  %v6989_v43 = vld [vmem:[#allocation70_spill] sm:$0xff] }
 0x442   :  { %4038 = vmatpush1.bf16.msra.mxu0 %v6941_v53  ;;  %4102 = vmatpush1.bf16.msra.mxu1 %v6942_v62  ;;  %v6952_v53 = vld [vmem:[#allocation35_spill] sm:$0xff]  ;;  %v6953_v62 = vld [vmem:[#allocation36_spill] sm:$0xff] }
 0x443   :  { %4040 = vmatprep.subr.bf16.mxu0 %v6943_v1  ;;  %4104 = vmatprep.subr.bf16.mxu1 %v6944_v51  ;;  %v6954_v1 = vld [vmem:[#allocation37_spill] sm:$0xff]  ;;  %v6955_v51 = vld [vmem:[#allocation38_spill] sm:$0xff] }
 0x446   :  { %4042 = vmatpush1.bf16.msra.mxu0 %v6945_v26  ;;  %4106 = vmatpush1.bf16.msra.mxu1 %v6946_v59  ;;  %v6956_v26 = vld [vmem:[#allocation39_spill] sm:$0xff]  ;;  %v6957_v59 = vld [vmem:[#allocation40_spill] sm:$0xff] }
 0x447   :  { %4044 = vmatprep.subr.bf16.mxu0 %v6947_v37  ;;  %4108 = vmatprep.subr.bf16.mxu1 %v6948_v27  ;;  %v6958_v37 = vld [vmem:[#allocation41_spill] sm:$0xff]  ;;  %v6959_v27 = vld [vmem:[#allocation42_spill] sm:$0xff] }
 0x44a   :  { %4046 = vmatpush1.bf16.msra.mxu0 %v6949_v33  ;;  %4110 = vmatpush1.bf16.msra.mxu1 %v6950_v52  ;;  %v6960_v33 = vld [vmem:[#allocation43_spill] sm:$0xff]  ;;  %v6961_v52 = vld [vmem:[#allocation44_spill] sm:$0xff] }
 0x44b   :  { %4048 = vmatprep.subr.bf16.mxu0 %v6951_v50  ;;  %4112 = vmatprep.subr.bf16.mxu1 %v6952_v53  ;;  %v6962_v50 = vld [vmem:[#allocation45_spill] sm:$0xff]  ;;  %v6963_v53 = vld [vmem:[#allocation46_spill] sm:$0xff] }
 0x44e   :  { %4050 = vmatpush1.bf16.msra.mxu0 %v6953_v62  ;;  %4114 = vmatpush1.bf16.msra.mxu1 %v6954_v1  ;;  %v6964_v62 = vld [vmem:[#allocation47_spill] sm:$0xff]  ;;  %v6965_v1 = vld [vmem:[#allocation48_spill] sm:$0xff] }
 0x44f   :  { %4052 = vmatprep.subr.bf16.mxu0 %v6955_v51  ;;  %4116 = vmatprep.subr.bf16.mxu1 %v6956_v26  ;;  %v6966_v51 = vld [vmem:[#allocation49_spill] sm:$0xff]  ;;  %v6967_v26 = vld [vmem:[#allocation50_spill] sm:$0xff] }
 0x452   :  { %4054 = vmatpush1.bf16.msra.mxu0 %v6957_v59  ;;  %4118 = vmatpush1.bf16.msra.mxu1 %v6958_v37  ;;  %v6968_v59 = vld [vmem:[#allocation51_spill] sm:$0xff]  ;;  %v6969_v37 = vld [vmem:[#allocation52_spill] sm:$0xff] }
 0x453   :  { %4056 = vmatprep.subr.bf16.mxu0 %v6959_v27  ;;  %4120 = vmatprep.subr.bf16.mxu1 %v6960_v33  ;;  %v6970_v27 = vld [vmem:[#allocation53_spill] sm:$0xff]  ;;  %v6971_v33 = vld [vmem:[#allocation54_spill] sm:$0xff] }
 0x456   :  { %4058 = vmatpush1.bf16.msra.mxu0 %v6961_v52  ;;  %4122 = vmatpush1.bf16.msra.mxu1 %v6962_v50  ;;  %v6972_v52 = vld [vmem:[#allocation55_spill] sm:$0xff]  ;;  %v6973_v50 = vld [vmem:[#allocation56_spill] sm:$0xff] }
 0x457   :  { %4060 = vmatprep.subr.bf16.mxu0 %v6963_v53  ;;  %4124 = vmatprep.subr.bf16.mxu1 %v6964_v62  ;;  %v6974_v53 = vld [vmem:[#allocation57_spill] sm:$0xff]  ;;  %v6975_v62 = vld [vmem:[#allocation58_spill] sm:$0xff] }
 0x45a   :  { %4062 = vmatpush1.bf16.msra.mxu0 %v6965_v1  ;;  %4126 = vmatpush1.bf16.msra.mxu1 %v6966_v51  ;;  %v6976_v1 = vld [vmem:[#allocation59_spill] sm:$0xff]  ;;  %v6977_v51 = vld [vmem:[#allocation60_spill] sm:$0xff] }
 0x45b   :  { %4064 = vmatprep.subr.bf16.mxu0 %v6967_v26  ;;  %4128 = vmatprep.subr.bf16.mxu1 %v6968_v59  ;;  %v6978_v26 = vld [vmem:[#allocation61_spill] sm:$0xff]  ;;  %v6979_v59 = vld [vmem:[#allocation62_spill] sm:$0xff] }
 0x45e   :  { %4066 = vmatpush1.bf16.msra.mxu0 %v6969_v37  ;;  %4130 = vmatpush1.bf16.msra.mxu1 %v6970_v27  ;;  %v6980_v37 = vld [vmem:[#allocation63_spill] sm:$0xff]  ;;  %v6981_v27 = vld [vmem:[#allocation64_spill] sm:$0xff] }
 0x45f   :  { %4068 = vmatprep.subr.bf16.mxu0 %v6971_v33  ;;  %4132 = vmatprep.subr.bf16.mxu1 %v6972_v52  ;;  %v6982_v33 = vld [vmem:[#allocation65_spill] sm:$0xff]  ;;  %v6983_v52 = vld [vmem:[#allocation66_spill] sm:$0xff] }
 0x462   :  { %4070 = vmatpush1.bf16.msra.mxu0 %v6973_v50  ;;  %4134 = vmatpush1.bf16.msra.mxu1 %v6974_v53  ;;  %v6984_v50 = vld [vmem:[#allocation67_spill] sm:$0xff]  ;;  %v6985_v53 = vld [vmem:[#allocation68_spill] sm:$0xff] }
 0x463   :  { %4072 = vmatprep.subr.bf16.mxu0 %v6975_v62  ;;  %4136 = vmatprep.subr.bf16.mxu1 %v6976_v1  ;;  %v6986_v62 = vld [vmem:[#allocation69_spill] sm:$0xff]  ;;  %v6987_v1 = vld [vmem:[#allocation14_spill] sm:$0xff] }
 0x466   :  { %4074 = vmatpush1.bf16.msra.mxu0 %v6977_v51  ;;  %4138 = vmatpush1.bf16.msra.mxu1 %v6978_v26  ;;  %v6988_v51 = vld [vmem:[#allocation15_spill] sm:$0xff] }
 0x467   :  { %4076 = vmatprep.subr.bf16.mxu0 %v6979_v59  ;;  %4140 = vmatprep.subr.bf16.mxu1 %v6980_v37 }
 0x46a   :  { %4078 = vmatpush1.bf16.msra.mxu0 %v6981_v27  ;;  %4142 = vmatpush1.bf16.msra.mxu1 %v6982_v33  ;;  %v6990_v33 = vld [vmem:[#allocation71_spill] sm:$0xff] }
 0x46b   :  { %4080 = vmatprep.subr.bf16.mxu0 %v6983_v52  ;;  %4144 = vmatprep.subr.bf16.mxu1 %v6984_v50 }
 0x46e   :  { %4082 = vmatpush1.bf16.msra.mxu0 %v6985_v53  ;;  %4146 = vmatpush1.bf16.msra.mxu1 %v6986_v62 }
 0x46f   :  { %4148 = vmatprep.subr.bf16.mxu0 %v6987_v1  ;;  %4180 = vmatprep.subr.bf16.mxu1 %v6988_v51  ;;  %v6991_v1 = vld [vmem:[#allocation72_spill] sm:$0xff] }
 0x4e4   :  { %v1494_v26 = vpop.f32.mrb[20].mxu0  ;;  %v1565_v59 = vpop.f32.mrb[20].mxu1 }
 0x4e5   :  { %v1495_v37 = vadd.f32 %v1494_v26, %v6989_v43  ;;  %v1496_v18 = vpop.f32.mrb[21].mxu0  ;;  %v1567_v27 = vpop.f32.mrb[21].mxu1  ;;  %v1566_v28 = vadd.f32 %v1565_v59, %v5836_v2 }
 0x4e6   :  { %v1497_v20 = vadd.f32 %v1496_v18, %v6990_v33  ;;  %v1568_v54 = vadd.f32 %v1567_v27, %v6991_v1 }
 0x4e7   :  { %v3349_v9 = vmul.f32 -1.442695, %v1495_v37 }
 0x4e8   :  { %v3350_v52 = vmul.f32 -1.442695, %v1497_v20 }
 0x4e9   :  { %5009 = vpow2.f32 %v3349_v9 }
 0x4ea   :  { %5011 = vpow2.f32 %v3350_v52 }
 0x4f3   :  { %v5010_v50 = vpop.eup %5009 }
 0x4f4   :  { %v1573_v53 = vadd.f32 1.0, %v5010_v50  ;;  %v5012_v62 = vpop.eup %5011 }
 0x4f5   :  { %v1579_v5 = vadd.f32 1.0, %v5012_v62 }
 0x4f6   :  { %5013 = vrcp.f32 %v1573_v53 }
 0x4f7   :  { %5015 = vrcp.f32 %v1579_v5 }
 0x500   :  { %v5014_v51 = vpop.eup %5013 }
 0x501   :  { %v1582_v26 = vmul.f32 %v5014_v51, %v1568_v54  ;;  %v5016_v50 = vpop.eup %5015 }
 0x502   :  { %v1585_v53 = vsub.f32 1.0, %v5016_v50  ;;  %v1587_v27 = vmul.f32 %v5016_v50, %v5969_v17 }
 0x503   :  { %v1583_v43 = vadd.f32 %v1582_v26, %v1566_v28 }
 0x504   :  { %v1658_v10 = vpop.f32.mrb[6].mxu0  ;;  %v1729_v37 = vpop.f32.mrb[6].mxu1 }
 0x505   :  { %5017 = vtanh.f32 %v1583_v43  ;;  %v3351_v18 = vmul.f32 -1.442695, %v1658_v10  ;;  %v1660_v9 = vpop.f32.mrb[7].mxu0  ;;  %v1731_v20 = vpop.f32.mrb[7].mxu1 }
 0x506   :  { %v3352_v52 = vmul.f32 -1.442695, %v1660_v9 }
 0x507   :  { %5019 = vpow2.f32 %v3351_v18 }
 0x508   :  { %5021 = vpow2.f32 %v3352_v52 }
 0x50f   :  { %v5018_v62 = vpop.eup %5017 }
 0x510   :  { %v1586_v33 = vmul.f32 %v5018_v62, %v1585_v53  ;;  %v6995_v62 = vld [vmem:[#allocation19_spill] sm:$0xff] }
 0x511   :  { %v5020_v1 = vpop.eup %5019 }
 0x512   :  { %v1741_v59 = vadd.f32 1.0, %v5020_v1  ;;  %v1588_v5 = vadd.f32 %v1587_v27, %v1586_v33  ;;  %v5022_v54 = vpop.eup %5021  ;;  %v6996_v27 = vld [vmem:[#allocation20_spill] sm:$0xff] }
 0x513   :  { %v1747_v43 = vadd.f32 1.0, %v5022_v54  ;;  %v7000_v54 = vld [vmem:[#allocation24_spill] sm:$0xff] }
 0x514   :  { %5023 = vrcp.f32 %v1741_v59  ;;  %v6094_v28 = vsel %vm1426_vm3, %v1588_v5, %v5969_v17  ;;  %v1590_v10 = vsel %vm1426_vm3, %v1588_v5, 0.0  ;;  %v6100_v17 = vpop.permute.xlu1 %1759  ;;  %v6997_v59 = vld [vmem:[#allocation21_spill] sm:$0xff]  ;;  %v6998_v5 = vld [vmem:[#allocation22_spill] sm:$0xff] }
 0x515   :  { %1827 = vmatprep.mubr.f32.mxu0 %v6094_v28  ;;  %3268 = vst [vmem:[#allocation7 + $0x10] sm:$0xff] %v1590_v10  ;;  %1898 = vmatprep.mubr.f32.mxu1 %v6094_v28  ;;  %5025 = vrcp.f32 %v1747_v43  ;;  %vm1761_vm4 = vcmp.eq.s32.totalorder %v6100_v17, 1  ;;  %v6999_v10 = vld [vmem:[#allocation23_spill] sm:$0xff]  ;;  %v7001_v43 = vld [vmem:[#allocation25_spill] sm:$0xff] }
 0x51e   :  { %v5024_v51 = vpop.eup %5023 }
 0x51f   :  { %v1750_v1 = vmul.f32 %v5024_v51, %v1731_v20  ;;  %v5026_v26 = vpop.eup %5025  ;;  %v6994_v20 = vld [vmem:[#allocation18_spill] sm:$0xff] }
 0x520   :  { %v1753_v18 = vsub.f32 1.0, %v5026_v26  ;;  %v1755_v19 = vmul.f32 %v5026_v26, %v5982_v36  ;;  %v7002_v51 = vld [vmem:[#allocation26_spill] sm:$0xff]  ;;  %v7005_v26 = vld [vmem:[#allocation29_spill] sm:$0xff] }
 0x521   :  { %v1751_v33 = vadd.f32 %v1750_v1, %v1729_v37  ;;  %v6993_v37 = vld [vmem:[#allocation17_spill] sm:$0xff]  ;;  %v7003_v1 = vld [vmem:[#allocation27_spill] sm:$0xff] }
 0x523   :  { %5027 = vtanh.f32 %v1751_v33  ;;  %v7004_v33 = vld [vmem:[#allocation28_spill] sm:$0xff] }
 0x52d   :  { %v5028_v9 = vpop.eup %5027 }
 0x52e   :  { %v1754_v52 = vmul.f32 %v5028_v9, %v1753_v18  ;;  %v7006_v18 = vld [vmem:[#allocation30_spill] sm:$0xff]  ;;  %v7007_v9 = vld [vmem:[#allocation31_spill] sm:$0xff] }
 0x530   :  { %v1756_v50 = vadd.f32 %v1755_v19, %v1754_v52  ;;  %v7008_v52 = vld [vmem:[#allocation32_spill] sm:$0xff]  ;;  %v7009_v19 = vld [vmem:[#allocation33_spill] sm:$0xff] }
 0x532   :  { %v6107_v53 = vsel %vm1761_vm4, %v1756_v50, %v5982_v36  ;;  %v6992_v36 = vld [vmem:[#allocation16_spill] sm:$0xff]  ;;  %v7010_v50 = vld [vmem:[#allocation34_spill] sm:$0xff] }
 0x533   :  { %1828 = vmatmul.mubr.f32.vlgmr.msra.gmra.mrb[22].mxu0 %v6107_v53  ;;  %1899 = vmatmul.mubr.f32.vlgmr.msra.gmra.mrb[22].mxu1 %v6107_v53 }
 0x534   :  { %4150 = vmatpush1.bf16.msra.mxu0 %v5361_v48  ;;  %4182 = vmatpush1.bf16.msra.mxu1 %v5363_v49 }
 0x535   :  { %4152 = vmatprep.subr.bf16.mxu0 %v5367_v55  ;;  %4184 = vmatprep.subr.bf16.mxu1 %v5369_v56 }
 0x536   :  { %1991 = vmatprep.mubr.f32.mxu0 %v6819_v23  ;;  %2062 = vmatprep.mubr.f32.mxu1 %v6819_v23 }
 0x538   :  { %4154 = vmatpush1.bf16.msra.mxu0 %v5375_v63  ;;  %4186 = vmatpush1.bf16.msra.mxu1 %v5377_v0 }
 0x539   :  { %4156 = vmatprep.subr.bf16.mxu0 %v5386_v7  ;;  %4188 = vmatprep.subr.bf16.mxu1 %v5388_v8 }
 0x53c   :  { %4158 = vmatpush1.bf16.msra.mxu0 %v5397_v14  ;;  %4190 = vmatpush1.bf16.msra.mxu1 %v5399_v15 }
 0x53d   :  { %4160 = vmatprep.subr.bf16.mxu0 %v5405_v21  ;;  %4192 = vmatprep.subr.bf16.mxu1 %v5407_v22 }
 0x540   :  { %4162 = vmatpush1.bf16.msra.mxu0 %v5414_v30  ;;  %4194 = vmatpush1.bf16.msra.mxu1 %v5416_v31 }
 0x541   :  { %4164 = vmatprep.subr.bf16.mxu0 %v5425_v38  ;;  %4196 = vmatprep.subr.bf16.mxu1 %v5427_v40 }
 0x544   :  { %4166 = vmatpush1.bf16.msra.mxu0 %v5434_v46  ;;  %4198 = vmatpush1.bf16.msra.mxu1 %v5436_v47 }
 0x545   :  { %4168 = vmatprep.subr.bf16.mxu0 %v5445_v57  ;;  %4200 = vmatprep.subr.bf16.mxu1 %v5447_v58 }
 0x548   :  { %4170 = vmatpush1.bf16.msra.mxu0 %v5454_v3  ;;  %4202 = vmatpush1.bf16.msra.mxu1 %v5456_v4 }
 0x549   :  { %4172 = vmatprep.subr.bf16.mxu0 %v5465_v12  ;;  %4204 = vmatprep.subr.bf16.mxu1 %v5467_v13 }
 0x54c   :  { %4174 = vmatpush1.bf16.msra.mxu0 %v5474_v24  ;;  %4206 = vmatpush1.bf16.msra.mxu1 %v5476_v25 }
 0x54d   :  { %4176 = vmatprep.subr.bf16.mxu0 %v5485_v34  ;;  %4208 = vmatprep.subr.bf16.mxu1 %v5487_v35 }
 0x550   :  { %4178 = vmatpush1.bf16.msra.mxu0 %v5494_v44  ;;  %4210 = vmatpush1.bf16.msra.mxu1 %v5496_v45 }
 0x551   :  { %4212 = vmatprep.subr.bf16.mxu0 %v5505_v60  ;;  %4276 = vmatprep.subr.bf16.mxu1 %v5507_v61 }
 0x553   :  { %1992 = vmatmul.mubr.f32.vlgmr.msra.gmra.mrb[8].mxu0 %v6107_v53  ;;  %2063 = vmatmul.mubr.f32.vlgmr.msra.gmra.mrb[8].mxu1 %v6107_v53 }
 0x554   :  { %4214 = vmatpush1.bf16.msra.mxu0 %v5513_v39  ;;  %4278 = vmatpush1.bf16.msra.mxu1 %v5515_v6 }
 0x555   :  { %4216 = vmatprep.subr.bf16.mxu0 %v5519_v11  ;;  %4280 = vmatprep.subr.bf16.mxu1 %v5521_v16 }
 0x558   :  { %4218 = vmatpush1.bf16.msra.mxu0 %v5529_v29  ;;  %4282 = vmatpush1.bf16.msra.mxu1 %v5531_v32 }
 0x559   :  { %4220 = vmatprep.subr.bf16.mxu0 %v5535_v41  ;;  %4284 = vmatprep.subr.bf16.mxu1 %v5537_v42 }
 0x55c   :  { %4222 = vmatpush1.bf16.msra.mxu0 %v6992_v36  ;;  %4286 = vmatpush1.bf16.msra.mxu1 %v6993_v37 }
 0x55d   :  { %4224 = vmatprep.subr.bf16.mxu0 %v6994_v20  ;;  %4288 = vmatprep.subr.bf16.mxu1 %v6995_v62 }
 0x560   :  { %4226 = vmatpush1.bf16.msra.mxu0 %v6996_v27  ;;  %4290 = vmatpush1.bf16.msra.mxu1 %v6997_v59 }
 0x561   :  { %4228 = vmatprep.subr.bf16.mxu0 %v6998_v5  ;;  %4292 = vmatprep.subr.bf16.mxu1 %v6999_v10  ;;  %v7048_v10 = vld [vmem:[#allocation70_spill] sm:$0xff] }
 0x564   :  { %4230 = vmatpush1.bf16.msra.mxu0 %v7000_v54  ;;  %4294 = vmatpush1.bf16.msra.mxu1 %v7001_v43  ;;  %v7011_v54 = vld [vmem:[#allocation35_spill] sm:$0xff]  ;;  %v7012_v43 = vld [vmem:[#allocation36_spill] sm:$0xff] }
 0x565   :  { %4232 = vmatprep.subr.bf16.mxu0 %v7002_v51  ;;  %4296 = vmatprep.subr.bf16.mxu1 %v7003_v1  ;;  %v7013_v51 = vld [vmem:[#allocation37_spill] sm:$0xff]  ;;  %v7014_v1 = vld [vmem:[#allocation38_spill] sm:$0xff] }
 0x568   :  { %4234 = vmatpush1.bf16.msra.mxu0 %v7004_v33  ;;  %4298 = vmatpush1.bf16.msra.mxu1 %v7005_v26  ;;  %v7015_v33 = vld [vmem:[#allocation39_spill] sm:$0xff]  ;;  %v7016_v26 = vld [vmem:[#allocation40_spill] sm:$0xff] }
 0x569   :  { %4236 = vmatprep.subr.bf16.mxu0 %v7006_v18  ;;  %4300 = vmatprep.subr.bf16.mxu1 %v7007_v9  ;;  %v7017_v18 = vld [vmem:[#allocation41_spill] sm:$0xff]  ;;  %v7018_v9 = vld [vmem:[#allocation42_spill] sm:$0xff] }
 0x56c   :  { %4238 = vmatpush1.bf16.msra.mxu0 %v7008_v52  ;;  %4302 = vmatpush1.bf16.msra.mxu1 %v7009_v19  ;;  %v7019_v52 = vld [vmem:[#allocation43_spill] sm:$0xff]  ;;  %v7020_v19 = vld [vmem:[#allocation44_spill] sm:$0xff] }
 0x56d   :  { %4240 = vmatprep.subr.bf16.mxu0 %v7010_v50  ;;  %4304 = vmatprep.subr.bf16.mxu1 %v7011_v54  ;;  %v7021_v50 = vld [vmem:[#allocation45_spill] sm:$0xff]  ;;  %v7022_v54 = vld [vmem:[#allocation46_spill] sm:$0xff] }
 0x570   :  { %4242 = vmatpush1.bf16.msra.mxu0 %v7012_v43  ;;  %4306 = vmatpush1.bf16.msra.mxu1 %v7013_v51  ;;  %v7023_v43 = vld [vmem:[#allocation47_spill] sm:$0xff]  ;;  %v7024_v51 = vld [vmem:[#allocation48_spill] sm:$0xff] }
 0x571   :  { %4244 = vmatprep.subr.bf16.mxu0 %v7014_v1  ;;  %4308 = vmatprep.subr.bf16.mxu1 %v7015_v33  ;;  %v7025_v1 = vld [vmem:[#allocation49_spill] sm:$0xff]  ;;  %v7026_v33 = vld [vmem:[#allocation50_spill] sm:$0xff] }
 0x574   :  { %4246 = vmatpush1.bf16.msra.mxu0 %v7016_v26  ;;  %4310 = vmatpush1.bf16.msra.mxu1 %v7017_v18  ;;  %v7027_v26 = vld [vmem:[#allocation51_spill] sm:$0xff]  ;;  %v7028_v18 = vld [vmem:[#allocation52_spill] sm:$0xff] }
 0x575   :  { %4248 = vmatprep.subr.bf16.mxu0 %v7018_v9  ;;  %4312 = vmatprep.subr.bf16.mxu1 %v7019_v52  ;;  %v7029_v9 = vld [vmem:[#allocation53_spill] sm:$0xff]  ;;  %v7030_v52 = vld [vmem:[#allocation54_spill] sm:$0xff] }
 0x578   :  { %4250 = vmatpush1.bf16.msra.mxu0 %v7020_v19  ;;  %4314 = vmatpush1.bf16.msra.mxu1 %v7021_v50  ;;  %v7031_v19 = vld [vmem:[#allocation55_spill] sm:$0xff]  ;;  %v7032_v50 = vld [vmem:[#allocation56_spill] sm:$0xff] }
 0x579   :  { %4252 = vmatprep.subr.bf16.mxu0 %v7022_v54  ;;  %4316 = vmatprep.subr.bf16.mxu1 %v7023_v43  ;;  %v7033_v54 = vld [vmem:[#allocation57_spill] sm:$0xff]  ;;  %v7034_v43 = vld [vmem:[#allocation58_spill] sm:$0xff] }
 0x57c   :  { %4254 = vmatpush1.bf16.msra.mxu0 %v7024_v51  ;;  %4318 = vmatpush1.bf16.msra.mxu1 %v7025_v1  ;;  %v7035_v51 = vld [vmem:[#allocation59_spill] sm:$0xff]  ;;  %v7036_v1 = vld [vmem:[#allocation60_spill] sm:$0xff] }
 0x57d   :  { %4256 = vmatprep.subr.bf16.mxu0 %v7026_v33  ;;  %4320 = vmatprep.subr.bf16.mxu1 %v7027_v26  ;;  %v7037_v33 = vld [vmem:[#allocation61_spill] sm:$0xff]  ;;  %v7038_v26 = vld [vmem:[#allocation62_spill] sm:$0xff] }
 0x580   :  { %4258 = vmatpush1.bf16.msra.mxu0 %v7028_v18  ;;  %4322 = vmatpush1.bf16.msra.mxu1 %v7029_v9  ;;  %v7039_v18 = vld [vmem:[#allocation63_spill] sm:$0xff]  ;;  %v7040_v9 = vld [vmem:[#allocation64_spill] sm:$0xff] }
 0x581   :  { %4260 = vmatprep.subr.bf16.mxu0 %v7030_v52  ;;  %4324 = vmatprep.subr.bf16.mxu1 %v7031_v19  ;;  %v7041_v52 = vld [vmem:[#allocation65_spill] sm:$0xff]  ;;  %v7042_v19 = vld [vmem:[#allocation66_spill] sm:$0xff] }
 0x584   :  { %4262 = vmatpush1.bf16.msra.mxu0 %v7032_v50  ;;  %4326 = vmatpush1.bf16.msra.mxu1 %v7033_v54  ;;  %v7043_v50 = vld [vmem:[#allocation67_spill] sm:$0xff]  ;;  %v7044_v54 = vld [vmem:[#allocation68_spill] sm:$0xff] }
 0x585   :  { %4264 = vmatprep.subr.bf16.mxu0 %v7034_v43  ;;  %4328 = vmatprep.subr.bf16.mxu1 %v7035_v51  ;;  %v7045_v43 = vld [vmem:[#allocation69_spill] sm:$0xff]  ;;  %v7046_v51 = vld [vmem:[#allocation14_spill] sm:$0xff] }
 0x588   :  { %4266 = vmatpush1.bf16.msra.mxu0 %v7036_v1  ;;  %4330 = vmatpush1.bf16.msra.mxu1 %v7037_v33  ;;  %v7047_v1 = vld [vmem:[#allocation15_spill] sm:$0xff] }
 0x589   :  { %4268 = vmatprep.subr.bf16.mxu0 %v7038_v26  ;;  %4332 = vmatprep.subr.bf16.mxu1 %v7039_v18 }
 0x58c   :  { %4270 = vmatpush1.bf16.msra.mxu0 %v7040_v9  ;;  %4334 = vmatpush1.bf16.msra.mxu1 %v7041_v52  ;;  %v7049_v52 = vld [vmem:[#allocation71_spill] sm:$0xff] }
 0x58d   :  { %4272 = vmatprep.subr.bf16.mxu0 %v7042_v19  ;;  %4336 = vmatprep.subr.bf16.mxu1 %v7043_v50 }
 0x590   :  { %4274 = vmatpush1.bf16.msra.mxu0 %v7044_v54  ;;  %4338 = vmatpush1.bf16.msra.mxu1 %v7045_v43 }
 0x591   :  { %4340 = vmatprep.subr.bf16.mxu0 %v7046_v51  ;;  %4372 = vmatprep.subr.bf16.mxu1 %v7047_v1  ;;  %v7050_v51 = vld [vmem:[#allocation72_spill] sm:$0xff] }
 0x606   :  { %v1829_v33 = vpop.f32.mrb[22].mxu0  ;;  %v1900_v26 = vpop.f32.mrb[22].mxu1 }
 0x607   :  { %v1830_v18 = vadd.f32 %v1829_v33, %v7048_v10  ;;  %v1831_v5 = vpop.f32.mrb[23].mxu0  ;;  %v1902_v9 = vpop.f32.mrb[23].mxu1  ;;  %v1901_v37 = vadd.f32 %v1900_v26, %v5836_v2 }
 0x608   :  { %v1832_v27 = vadd.f32 %v1831_v5, %v7049_v52  ;;  %v1903_v20 = vadd.f32 %v1902_v9, %v7050_v51 }
 0x609   :  { %v3353_v59 = vmul.f32 -1.442695, %v1830_v18 }
 0x60a   :  { %v3354_v19 = vmul.f32 -1.442695, %v1832_v27 }
 0x60b   :  { %5029 = vpow2.f32 %v3353_v59 }
 0x60c   :  { %5031 = vpow2.f32 %v3354_v19 }
 0x615   :  { %v5030_v50 = vpop.eup %5029 }
 0x616   :  { %v1908_v54 = vadd.f32 1.0, %v5030_v50  ;;  %v5032_v43 = vpop.eup %5031 }
 0x617   :  { %v1914_v62 = vadd.f32 1.0, %v5032_v43 }
 0x618   :  { %5033 = vrcp.f32 %v1908_v54 }
 0x619   :  { %5035 = vrcp.f32 %v1914_v62 }
 0x622   :  { %v5034_v1 = vpop.eup %5033 }
 0x623   :  { %v1917_v33 = vmul.f32 %v5034_v1, %v1903_v20  ;;  %v5036_v50 = vpop.eup %5035 }
 0x624   :  { %v1920_v54 = vsub.f32 1.0, %v5036_v50  ;;  %v1922_v9 = vmul.f32 %v5036_v50, %v6094_v28 }
 0x625   :  { %v1918_v10 = vadd.f32 %v1917_v33, %v1901_v37 }
 0x626   :  { %v1993_v36 = vpop.f32.mrb[8].mxu0  ;;  %v2064_v18 = vpop.f32.mrb[8].mxu1 }
 0x627   :  { %5037 = vtanh.f32 %v1918_v10  ;;  %v3355_v5 = vmul.f32 -1.442695, %v1993_v36  ;;  %v1995_v59 = vpop.f32.mrb[9].mxu0  ;;  %v2066_v27 = vpop.f32.mrb[9].mxu1 }
 0x628   :  { %v3356_v19 = vmul.f32 -1.442695, %v1995_v59 }
 0x629   :  { %5039 = vpow2.f32 %v3355_v5 }
 0x62a   :  { %5041 = vpow2.f32 %v3356_v19 }
 0x631   :  { %v5038_v43 = vpop.eup %5037 }
 0x632   :  { %v1921_v52 = vmul.f32 %v5038_v43, %v1920_v54  ;;  %v7054_v43 = vld [vmem:[#allocation19_spill] sm:$0xff] }
 0x633   :  { %v5040_v51 = vpop.eup %5039 }
 0x634   :  { %v2076_v26 = vadd.f32 1.0, %v5040_v51  ;;  %v1923_v62 = vadd.f32 %v1922_v9, %v1921_v52  ;;  %v5042_v20 = vpop.eup %5041  ;;  %v7055_v9 = vld [vmem:[#allocation20_spill] sm:$0xff] }
 0x635   :  { %v2082_v10 = vadd.f32 1.0, %v5042_v20  ;;  %v7059_v20 = vld [vmem:[#allocation24_spill] sm:$0xff] }
 0x636   :  { %5043 = vrcp.f32 %v2076_v26  ;;  %v6219_v37 = vsel %vm1761_vm4, %v1923_v62, %v6094_v28  ;;  %v1925_v36 = vsel %vm1761_vm4, %v1923_v62, 0.0  ;;  %v6225_v28 = vpop.permute.xlu0 %2094  ;;  %v7056_v26 = vld [vmem:[#allocation21_spill] sm:$0xff]  ;;  %v7057_v62 = vld [vmem:[#allocation22_spill] sm:$0xff] }
 0x637   :  { %2162 = vmatprep.mubr.f32.mxu0 %v6219_v37  ;;  %3269 = vst [vmem:[#allocation7 + $0x18] sm:$0xff] %v1925_v36  ;;  %2233 = vmatprep.mubr.f32.mxu1 %v6219_v37  ;;  %5045 = vrcp.f32 %v2082_v10  ;;  %vm2096_vm5 = vcmp.eq.s32.totalorder %v6225_v28, 1  ;;  %v7058_v36 = vld [vmem:[#allocation23_spill] sm:$0xff]  ;;  %v7060_v10 = vld [vmem:[#allocation25_spill] sm:$0xff] }
 0x640   :  { %v5044_v1 = vpop.eup %5043 }
 0x641   :  { %v2085_v51 = vmul.f32 %v5044_v1, %v2066_v27  ;;  %v5046_v33 = vpop.eup %5045  ;;  %v7053_v27 = vld [vmem:[#allocation18_spill] sm:$0xff] }
 0x642   :  { %v2088_v5 = vsub.f32 1.0, %v5046_v33  ;;  %v2090_v17 = vmul.f32 %v5046_v33, %v6107_v53  ;;  %v7061_v1 = vld [vmem:[#allocation26_spill] sm:$0xff]  ;;  %v7064_v33 = vld [vmem:[#allocation29_spill] sm:$0xff] }
 0x643   :  { %v2086_v52 = vadd.f32 %v2085_v51, %v2064_v18  ;;  %v7052_v18 = vld [vmem:[#allocation17_spill] sm:$0xff]  ;;  %v7062_v51 = vld [vmem:[#allocation27_spill] sm:$0xff] }
 0x645   :  { %5047 = vtanh.f32 %v2086_v52  ;;  %v7063_v52 = vld [vmem:[#allocation28_spill] sm:$0xff] }
 0x64f   :  { %v5048_v59 = vpop.eup %5047 }
 0x650   :  { %v2089_v19 = vmul.f32 %v5048_v59, %v2088_v5  ;;  %v7065_v5 = vld [vmem:[#allocation30_spill] sm:$0xff]  ;;  %v7066_v59 = vld [vmem:[#allocation31_spill] sm:$0xff] }
 0x652   :  { %v2091_v50 = vadd.f32 %v2090_v17, %v2089_v19  ;;  %v7067_v19 = vld [vmem:[#allocation32_spill] sm:$0xff]  ;;  %v7068_v17 = vld [vmem:[#allocation33_spill] sm:$0xff] }
 0x654   :  { %v6232_v54 = vsel %vm2096_vm5, %v2091_v50, %v6107_v53  ;;  %v7051_v53 = vld [vmem:[#allocation16_spill] sm:$0xff]  ;;  %v7069_v50 = vld [vmem:[#allocation34_spill] sm:$0xff] }
 0x655   :  { %2163 = vmatmul.mubr.f32.vlgmr.msra.gmra.mrb[24].mxu0 %v6232_v54  ;;  %2234 = vmatmul.mubr.f32.vlgmr.msra.gmra.mrb[24].mxu1 %v6232_v54 }
 0x656   :  { %4342 = vmatpush1.bf16.msra.mxu0 %v5361_v48  ;;  %4374 = vmatpush1.bf16.msra.mxu1 %v5363_v49 }
 0x657   :  { %4344 = vmatprep.subr.bf16.mxu0 %v5367_v55  ;;  %4376 = vmatprep.subr.bf16.mxu1 %v5369_v56 }
 0x658   :  { %2326 = vmatprep.mubr.f32.mxu0 %v6819_v23  ;;  %2397 = vmatprep.mubr.f32.mxu1 %v6819_v23 }
 0x65a   :  { %4346 = vmatpush1.bf16.msra.mxu0 %v5375_v63  ;;  %4378 = vmatpush1.bf16.msra.mxu1 %v5377_v0 }
 0x65b   :  { %4348 = vmatprep.subr.bf16.mxu0 %v5386_v7  ;;  %4380 = vmatprep.subr.bf16.mxu1 %v5388_v8 }
 0x65e   :  { %4350 = vmatpush1.bf16.msra.mxu0 %v5397_v14  ;;  %4382 = vmatpush1.bf16.msra.mxu1 %v5399_v15 }
 0x65f   :  { %4352 = vmatprep.subr.bf16.mxu0 %v5405_v21  ;;  %4384 = vmatprep.subr.bf16.mxu1 %v5407_v22 }
 0x662   :  { %4354 = vmatpush1.bf16.msra.mxu0 %v5414_v30  ;;  %4386 = vmatpush1.bf16.msra.mxu1 %v5416_v31 }
 0x663   :  { %4356 = vmatprep.subr.bf16.mxu0 %v5425_v38  ;;  %4388 = vmatprep.subr.bf16.mxu1 %v5427_v40 }
 0x666   :  { %4358 = vmatpush1.bf16.msra.mxu0 %v5434_v46  ;;  %4390 = vmatpush1.bf16.msra.mxu1 %v5436_v47 }
 0x667   :  { %4360 = vmatprep.subr.bf16.mxu0 %v5445_v57  ;;  %4392 = vmatprep.subr.bf16.mxu1 %v5447_v58 }
 0x66a   :  { %4362 = vmatpush1.bf16.msra.mxu0 %v5454_v3  ;;  %4394 = vmatpush1.bf16.msra.mxu1 %v5456_v4 }
 0x66b   :  { %4364 = vmatprep.subr.bf16.mxu0 %v5465_v12  ;;  %4396 = vmatprep.subr.bf16.mxu1 %v5467_v13 }
 0x66e   :  { %4366 = vmatpush1.bf16.msra.mxu0 %v5474_v24  ;;  %4398 = vmatpush1.bf16.msra.mxu1 %v5476_v25 }
 0x66f   :  { %4368 = vmatprep.subr.bf16.mxu0 %v5485_v34  ;;  %4400 = vmatprep.subr.bf16.mxu1 %v5487_v35 }
 0x672   :  { %4370 = vmatpush1.bf16.msra.mxu0 %v5494_v44  ;;  %4402 = vmatpush1.bf16.msra.mxu1 %v5496_v45 }
 0x673   :  { %4404 = vmatprep.subr.bf16.mxu0 %v5505_v60  ;;  %4468 = vmatprep.subr.bf16.mxu1 %v5507_v61 }
 0x675   :  { %2327 = vmatmul.mubr.f32.vlgmr.msra.gmra.mrb[10].mxu0 %v6232_v54  ;;  %2398 = vmatmul.mubr.f32.vlgmr.msra.gmra.mrb[10].mxu1 %v6232_v54 }
 0x676   :  { %4406 = vmatpush1.bf16.msra.mxu0 %v5513_v39  ;;  %4470 = vmatpush1.bf16.msra.mxu1 %v5515_v6 }
 0x677   :  { %4408 = vmatprep.subr.bf16.mxu0 %v5519_v11  ;;  %4472 = vmatprep.subr.bf16.mxu1 %v5521_v16 }
 0x67a   :  { %4410 = vmatpush1.bf16.msra.mxu0 %v5529_v29  ;;  %4474 = vmatpush1.bf16.msra.mxu1 %v5531_v32 }
 0x67b   :  { %4412 = vmatprep.subr.bf16.mxu0 %v5535_v41  ;;  %4476 = vmatprep.subr.bf16.mxu1 %v5537_v42 }
 0x67e   :  { %4414 = vmatpush1.bf16.msra.mxu0 %v7051_v53  ;;  %4478 = vmatpush1.bf16.msra.mxu1 %v7052_v18 }
 0x67f   :  { %4416 = vmatprep.subr.bf16.mxu0 %v7053_v27  ;;  %4480 = vmatprep.subr.bf16.mxu1 %v7054_v43 }
 0x682   :  { %4418 = vmatpush1.bf16.msra.mxu0 %v7055_v9  ;;  %4482 = vmatpush1.bf16.msra.mxu1 %v7056_v26 }
 0x683   :  { %4420 = vmatprep.subr.bf16.mxu0 %v7057_v62  ;;  %4484 = vmatprep.subr.bf16.mxu1 %v7058_v36  ;;  %v7107_v36 = vld [vmem:[#allocation70_spill] sm:$0xff] }
 0x686   :  { %4422 = vmatpush1.bf16.msra.mxu0 %v7059_v20  ;;  %4486 = vmatpush1.bf16.msra.mxu1 %v7060_v10  ;;  %v7070_v20 = vld [vmem:[#allocation35_spill] sm:$0xff]  ;;  %v7071_v10 = vld [vmem:[#allocation36_spill] sm:$0xff] }
 0x687   :  { %4424 = vmatprep.subr.bf16.mxu0 %v7061_v1  ;;  %4488 = vmatprep.subr.bf16.mxu1 %v7062_v51  ;;  %v7072_v1 = vld [vmem:[#allocation37_spill] sm:$0xff]  ;;  %v7073_v51 = vld [vmem:[#allocation38_spill] sm:$0xff] }
 0x68a   :  { %4426 = vmatpush1.bf16.msra.mxu0 %v7063_v52  ;;  %4490 = vmatpush1.bf16.msra.mxu1 %v7064_v33  ;;  %v7074_v52 = vld [vmem:[#allocation39_spill] sm:$0xff]  ;;  %v7075_v33 = vld [vmem:[#allocation40_spill] sm:$0xff] }
 0x68b   :  { %4428 = vmatprep.subr.bf16.mxu0 %v7065_v5  ;;  %4492 = vmatprep.subr.bf16.mxu1 %v7066_v59  ;;  %v7076_v5 = vld [vmem:[#allocation41_spill] sm:$0xff]  ;;  %v7077_v59 = vld [vmem:[#allocation42_spill] sm:$0xff] }
 0x68e   :  { %4430 = vmatpush1.bf16.msra.mxu0 %v7067_v19  ;;  %4494 = vmatpush1.bf16.msra.mxu1 %v7068_v17  ;;  %v7078_v19 = vld [vmem:[#allocation43_spill] sm:$0xff]  ;;  %v7079_v17 = vld [vmem:[#allocation44_spill] sm:$0xff] }
 0x68f   :  { %4432 = vmatprep.subr.bf16.mxu0 %v7069_v50  ;;  %4496 = vmatprep.subr.bf16.mxu1 %v7070_v20  ;;  %v7080_v50 = vld [vmem:[#allocation45_spill] sm:$0xff]  ;;  %v7081_v20 = vld [vmem:[#allocation46_spill] sm:$0xff] }
 0x692   :  { %4434 = vmatpush1.bf16.msra.mxu0 %v7071_v10  ;;  %4498 = vmatpush1.bf16.msra.mxu1 %v7072_v1  ;;  %v7082_v10 = vld [vmem:[#allocation47_spill] sm:$0xff]  ;;  %v7083_v1 = vld [vmem:[#allocation48_spill] sm:$0xff] }
 0x693   :  { %4436 = vmatprep.subr.bf16.mxu0 %v7073_v51  ;;  %4500 = vmatprep.subr.bf16.mxu1 %v7074_v52  ;;  %v7084_v51 = vld [vmem:[#allocation49_spill] sm:$0xff]  ;;  %v7085_v52 = vld [vmem:[#allocation50_spill] sm:$0xff] }
 0x696   :  { %4438 = vmatpush1.bf16.msra.mxu0 %v7075_v33  ;;  %4502 = vmatpush1.bf16.msra.mxu1 %v7076_v5  ;;  %v7086_v33 = vld [vmem:[#allocation51_spill] sm:$0xff]  ;;  %v7087_v5 = vld [vmem:[#allocation52_spill] sm:$0xff] }
 0x697   :  { %4440 = vmatprep.subr.bf16.mxu0 %v7077_v59  ;;  %4504 = vmatprep.subr.bf16.mxu1 %v7078_v19  ;;  %v7088_v59 = vld [vmem:[#allocation53_spill] sm:$0xff]  ;;  %v7089_v19 = vld [vmem:[#allocation54_spill] sm:$0xff] }
 0x69a   :  { %4442 = vmatpush1.bf16.msra.mxu0 %v7079_v17  ;;  %4506 = vmatpush1.bf16.msra.mxu1 %v7080_v50  ;;  %v7090_v17 = vld [vmem:[#allocation55_spill] sm:$0xff]  ;;  %v7091_v50 = vld [vmem:[#allocation56_spill] sm:$0xff] }
 0x69b   :  { %4444 = vmatprep.subr.bf16.mxu0 %v7081_v20  ;;  %4508 = vmatprep.subr.bf16.mxu1 %v7082_v10  ;;  %v7092_v20 = vld [vmem:[#allocation57_spill] sm:$0xff]  ;;  %v7093_v10 = vld [vmem:[#allocation58_spill] sm:$0xff] }
 0x69e   :  { %4446 = vmatpush1.bf16.msra.mxu0 %v7083_v1  ;;  %4510 = vmatpush1.bf16.msra.mxu1 %v7084_v51  ;;  %v7094_v1 = vld [vmem:[#allocation59_spill] sm:$0xff]  ;;  %v7095_v51 = vld [vmem:[#allocation60_spill] sm:$0xff] }
 0x69f   :  { %4448 = vmatprep.subr.bf16.mxu0 %v7085_v52  ;;  %4512 = vmatprep.subr.bf16.mxu1 %v7086_v33  ;;  %v7096_v52 = vld [vmem:[#allocation61_spill] sm:$0xff]  ;;  %v7097_v33 = vld [vmem:[#allocation62_spill] sm:$0xff] }
 0x6a2   :  { %4450 = vmatpush1.bf16.msra.mxu0 %v7087_v5  ;;  %4514 = vmatpush1.bf16.msra.mxu1 %v7088_v59  ;;  %v7098_v5 = vld [vmem:[#allocation63_spill] sm:$0xff]  ;;  %v7099_v59 = vld [vmem:[#allocation64_spill] sm:$0xff] }
 0x6a3   :  { %4452 = vmatprep.subr.bf16.mxu0 %v7089_v19  ;;  %4516 = vmatprep.subr.bf16.mxu1 %v7090_v17  ;;  %v7100_v19 = vld [vmem:[#allocation65_spill] sm:$0xff]  ;;  %v7101_v17 = vld [vmem:[#allocation66_spill] sm:$0xff] }
 0x6a6   :  { %4454 = vmatpush1.bf16.msra.mxu0 %v7091_v50  ;;  %4518 = vmatpush1.bf16.msra.mxu1 %v7092_v20  ;;  %v7102_v50 = vld [vmem:[#allocation67_spill] sm:$0xff]  ;;  %v7103_v20 = vld [vmem:[#allocation68_spill] sm:$0xff] }
 0x6a7   :  { %4456 = vmatprep.subr.bf16.mxu0 %v7093_v10  ;;  %4520 = vmatprep.subr.bf16.mxu1 %v7094_v1  ;;  %v7104_v10 = vld [vmem:[#allocation69_spill] sm:$0xff]  ;;  %v7105_v1 = vld [vmem:[#allocation14_spill] sm:$0xff] }
 0x6aa   :  { %4458 = vmatpush1.bf16.msra.mxu0 %v7095_v51  ;;  %4522 = vmatpush1.bf16.msra.mxu1 %v7096_v52  ;;  %v7106_v51 = vld [vmem:[#allocation15_spill] sm:$0xff] }
 0x6ab   :  { %4460 = vmatprep.subr.bf16.mxu0 %v7097_v33  ;;  %4524 = vmatprep.subr.bf16.mxu1 %v7098_v5 }
 0x6ae   :  { %4462 = vmatpush1.bf16.msra.mxu0 %v7099_v59  ;;  %4526 = vmatpush1.bf16.msra.mxu1 %v7100_v19  ;;  %v7108_v19 = vld [vmem:[#allocation71_spill] sm:$0xff] }
 0x6af   :  { %4464 = vmatprep.subr.bf16.mxu0 %v7101_v17  ;;  %4528 = vmatprep.subr.bf16.mxu1 %v7102_v50 }
 0x6b2   :  { %4466 = vmatpush1.bf16.msra.mxu0 %v7103_v20  ;;  %4530 = vmatpush1.bf16.msra.mxu1 %v7104_v10 }
 0x6b3   :  { %4532 = vmatprep.subr.bf16.mxu0 %v7105_v1  ;;  %4564 = vmatprep.subr.bf16.mxu1 %v7106_v51  ;;  %v7109_v1 = vld [vmem:[#allocation72_spill] sm:$0xff] }
 0x728   :  { %v2164_v52 = vpop.f32.mrb[24].mxu0  ;;  %v2235_v33 = vpop.f32.mrb[24].mxu1 }
 0x729   :  { %v2165_v5 = vadd.f32 %v2164_v52, %v7107_v36  ;;  %v2166_v62 = vpop.f32.mrb[25].mxu0  ;;  %v2237_v59 = vpop.f32.mrb[25].mxu1  ;;  %v2236_v18 = vadd.f32 %v2235_v33, %v5836_v2 }
 0x72a   :  { %v2167_v9 = vadd.f32 %v2166_v62, %v7108_v19  ;;  %v2238_v27 = vadd.f32 %v2237_v59, %v7109_v1 }
 0x72b   :  { %v3357_v26 = vmul.f32 -1.442695, %v2165_v5 }
 0x72c   :  { %v3358_v17 = vmul.f32 -1.442695, %v2167_v9 }
 0x72d   :  { %5049 = vpow2.f32 %v3357_v26 }
 0x72e   :  { %5051 = vpow2.f32 %v3358_v17 }
 0x737   :  { %v5050_v50 = vpop.eup %5049 }
 0x738   :  { %v2243_v20 = vadd.f32 1.0, %v5050_v50  ;;  %v5052_v10 = vpop.eup %5051 }
 0x739   :  { %v2249_v43 = vadd.f32 1.0, %v5052_v10 }
 0x73a   :  { %5053 = vrcp.f32 %v2243_v20 }
 0x73b   :  { %5055 = vrcp.f32 %v2249_v43 }
 0x744   :  { %v5054_v51 = vpop.eup %5053 }
 0x745   :  { %v2252_v52 = vmul.f32 %v5054_v51, %v2238_v27  ;;  %v5056_v50 = vpop.eup %5055 }
 0x746   :  { %v2255_v20 = vsub.f32 1.0, %v5056_v50  ;;  %v2257_v59 = vmul.f32 %v5056_v50, %v6219_v37 }
 0x747   :  { %v2253_v36 = vadd.f32 %v2252_v52, %v2236_v18 }
 0x748   :  { %v2328_v53 = vpop.f32.mrb[10].mxu0  ;;  %v2399_v5 = vpop.f32.mrb[10].mxu1 }
 0x749   :  { %5057 = vtanh.f32 %v2253_v36  ;;  %v3359_v62 = vmul.f32 -1.442695, %v2328_v53  ;;  %v2330_v26 = vpop.f32.mrb[11].mxu0  ;;  %v2401_v9 = vpop.f32.mrb[11].mxu1 }
 0x74a   :  { %v3360_v17 = vmul.f32 -1.442695, %v2330_v26 }
 0x74b   :  { %5059 = vpow2.f32 %v3359_v62 }
 0x74c   :  { %5061 = vpow2.f32 %v3360_v17 }
 0x753   :  { %v5058_v10 = vpop.eup %5057 }
 0x754   :  { %v2256_v19 = vmul.f32 %v5058_v10, %v2255_v20  ;;  %v7113_v10 = vld [vmem:[#allocation19_spill] sm:$0xff] }
 0x755   :  { %v5060_v1 = vpop.eup %5059 }
 0x756   :  { %v2411_v33 = vadd.f32 1.0, %v5060_v1  ;;  %v2258_v43 = vadd.f32 %v2257_v59, %v2256_v19  ;;  %v5062_v27 = vpop.eup %5061  ;;  %v7114_v59 = vld [vmem:[#allocation20_spill] sm:$0xff] }
 0x757   :  { %v2417_v36 = vadd.f32 1.0, %v5062_v27  ;;  %v7118_v27 = vld [vmem:[#allocation24_spill] sm:$0xff] }
 0x758   :  { %5063 = vrcp.f32 %v2411_v33  ;;  %v6344_v18 = vsel %vm2096_vm5, %v2258_v43, %v6219_v37  ;;  %v2260_v53 = vsel %vm2096_vm5, %v2258_v43, 0.0  ;;  %v6350_v37 = vpop.permute.xlu1 %2429  ;;  %v7115_v33 = vld [vmem:[#allocation21_spill] sm:$0xff]  ;;  %v7116_v43 = vld [vmem:[#allocation22_spill] sm:$0xff] }
 0x759   :  { %2497 = vmatprep.mubr.f32.mxu0 %v6344_v18  ;;  %3270 = vst [vmem:[#allocation7 + $0x20] sm:$0xff] %v2260_v53  ;;  %2568 = vmatprep.mubr.f32.mxu1 %v6344_v18  ;;  %5065 = vrcp.f32 %v2417_v36  ;;  %vm2431_vm6 = vcmp.eq.s32.totalorder %v6350_v37, 1  ;;  %v7117_v53 = vld [vmem:[#allocation23_spill] sm:$0xff]  ;;  %v7119_v36 = vld [vmem:[#allocation25_spill] sm:$0xff] }
 0x762   :  { %v5064_v51 = vpop.eup %5063 }
 0x763   :  { %v2420_v1 = vmul.f32 %v5064_v51, %v2401_v9  ;;  %v5066_v52 = vpop.eup %5065  ;;  %v7112_v9 = vld [vmem:[#allocation18_spill] sm:$0xff] }
 0x764   :  { %v2423_v62 = vsub.f32 1.0, %v5066_v52  ;;  %v2425_v28 = vmul.f32 %v5066_v52, %v6232_v54  ;;  %v7120_v51 = vld [vmem:[#allocation26_spill] sm:$0xff]  ;;  %v7123_v52 = vld [vmem:[#allocation29_spill] sm:$0xff] }
 0x765   :  { %v2421_v19 = vadd.f32 %v2420_v1, %v2399_v5  ;;  %v7111_v5 = vld [vmem:[#allocation17_spill] sm:$0xff]  ;;  %v7121_v1 = vld [vmem:[#allocation27_spill] sm:$0xff] }
 0x767   :  { %5067 = vtanh.f32 %v2421_v19  ;;  %v7122_v19 = vld [vmem:[#allocation28_spill] sm:$0xff] }
 0x771   :  { %v5068_v26 = vpop.eup %5067 }
 0x772   :  { %v2424_v17 = vmul.f32 %v5068_v26, %v2423_v62  ;;  %v7124_v62 = vld [vmem:[#allocation30_spill] sm:$0xff]  ;;  %v7125_v26 = vld [vmem:[#allocation31_spill] sm:$0xff] }
 0x774   :  { %v2426_v50 = vadd.f32 %v2425_v28, %v2424_v17  ;;  %v7126_v17 = vld [vmem:[#allocation32_spill] sm:$0xff]  ;;  %v7127_v28 = vld [vmem:[#allocation33_spill] sm:$0xff] }
 0x776   :  { %v6357_v20 = vsel %vm2431_vm6, %v2426_v50, %v6232_v54  ;;  %v7110_v54 = vld [vmem:[#allocation16_spill] sm:$0xff]  ;;  %v7128_v50 = vld [vmem:[#allocation34_spill] sm:$0xff] }
 0x777   :  { %2498 = vmatmul.mubr.f32.vlgmr.msra.gmra.mrb[26].mxu0 %v6357_v20  ;;  %2569 = vmatmul.mubr.f32.vlgmr.msra.gmra.mrb[26].mxu1 %v6357_v20 }
 0x778   :  { %4534 = vmatpush1.bf16.msra.mxu0 %v5361_v48  ;;  %4566 = vmatpush1.bf16.msra.mxu1 %v5363_v49 }
 0x779   :  { %4536 = vmatprep.subr.bf16.mxu0 %v5367_v55  ;;  %4568 = vmatprep.subr.bf16.mxu1 %v5369_v56 }
 0x77a   :  { %2661 = vmatprep.mubr.f32.mxu0 %v6819_v23  ;;  %2732 = vmatprep.mubr.f32.mxu1 %v6819_v23 }
 0x77c   :  { %4538 = vmatpush1.bf16.msra.mxu0 %v5375_v63  ;;  %4570 = vmatpush1.bf16.msra.mxu1 %v5377_v0 }
 0x77d   :  { %4540 = vmatprep.subr.bf16.mxu0 %v5386_v7  ;;  %4572 = vmatprep.subr.bf16.mxu1 %v5388_v8 }
 0x780   :  { %4542 = vmatpush1.bf16.msra.mxu0 %v5397_v14  ;;  %4574 = vmatpush1.bf16.msra.mxu1 %v5399_v15 }
 0x781   :  { %4544 = vmatprep.subr.bf16.mxu0 %v5405_v21  ;;  %4576 = vmatprep.subr.bf16.mxu1 %v5407_v22 }
 0x784   :  { %4546 = vmatpush1.bf16.msra.mxu0 %v5414_v30  ;;  %4578 = vmatpush1.bf16.msra.mxu1 %v5416_v31 }
 0x785   :  { %4548 = vmatprep.subr.bf16.mxu0 %v5425_v38  ;;  %4580 = vmatprep.subr.bf16.mxu1 %v5427_v40 }
 0x788   :  { %4550 = vmatpush1.bf16.msra.mxu0 %v5434_v46  ;;  %4582 = vmatpush1.bf16.msra.mxu1 %v5436_v47 }
 0x789   :  { %4552 = vmatprep.subr.bf16.mxu0 %v5445_v57  ;;  %4584 = vmatprep.subr.bf16.mxu1 %v5447_v58 }
 0x78c   :  { %4554 = vmatpush1.bf16.msra.mxu0 %v5454_v3  ;;  %4586 = vmatpush1.bf16.msra.mxu1 %v5456_v4 }
 0x78d   :  { %4556 = vmatprep.subr.bf16.mxu0 %v5465_v12  ;;  %4588 = vmatprep.subr.bf16.mxu1 %v5467_v13 }
 0x790   :  { %4558 = vmatpush1.bf16.msra.mxu0 %v5474_v24  ;;  %4590 = vmatpush1.bf16.msra.mxu1 %v5476_v25 }
 0x791   :  { %4560 = vmatprep.subr.bf16.mxu0 %v5485_v34  ;;  %4592 = vmatprep.subr.bf16.mxu1 %v5487_v35 }
 0x794   :  { %4562 = vmatpush1.bf16.msra.mxu0 %v5494_v44  ;;  %4594 = vmatpush1.bf16.msra.mxu1 %v5496_v45 }
 0x795   :  { %4596 = vmatprep.subr.bf16.mxu0 %v5505_v60  ;;  %4660 = vmatprep.subr.bf16.mxu1 %v5507_v61 }
 0x797   :  { %2662 = vmatmul.mubr.f32.vlgmr.msra.gmra.mrb[12].mxu0 %v6357_v20  ;;  %2733 = vmatmul.mubr.f32.vlgmr.msra.gmra.mrb[12].mxu1 %v6357_v20 }
 0x798   :  { %4598 = vmatpush1.bf16.msra.mxu0 %v5513_v39  ;;  %4662 = vmatpush1.bf16.msra.mxu1 %v5515_v6 }
 0x799   :  { %4600 = vmatprep.subr.bf16.mxu0 %v5519_v11  ;;  %4664 = vmatprep.subr.bf16.mxu1 %v5521_v16 }
 0x79c   :  { %4602 = vmatpush1.bf16.msra.mxu0 %v5529_v29  ;;  %4666 = vmatpush1.bf16.msra.mxu1 %v5531_v32 }
 0x79d   :  { %4604 = vmatprep.subr.bf16.mxu0 %v5535_v41  ;;  %4668 = vmatprep.subr.bf16.mxu1 %v5537_v42 }
 0x7a0   :  { %4606 = vmatpush1.bf16.msra.mxu0 %v7110_v54  ;;  %4670 = vmatpush1.bf16.msra.mxu1 %v7111_v5 }
 0x7a1   :  { %4608 = vmatprep.subr.bf16.mxu0 %v7112_v9  ;;  %4672 = vmatprep.subr.bf16.mxu1 %v7113_v10 }
 0x7a4   :  { %4610 = vmatpush1.bf16.msra.mxu0 %v7114_v59  ;;  %4674 = vmatpush1.bf16.msra.mxu1 %v7115_v33 }
 0x7a5   :  { %4612 = vmatprep.subr.bf16.mxu0 %v7116_v43  ;;  %4676 = vmatprep.subr.bf16.mxu1 %v7117_v53  ;;  %v7166_v53 = vld [vmem:[#allocation70_spill] sm:$0xff] }
 0x7a8   :  { %4614 = vmatpush1.bf16.msra.mxu0 %v7118_v27  ;;  %4678 = vmatpush1.bf16.msra.mxu1 %v7119_v36  ;;  %v7129_v27 = vld [vmem:[#allocation35_spill] sm:$0xff]  ;;  %v7130_v36 = vld [vmem:[#allocation36_spill] sm:$0xff] }
 0x7a9   :  { %4616 = vmatprep.subr.bf16.mxu0 %v7120_v51  ;;  %4680 = vmatprep.subr.bf16.mxu1 %v7121_v1  ;;  %v7131_v51 = vld [vmem:[#allocation37_spill] sm:$0xff]  ;;  %v7132_v1 = vld [vmem:[#allocation38_spill] sm:$0xff] }
 0x7ac   :  { %4618 = vmatpush1.bf16.msra.mxu0 %v7122_v19  ;;  %4682 = vmatpush1.bf16.msra.mxu1 %v7123_v52  ;;  %v7133_v19 = vld [vmem:[#allocation39_spill] sm:$0xff]  ;;  %v7134_v52 = vld [vmem:[#allocation40_spill] sm:$0xff] }
 0x7ad   :  { %4620 = vmatprep.subr.bf16.mxu0 %v7124_v62  ;;  %4684 = vmatprep.subr.bf16.mxu1 %v7125_v26  ;;  %v7135_v62 = vld [vmem:[#allocation41_spill] sm:$0xff]  ;;  %v7136_v26 = vld [vmem:[#allocation42_spill] sm:$0xff] }
 0x7b0   :  { %4622 = vmatpush1.bf16.msra.mxu0 %v7126_v17  ;;  %4686 = vmatpush1.bf16.msra.mxu1 %v7127_v28  ;;  %v7137_v17 = vld [vmem:[#allocation43_spill] sm:$0xff]  ;;  %v7138_v28 = vld [vmem:[#allocation44_spill] sm:$0xff] }
 0x7b1   :  { %4624 = vmatprep.subr.bf16.mxu0 %v7128_v50  ;;  %4688 = vmatprep.subr.bf16.mxu1 %v7129_v27  ;;  %v7139_v50 = vld [vmem:[#allocation45_spill] sm:$0xff]  ;;  %v7140_v27 = vld [vmem:[#allocation46_spill] sm:$0xff] }
 0x7b4   :  { %4626 = vmatpush1.bf16.msra.mxu0 %v7130_v36  ;;  %4690 = vmatpush1.bf16.msra.mxu1 %v7131_v51  ;;  %v7141_v36 = vld [vmem:[#allocation47_spill] sm:$0xff]  ;;  %v7142_v51 = vld [vmem:[#allocation48_spill] sm:$0xff] }
 0x7b5   :  { %4628 = vmatprep.subr.bf16.mxu0 %v7132_v1  ;;  %4692 = vmatprep.subr.bf16.mxu1 %v7133_v19  ;;  %v7143_v1 = vld [vmem:[#allocation49_spill] sm:$0xff]  ;;  %v7144_v19 = vld [vmem:[#allocation50_spill] sm:$0xff] }
 0x7b8   :  { %4630 = vmatpush1.bf16.msra.mxu0 %v7134_v52  ;;  %4694 = vmatpush1.bf16.msra.mxu1 %v7135_v62  ;;  %v7145_v52 = vld [vmem:[#allocation51_spill] sm:$0xff]  ;;  %v7146_v62 = vld [vmem:[#allocation52_spill] sm:$0xff] }
 0x7b9   :  { %4632 = vmatprep.subr.bf16.mxu0 %v7136_v26  ;;  %4696 = vmatprep.subr.bf16.mxu1 %v7137_v17  ;;  %v7147_v26 = vld [vmem:[#allocation53_spill] sm:$0xff]  ;;  %v7148_v17 = vld [vmem:[#allocation54_spill] sm:$0xff] }
 0x7bc   :  { %4634 = vmatpush1.bf16.msra.mxu0 %v7138_v28  ;;  %4698 = vmatpush1.bf16.msra.mxu1 %v7139_v50  ;;  %v7149_v28 = vld [vmem:[#allocation55_spill] sm:$0xff]  ;;  %v7150_v50 = vld [vmem:[#allocation56_spill] sm:$0xff] }
 0x7bd   :  { %4636 = vmatprep.subr.bf16.mxu0 %v7140_v27  ;;  %4700 = vmatprep.subr.bf16.mxu1 %v7141_v36  ;;  %v7151_v27 = vld [vmem:[#allocation57_spill] sm:$0xff]  ;;  %v7152_v36 = vld [vmem:[#allocation58_spill] sm:$0xff] }
 0x7c0   :  { %4638 = vmatpush1.bf16.msra.mxu0 %v7142_v51  ;;  %4702 = vmatpush1.bf16.msra.mxu1 %v7143_v1  ;;  %v7153_v51 = vld [vmem:[#allocation59_spill] sm:$0xff]  ;;  %v7154_v1 = vld [vmem:[#allocation60_spill] sm:$0xff] }
 0x7c1   :  { %4640 = vmatprep.subr.bf16.mxu0 %v7144_v19  ;;  %4704 = vmatprep.subr.bf16.mxu1 %v7145_v52  ;;  %v7155_v19 = vld [vmem:[#allocation61_spill] sm:$0xff]  ;;  %v7156_v52 = vld [vmem:[#allocation62_spill] sm:$0xff] }
 0x7c4   :  { %4642 = vmatpush1.bf16.msra.mxu0 %v7146_v62  ;;  %4706 = vmatpush1.bf16.msra.mxu1 %v7147_v26  ;;  %v7157_v62 = vld [vmem:[#allocation63_spill] sm:$0xff]  ;;  %v7158_v26 = vld [vmem:[#allocation64_spill] sm:$0xff] }
 0x7c5   :  { %4644 = vmatprep.subr.bf16.mxu0 %v7148_v17  ;;  %4708 = vmatprep.subr.bf16.mxu1 %v7149_v28  ;;  %v7159_v17 = vld [vmem:[#allocation65_spill] sm:$0xff]  ;;  %v7160_v28 = vld [vmem:[#allocation66_spill] sm:$0xff] }
 0x7c8   :  { %4646 = vmatpush1.bf16.msra.mxu0 %v7150_v50  ;;  %4710 = vmatpush1.bf16.msra.mxu1 %v7151_v27  ;;  %v7161_v50 = vld [vmem:[#allocation67_spill] sm:$0xff]  ;;  %v7162_v27 = vld [vmem:[#allocation68_spill] sm:$0xff] }
 0x7c9   :  { %4648 = vmatprep.subr.bf16.mxu0 %v7152_v36  ;;  %4712 = vmatprep.subr.bf16.mxu1 %v7153_v51  ;;  %v7163_v36 = vld [vmem:[#allocation69_spill] sm:$0xff]  ;;  %v7164_v51 = vld [vmem:[#allocation14_spill] sm:$0xff] }
 0x7cc   :  { %4650 = vmatpush1.bf16.msra.mxu0 %v7154_v1  ;;  %4714 = vmatpush1.bf16.msra.mxu1 %v7155_v19  ;;  %v7165_v1 = vld [vmem:[#allocation15_spill] sm:$0xff] }
 0x7cd   :  { %4652 = vmatprep.subr.bf16.mxu0 %v7156_v52  ;;  %4716 = vmatprep.subr.bf16.mxu1 %v7157_v62 }
 0x7d0   :  { %4654 = vmatpush1.bf16.msra.mxu0 %v7158_v26  ;;  %4718 = vmatpush1.bf16.msra.mxu1 %v7159_v17  ;;  %v7167_v17 = vld [vmem:[#allocation71_spill] sm:$0xff] }
 0x7d1   :  { %4656 = vmatprep.subr.bf16.mxu0 %v7160_v28  ;;  %4720 = vmatprep.subr.bf16.mxu1 %v7161_v50 }
 0x7d4   :  { %4658 = vmatpush1.bf16.msra.mxu0 %v7162_v27  ;;  %4722 = vmatpush1.bf16.msra.mxu1 %v7163_v36 }
 0x7d5   :  { %4724 = vmatprep.subr.bf16.mxu0 %v7164_v51  ;;  %4756 = vmatprep.subr.bf16.mxu1 %v7165_v1  ;;  %v7168_v51 = vld [vmem:[#allocation72_spill] sm:$0xff] }
 0x84a   :  { %v2499_v19 = vpop.f32.mrb[26].mxu0  ;;  %v2570_v52 = vpop.f32.mrb[26].mxu1 }
 0x84b   :  { %v2500_v62 = vadd.f32 %v2499_v19, %v7166_v53  ;;  %v2501_v43 = vpop.f32.mrb[27].mxu0  ;;  %v2572_v26 = vpop.f32.mrb[27].mxu1  ;;  %v2571_v5 = vadd.f32 %v2570_v52, %v5836_v2 }
 0x84c   :  { %v2502_v59 = vadd.f32 %v2501_v43, %v7167_v17  ;;  %v2573_v9 = vadd.f32 %v2572_v26, %v7168_v51 }
 0x84d   :  { %v3361_v33 = vmul.f32 -1.442695, %v2500_v62 }
 0x84e   :  { %v3362_v28 = vmul.f32 -1.442695, %v2502_v59 }
 0x84f   :  { %5069 = vpow2.f32 %v3361_v33 }
 0x850   :  { %5071 = vpow2.f32 %v3362_v28 }
 0x859   :  { %v5070_v50 = vpop.eup %5069 }
 0x85a   :  { %v2578_v27 = vadd.f32 1.0, %v5070_v50  ;;  %v5072_v36 = vpop.eup %5071 }
 0x85b   :  { %v2584_v10 = vadd.f32 1.0, %v5072_v36 }
 0x85c   :  { %5073 = vrcp.f32 %v2578_v27 }
 0x85d   :  { %5075 = vrcp.f32 %v2584_v10 }
 0x866   :  { %v5074_v1 = vpop.eup %5073 }
 0x867   :  { %v2587_v19 = vmul.f32 %v5074_v1, %v2573_v9  ;;  %v5076_v50 = vpop.eup %5075 }
 0x868   :  { %v2590_v27 = vsub.f32 1.0, %v5076_v50  ;;  %v2592_v26 = vmul.f32 %v5076_v50, %v6344_v18 }
 0x869   :  { %v2588_v53 = vadd.f32 %v2587_v19, %v2571_v5 }
 0x86a   :  { %v2663_v54 = vpop.f32.mrb[12].mxu0  ;;  %v2734_v62 = vpop.f32.mrb[12].mxu1 }
 0x86b   :  { %5077 = vtanh.f32 %v2588_v53  ;;  %v3363_v43 = vmul.f32 -1.442695, %v2663_v54  ;;  %v2665_v33 = vpop.f32.mrb[13].mxu0  ;;  %v2736_v59 = vpop.f32.mrb[13].mxu1 }
 0x86c   :  { %v3364_v28 = vmul.f32 -1.442695, %v2665_v33 }
 0x86d   :  { %5079 = vpow2.f32 %v3363_v43 }
 0x86e   :  { %5081 = vpow2.f32 %v3364_v28 }
 0x875   :  { %v5078_v36 = vpop.eup %5077 }
 0x876   :  { %v2591_v17 = vmul.f32 %v5078_v36, %v2590_v27  ;;  %v7213_v36 = vld [vmem:[#allocation60_spill] sm:$0xff] }
 0x877   :  { %v5080_v51 = vpop.eup %5079 }
 0x878   :  { %v2746_v52 = vadd.f32 1.0, %v5080_v51  ;;  %v2593_v10 = vadd.f32 %v2592_v26, %v2591_v17  ;;  %v5082_v9 = vpop.eup %5081  ;;  %v7214_v26 = vld [vmem:[#allocation61_spill] sm:$0xff] }
 0x879   :  { %v2752_v53 = vadd.f32 1.0, %v5082_v9  ;;  %v7218_v9 = vld [vmem:[#allocation65_spill] sm:$0xff] }
 0x87a   :  { %5083 = vrcp.f32 %v2746_v52  ;;  %v6469_v5 = vsel %vm2431_vm6, %v2593_v10, %v6344_v18  ;;  %v2595_v54 = vsel %vm2431_vm6, %v2593_v10, 0.0  ;;  %v6475_v18 = vpop.permute.xlu0 %2764  ;;  %v7215_v52 = vld [vmem:[#allocation62_spill] sm:$0xff]  ;;  %v7216_v10 = vld [vmem:[#allocation63_spill] sm:$0xff] }
 0x87b   :  { %2832 = vmatprep.mubr.f32.mxu0 %v6469_v5  ;;  %3271 = vst [vmem:[#allocation7 + $0x28] sm:$0xff] %v2595_v54  ;;  %2903 = vmatprep.mubr.f32.mxu1 %v6469_v5  ;;  %5085 = vrcp.f32 %v2752_v53  ;;  %vm2766_vm7 = vcmp.eq.s32.totalorder %v6475_v18, 1  ;;  %v7217_v54 = vld [vmem:[#allocation64_spill] sm:$0xff]  ;;  %v7219_v53 = vld [vmem:[#allocation66_spill] sm:$0xff] }
 0x884   :  { %v5084_v1 = vpop.eup %5083 }
 0x885   :  { %v2755_v51 = vmul.f32 %v5084_v1, %v2736_v59  ;;  %v5086_v19 = vpop.eup %5085  ;;  %v7212_v59 = vld [vmem:[#allocation59_spill] sm:$0xff] }
 0x886   :  { %v2758_v43 = vsub.f32 1.0, %v5086_v19  ;;  %v2760_v37 = vmul.f32 %v5086_v19, %v6357_v20  ;;  %v7220_v1 = vld [vmem:[#allocation67_spill] sm:$0xff] }
 0x887   :  { %v2756_v17 = vadd.f32 %v2755_v51, %v2734_v62  ;;  %v7211_v62 = vld [vmem:[#allocation58_spill] sm:$0xff]  ;;  %v7221_v51 = vld [vmem:[#allocation68_spill] sm:$0xff] }
 0x889   :  { %5087 = vtanh.f32 %v2756_v17  ;;  %v7222_v17 = vld [vmem:[#allocation69_spill] sm:$0xff] }
 0x893   :  { %v5088_v33 = vpop.eup %5087 }
 0x894   :  { %v2759_v28 = vmul.f32 %v5088_v33, %v2758_v43  ;;  %v7223_v33 = vld [vmem:[#allocation70_spill] sm:$0xff] }
 0x896   :  { %v2761_v50 = vadd.f32 %v2760_v37, %v2759_v28 }
 0x898   :  { %v6482_v27 = vsel %vm2766_vm7, %v2761_v50, %v6357_v20  ;;  %v7210_v20 = vld [vmem:[#allocation57_spill] sm:$0xff] }
 0x899   :  { %2833 = vmatmul.mubr.f32.vlgmr.msra.gmra.mrb[28].mxu0 %v6482_v27  ;;  %2904 = vmatmul.mubr.f32.vlgmr.msra.gmra.mrb[28].mxu1 %v6482_v27 }
 0x89a   :  { %4726 = vmatpush1.bf16.msra.mxu0 %v5361_v48  ;;  %4758 = vmatpush1.bf16.msra.mxu1 %v5363_v49  ;;  %v7169_v48 = vld [vmem:[#allocation16_spill] sm:$0xff]  ;;  %v7170_v49 = vld [vmem:[#allocation17_spill] sm:$0xff] }
 0x89b   :  { %4728 = vmatprep.subr.bf16.mxu0 %v5367_v55  ;;  %4760 = vmatprep.subr.bf16.mxu1 %v5369_v56  ;;  %v7171_v55 = vld [vmem:[#allocation18_spill] sm:$0xff]  ;;  %v7172_v56 = vld [vmem:[#allocation19_spill] sm:$0xff] }
 0x89c   :  { %2996 = vmatprep.mubr.f32.mxu0 %v6819_v23  ;;  %3067 = vmatprep.mubr.f32.mxu1 %v6819_v23  ;;  %v7209_v23 = vld [vmem:[#allocation56_spill] sm:$0xff] }
 0x89e   :  { %4730 = vmatpush1.bf16.msra.mxu0 %v5375_v63  ;;  %4762 = vmatpush1.bf16.msra.mxu1 %v5377_v0  ;;  %v7173_v63 = vld [vmem:[#allocation20_spill] sm:$0xff]  ;;  %v7174_v0 = vld [vmem:[#allocation21_spill] sm:$0xff] }
 0x89f   :  { %4732 = vmatprep.subr.bf16.mxu0 %v5386_v7  ;;  %4764 = vmatprep.subr.bf16.mxu1 %v5388_v8  ;;  %v7175_v7 = vld [vmem:[#allocation22_spill] sm:$0xff]  ;;  %v7176_v8 = vld [vmem:[#allocation23_spill] sm:$0xff] }
 0x8a2   :  { %4734 = vmatpush1.bf16.msra.mxu0 %v5397_v14  ;;  %4766 = vmatpush1.bf16.msra.mxu1 %v5399_v15  ;;  %v7177_v14 = vld [vmem:[#allocation24_spill] sm:$0xff]  ;;  %v7178_v15 = vld [vmem:[#allocation25_spill] sm:$0xff] }
 0x8a3   :  { %4736 = vmatprep.subr.bf16.mxu0 %v5405_v21  ;;  %4768 = vmatprep.subr.bf16.mxu1 %v5407_v22  ;;  %v7179_v21 = vld [vmem:[#allocation26_spill] sm:$0xff]  ;;  %v7180_v22 = vld [vmem:[#allocation27_spill] sm:$0xff] }
 0x8a6   :  { %4738 = vmatpush1.bf16.msra.mxu0 %v5414_v30  ;;  %4770 = vmatpush1.bf16.msra.mxu1 %v5416_v31  ;;  %v7181_v30 = vld [vmem:[#allocation28_spill] sm:$0xff]  ;;  %v7182_v31 = vld [vmem:[#allocation29_spill] sm:$0xff] }
 0x8a7   :  { %4740 = vmatprep.subr.bf16.mxu0 %v5425_v38  ;;  %4772 = vmatprep.subr.bf16.mxu1 %v5427_v40  ;;  %v7183_v38 = vld [vmem:[#allocation30_spill] sm:$0xff]  ;;  %v7184_v40 = vld [vmem:[#allocation31_spill] sm:$0xff] }
 0x8aa   :  { %4742 = vmatpush1.bf16.msra.mxu0 %v5434_v46  ;;  %4774 = vmatpush1.bf16.msra.mxu1 %v5436_v47  ;;  %v7185_v46 = vld [vmem:[#allocation32_spill] sm:$0xff]  ;;  %v7186_v47 = vld [vmem:[#allocation33_spill] sm:$0xff] }
 0x8ab   :  { %4744 = vmatprep.subr.bf16.mxu0 %v5445_v57  ;;  %4776 = vmatprep.subr.bf16.mxu1 %v5447_v58  ;;  %v7187_v57 = vld [vmem:[#allocation34_spill] sm:$0xff]  ;;  %v7188_v58 = vld [vmem:[#allocation35_spill] sm:$0xff] }
 0x8ae   :  { %4746 = vmatpush1.bf16.msra.mxu0 %v5454_v3  ;;  %4778 = vmatpush1.bf16.msra.mxu1 %v5456_v4  ;;  %v7189_v3 = vld [vmem:[#allocation36_spill] sm:$0xff]  ;;  %v7190_v4 = vld [vmem:[#allocation37_spill] sm:$0xff] }
 0x8af   :  { %4748 = vmatprep.subr.bf16.mxu0 %v5465_v12  ;;  %4780 = vmatprep.subr.bf16.mxu1 %v5467_v13  ;;  %v7191_v12 = vld [vmem:[#allocation38_spill] sm:$0xff]  ;;  %v7192_v13 = vld [vmem:[#allocation39_spill] sm:$0xff] }
 0x8b2   :  { %4750 = vmatpush1.bf16.msra.mxu0 %v5474_v24  ;;  %4782 = vmatpush1.bf16.msra.mxu1 %v5476_v25  ;;  %v7193_v24 = vld [vmem:[#allocation40_spill] sm:$0xff]  ;;  %v7194_v25 = vld [vmem:[#allocation41_spill] sm:$0xff] }
 0x8b3   :  { %4752 = vmatprep.subr.bf16.mxu0 %v5485_v34  ;;  %4784 = vmatprep.subr.bf16.mxu1 %v5487_v35  ;;  %v7195_v34 = vld [vmem:[#allocation42_spill] sm:$0xff]  ;;  %v7196_v35 = vld [vmem:[#allocation43_spill] sm:$0xff] }
 0x8b6   :  { %4754 = vmatpush1.bf16.msra.mxu0 %v5494_v44  ;;  %4786 = vmatpush1.bf16.msra.mxu1 %v5496_v45  ;;  %v7197_v44 = vld [vmem:[#allocation44_spill] sm:$0xff]  ;;  %v7198_v45 = vld [vmem:[#allocation45_spill] sm:$0xff] }
 0x8b7   :  { %4788 = vmatprep.subr.bf16.mxu0 %v5505_v60  ;;  %4852 = vmatprep.subr.bf16.mxu1 %v5507_v61  ;;  %v7199_v60 = vld [vmem:[#allocation46_spill] sm:$0xff]  ;;  %v7200_v61 = vld [vmem:[#allocation47_spill] sm:$0xff] }
 0x8b9   :  { %2997 = vmatmul.mubr.f32.vlgmr.msra.gmra.mrb[14].mxu0 %v6482_v27  ;;  %3068 = vmatmul.mubr.f32.vlgmr.msra.gmra.mrb[14].mxu1 %v6482_v27 }
 0x8ba   :  { %4790 = vmatpush1.bf16.msra.mxu0 %v5513_v39  ;;  %4854 = vmatpush1.bf16.msra.mxu1 %v5515_v6  ;;  %v7201_v39 = vld [vmem:[#allocation48_spill] sm:$0xff]  ;;  %v7202_v6 = vld [vmem:[#allocation49_spill] sm:$0xff] }
 0x8bb   :  { %4792 = vmatprep.subr.bf16.mxu0 %v5519_v11  ;;  %4856 = vmatprep.subr.bf16.mxu1 %v5521_v16  ;;  %v7203_v11 = vld [vmem:[#allocation50_spill] sm:$0xff]  ;;  %v7204_v16 = vld [vmem:[#allocation51_spill] sm:$0xff] }
 0x8be   :  { %4794 = vmatpush1.bf16.msra.mxu0 %v5529_v29  ;;  %4858 = vmatpush1.bf16.msra.mxu1 %v5531_v32  ;;  %v7205_v29 = vld [vmem:[#allocation52_spill] sm:$0xff]  ;;  %v7206_v32 = vld [vmem:[#allocation53_spill] sm:$0xff] }
 0x8bf   :  { %4796 = vmatprep.subr.bf16.mxu0 %v5535_v41  ;;  %4860 = vmatprep.subr.bf16.mxu1 %v5537_v42  ;;  %v7207_v41 = vld [vmem:[#allocation54_spill] sm:$0xff]  ;;  %v7208_v42 = vld [vmem:[#allocation55_spill] sm:$0xff] }
 0x8c2   :  { %4798 = vmatpush1.bf16.msra.mxu0 %v7169_v48  ;;  %4862 = vmatpush1.bf16.msra.mxu1 %v7170_v49  ;;  %v7224_v49 = vld [vmem:[#allocation71_spill] sm:$0xff] }
 0x8c3   :  { %4800 = vmatprep.subr.bf16.mxu0 %v7171_v55  ;;  %4864 = vmatprep.subr.bf16.mxu1 %v7172_v56 }
 0x8c6   :  { %4802 = vmatpush1.bf16.msra.mxu0 %v7173_v63  ;;  %4866 = vmatpush1.bf16.msra.mxu1 %v7174_v0 }
 0x8c7   :  { %4804 = vmatprep.subr.bf16.mxu0 %v7175_v7  ;;  %4868 = vmatprep.subr.bf16.mxu1 %v7176_v8 }
 0x8ca   :  { %4806 = vmatpush1.bf16.msra.mxu0 %v7177_v14  ;;  %4870 = vmatpush1.bf16.msra.mxu1 %v7178_v15  ;;  %v7225_v14 = vld [vmem:[#allocation72_spill] sm:$0xff] }
 0x8cb   :  { %4808 = vmatprep.subr.bf16.mxu0 %v7179_v21  ;;  %4872 = vmatprep.subr.bf16.mxu1 %v7180_v22 }
 0x8ce   :  { %4810 = vmatpush1.bf16.msra.mxu0 %v7181_v30  ;;  %4874 = vmatpush1.bf16.msra.mxu1 %v7182_v31 }
 0x8cf   :  { %4812 = vmatprep.subr.bf16.mxu0 %v7183_v38  ;;  %4876 = vmatprep.subr.bf16.mxu1 %v7184_v40 }
 0x8d2   :  { %4814 = vmatpush1.bf16.msra.mxu0 %v7185_v46  ;;  %4878 = vmatpush1.bf16.msra.mxu1 %v7186_v47 }
 0x8d3   :  { %4816 = vmatprep.subr.bf16.mxu0 %v7187_v57  ;;  %4880 = vmatprep.subr.bf16.mxu1 %v7188_v58 }
 0x8d6   :  { %4818 = vmatpush1.bf16.msra.mxu0 %v7189_v3  ;;  %4882 = vmatpush1.bf16.msra.mxu1 %v7190_v4 }
 0x8d7   :  { %4820 = vmatprep.subr.bf16.mxu0 %v7191_v12  ;;  %4884 = vmatprep.subr.bf16.mxu1 %v7192_v13 }
 0x8da   :  { %4822 = vmatpush1.bf16.msra.mxu0 %v7193_v24  ;;  %4886 = vmatpush1.bf16.msra.mxu1 %v7194_v25 }
 0x8db   :  { %4824 = vmatprep.subr.bf16.mxu0 %v7195_v34  ;;  %4888 = vmatprep.subr.bf16.mxu1 %v7196_v35 }
 0x8de   :  { %4826 = vmatpush1.bf16.msra.mxu0 %v7197_v44  ;;  %4890 = vmatpush1.bf16.msra.mxu1 %v7198_v45 }
 0x8df   :  { %4828 = vmatprep.subr.bf16.mxu0 %v7199_v60  ;;  %4892 = vmatprep.subr.bf16.mxu1 %v7200_v61 }
 0x8e2   :  { %4830 = vmatpush1.bf16.msra.mxu0 %v7201_v39  ;;  %4894 = vmatpush1.bf16.msra.mxu1 %v7202_v6 }
 0x8e3   :  { %4832 = vmatprep.subr.bf16.mxu0 %v7203_v11  ;;  %4896 = vmatprep.subr.bf16.mxu1 %v7204_v16 }
 0x8e6   :  { %4834 = vmatpush1.bf16.msra.mxu0 %v7205_v29  ;;  %4898 = vmatpush1.bf16.msra.mxu1 %v7206_v32 }
 0x8e7   :  { %4836 = vmatprep.subr.bf16.mxu0 %v7207_v41  ;;  %4900 = vmatprep.subr.bf16.mxu1 %v7208_v42  ;;  %v3100_v41 = vpop.permute.xlu1 %3099 }
 0x8e8   :  { %vm3101_vm8 = vcmp.eq.s32.totalorder %v3100_v41, 1 }
 0x8ea   :  { %4838 = vmatpush1.bf16.msra.mxu0 %v7209_v23  ;;  %4902 = vmatpush1.bf16.msra.mxu1 %v7210_v20 }
 0x8eb   :  { %4840 = vmatprep.subr.bf16.mxu0 %v7211_v62  ;;  %4904 = vmatprep.subr.bf16.mxu1 %v7212_v59 }
 0x8ee   :  { %4842 = vmatpush1.bf16.msra.mxu0 %v7213_v36  ;;  %4906 = vmatpush1.bf16.msra.mxu1 %v7214_v26 }
 0x8ef   :  { %4844 = vmatprep.subr.bf16.mxu0 %v7215_v52  ;;  %4908 = vmatprep.subr.bf16.mxu1 %v7216_v10 }
 0x8f2   :  { %4846 = vmatpush1.bf16.msra.mxu0 %v7217_v54  ;;  %4910 = vmatpush1.bf16.msra.mxu1 %v7218_v9 }
 0x8f3   :  { %4848 = vmatprep.subr.bf16.mxu0 %v7219_v53  ;;  %4912 = vmatprep.subr.bf16.mxu1 %v7220_v1 }
 0x8f6   :  { %4850 = vmatpush1.bf16.msra.mxu0 %v7221_v51  ;;  %4914 = vmatpush1.bf16.msra.mxu1 %v7222_v17 }
 0x96c   :  { %v2834_v19 = vpop.f32.mrb[28].mxu0  ;;  %v2905_v43 = vpop.f32.mrb[28].mxu1 }
 0x96d   :  { %v2835_v28 = vadd.f32 %v2834_v19, %v7223_v33  ;;  %v2836_v37 = vpop.f32.mrb[29].mxu0  ;;  %v2907_v50 = vpop.f32.mrb[29].mxu1  ;;  %v2906_v22 = vadd.f32 %v2905_v43, %v5836_v2 }
 0x96e   :  { %v2837_v55 = vadd.f32 %v2836_v37, %v7224_v49  ;;  %v2908_v15 = vadd.f32 %v2907_v50, %v7225_v14 }
 0x96f   :  { %v3365_v48 = vmul.f32 -1.442695, %v2835_v28 }
 0x970   :  { %v3366_v56 = vmul.f32 -1.442695, %v2837_v55 }
 0x971   :  { %5089 = vpow2.f32 %v3365_v48 }
 0x972   :  { %5091 = vpow2.f32 %v3366_v56 }
 0x97b   :  { %v5090_v63 = vpop.eup %5089 }
 0x97c   :  { %v2913_v0 = vadd.f32 1.0, %v5090_v63  ;;  %v5092_v7 = vpop.eup %5091 }
 0x97d   :  { %v2919_v8 = vadd.f32 1.0, %v5092_v7 }
 0x97e   :  { %5093 = vrcp.f32 %v2913_v0 }
 0x97f   :  { %5095 = vrcp.f32 %v2919_v8 }
 0x988   :  { %v5094_v21 = vpop.eup %5093 }
 0x989   :  { %v2922_v30 = vmul.f32 %v5094_v21, %v2908_v15  ;;  %v5096_v3 = vpop.eup %5095 }
 0x98a   :  { %v2925_v4 = vsub.f32 1.0, %v5096_v3  ;;  %v2927_v24 = vmul.f32 %v5096_v3, %v6469_v5 }
 0x98b   :  { %v2923_v31 = vadd.f32 %v2922_v30, %v2906_v22 }
 0x98c   :  { %v2998_v38 = vpop.f32.mrb[14].mxu0  ;;  %v3069_v40 = vpop.f32.mrb[14].mxu1 }
 0x98d   :  { %5097 = vtanh.f32 %v2923_v31  ;;  %v3367_v46 = vmul.f32 -1.442695, %v2998_v38  ;;  %v3000_v47 = vpop.f32.mrb[15].mxu0  ;;  %v3071_v57 = vpop.f32.mrb[15].mxu1 }
 0x98e   :  { %v3368_v58 = vmul.f32 -1.442695, %v3000_v47 }
 0x98f   :  { %5099 = vpow2.f32 %v3367_v46 }
 0x990   :  { %5101 = vpow2.f32 %v3368_v58 }
 0x997   :  { %v5098_v12 = vpop.eup %5097 }
 0x998   :  { %v2926_v13 = vmul.f32 %v5098_v12, %v2925_v4 }
 0x999   :  { %v5100_v25 = vpop.eup %5099 }
 0x99a   :  { %v3081_v34 = vadd.f32 1.0, %v5100_v25  ;;  %v2928_v35 = vadd.f32 %v2927_v24, %v2926_v13  ;;  %v5102_v60 = vpop.eup %5101 }
 0x99b   :  { %v3087_v61 = vadd.f32 1.0, %v5102_v60 }
 0x99c   :  { %5103 = vrcp.f32 %v3081_v34  ;;  %v2929_v44 = vsel %vm2766_vm7, %v2928_v35, %v6469_v5  ;;  %v2930_v45 = vsel %vm2766_vm7, %v2928_v35, 0.0 }
 0x99d   :  { %3167 = vmatprep.mubr.f32.mxu0 %v2929_v44  ;;  %3272 = vst [vmem:[#allocation7 + $0x30] sm:$0xff] %v2930_v45  ;;  %3238 = vmatprep.mubr.f32.mxu1 %v2929_v44  ;;  %5105 = vrcp.f32 %v3087_v61 }
 0x9a6   :  { %v5104_v39 = vpop.eup %5103 }
 0x9a7   :  { %v3090_v6 = vmul.f32 %v5104_v39, %v3071_v57  ;;  %v5106_v16 = vpop.eup %5105 }
 0x9a8   :  { %v3093_v29 = vsub.f32 1.0, %v5106_v16  ;;  %v3095_v5 = vmul.f32 %v5106_v16, %v6482_v27 }
 0x9a9   :  { %v3091_v11 = vadd.f32 %v3090_v6, %v3069_v40 }
 0x9ab   :  { %5107 = vtanh.f32 %v3091_v11 }
 0x9b5   :  { %v5108_v32 = vpop.eup %5107 }
 0x9b6   :  { %v3094_v42 = vmul.f32 %v5108_v32, %v3093_v29 }
 0x9b8   :  { %v3096_v23 = vadd.f32 %v3095_v5, %v3094_v42 }
 0x9ba   :  { %v3102_v18 = vsel %vm3101_vm8, %v3096_v23, %v6482_v27 }
 0x9bb   :  { %3168 = vmatmul.mubr.f32.vlgmr.msra.gmra.mrb[30].mxu0 %v3102_v18  ;;  %3274 = vst [vmem:[#allocation8] sm:$0xff] %v3102_v18  ;;  %3239 = vmatmul.mubr.f32.vlgmr.msra.gmra.mrb[30].mxu1 %v3102_v18 }
 0xa8e   :  { %v3169_v20 = vpop.f32.mrb[30].mxu0  ;;  %v3240_v62 = vpop.f32.mrb[30].mxu1 }
 0xa8f   :  { %v3170_v59 = vadd.f32 %v3169_v20, %v7223_v33  ;;  %v3171_v36 = vpop.f32.mrb[31].mxu0  ;;  %v3242_v26 = vpop.f32.mrb[31].mxu1  ;;  %v3241_v19 = vadd.f32 %v3240_v62, %v5836_v2 }
 0xa90   :  { %v3172_v10 = vadd.f32 %v3171_v36, %v7224_v49  ;;  %v3243_v51 = vadd.f32 %v3242_v26, %v7225_v14 }
 0xa91   :  { %v3369_v52 = vmul.f32 -1.442695, %v3170_v59 }
 0xa92   :  { %v3370_v54 = vmul.f32 -1.442695, %v3172_v10 }
 0xa93   :  { %5109 = vpow2.f32 %v3369_v52 }
 0xa94   :  { %5111 = vpow2.f32 %v3370_v54 }
 0xa9d   :  { %v5110_v9 = vpop.eup %5109 }
 0xa9e   :  { %v3248_v53 = vadd.f32 1.0, %v5110_v9  ;;  %v5112_v1 = vpop.eup %5111 }
 0xa9f   :  { %v3254_v27 = vadd.f32 1.0, %v5112_v1 }
 0xaa0   :  { %5113 = vrcp.f32 %v3248_v53 }
 0xaa1   :  { %5115 = vrcp.f32 %v3254_v27 }
 0xaaa   :  { %v5114_v17 = vpop.eup %5113 }
 0xaab   :  { %v3257_v43 = vmul.f32 %v5114_v17, %v3243_v51  ;;  %v5116_v28 = vpop.eup %5115 }
 0xaac   :  { %v3260_v37 = vsub.f32 1.0, %v5116_v28  ;;  %v3262_v48 = vmul.f32 %v5116_v28, %v2929_v44 }
 0xaad   :  { %v3258_v33 = vadd.f32 %v3257_v43, %v3241_v19 }
 0xaaf   :  { %5117 = vtanh.f32 %v3258_v33 }
 0xab9   :  { %v5118_v50 = vpop.eup %5117 }
 0xaba   :  { %v3261_v49 = vmul.f32 %v5118_v50, %v3260_v37 }
 0xabc   :  { %v3263_v55 = vadd.f32 %v3262_v48, %v3261_v49 }
 0xabe   :  { %v3265_v56 = vsel %vm3101_vm8, %v3263_v55, 0.0  ;;  %v3264_v2 = vsel %vm3101_vm8, %v3263_v55, %v2929_v44 }
 0xabf   :  { %3273 = vst [vmem:[#allocation7 + $0x38] sm:$0xff] %v3265_v56  ;;  %3276 = vst [vmem:[#allocation8 + $0x8] sm:$0xff] %v3264_v2 }
 0xac0   :  { %5174 = shalt.err (!%p5171_p6)
}
 0xac1   :  { %s5175_s16 = scalar_lea.hbm %s6640_s6, 1024 }
 0xac2   :  { %p5176_p7 = scmp.ne.s32.totalorder %s6640_s6, %s5175_s16  ;;  %p5179_p8 = scmp.lt.u32.totalorder %s5175_s16, %s6640_s6 }
 0xac4   :  { %p5181_p9 = pnand %p5179_p8, %p5176_p7 }
 0xac6   :  { %5184 = shalt.err (!%p5181_p9)
}
 0xac7   :  { %3286 = dma.vmem_to_hbm [thread:$0]  %s3284_s10, 1024, %s6640_s6, [#allocation4]  }
 0xac8   :  { %s5185_s23 = scalar_lea.vmem %s6601_s12, 256  ;;  %p5190_p11 = scmp.lt.s32.totalorder %s6601_s12, %s6601_s12 }
 0xac9   :  { %p5186_p10 = scmp.ne.s32.totalorder %s6601_s12, %s5185_s23  ;;  %p5191_p12 = scmp.lt.s32.totalorder %s5185_s23, %s5185_s23 }
 0xacb   :  { %p5192_p13 = por %p5191_p12, %p5190_p11 }
 0xacd   :  { %p5193_p0 = pnand %p5192_p13, %p5186_p10 }
 0xacf   :  { %5196 = shalt.err (!%p5193_p0)
}
 0xad0   :  { %s5197_s25 = scalar_lea.hbm %s6641_s7, 256 }
 0xad1   :  { %p5198_p1 = scmp.ne.s32.totalorder %s6641_s7, %s5197_s25  ;;  %p5201_p2 = scmp.lt.u32.totalorder %s5197_s25, %s6641_s7 }
 0xad3   :  { %p5203_p3 = pnand %p5201_p2, %p5198_p1 }
 0xad5   :  { %5206 = shalt.err (!%p5203_p3)
}
 0xad6   :  { %s5223_s6 = smov 128   ;;  %s5224_s29 = smov 8  }
 0xad7   :  { %3298 = dma.vmem_to_hbm [thread:$0]  %s6601_s12, 256, %s6641_s7, [#allocation9], %s5223_s6, %s5223_s6, %s5224_s29  }
 0xad8   :  { %5211 = dma.done.wait [#allocation4], 1024  }
 0xad9   :  { %5212 = vsyncadd [#allocation4], 4294966272 }
 0xada   :  { %5213 = dma.done.wait [#allocation9], 256  }
 0xadb   :  { %5214 = vsyncadd [#allocation9], 4294967040 }
 0xadc   :  { %3305 = vsyncpa [#allocation3], 1 }
 0xadd   :  { %3306 = vsyncpa [#allocation6], 1 }
 0xade   :  { %3307 = vsyncpa [#allocation4], 1 }
 0xadf   :  { %3308 = vsyncpa [#allocation9], 1 }

</bundles_post_ra>
